<compile_context>
chip_gen: v6e
topology: v6e:2x2x1
jax: 0.10.0
libtpu: 0.0.40
codegen_flags: <defaults>
</compile_context>

<pallas_src>
import functools

import jax
import jax.numpy as jnp
from jax.experimental import pallas as pl
from jax.experimental.pallas import tpu as pltpu

H = 512
IN_DIM = 28 * 28          # 784
IN_PAD = 896              # 7 * 128, lane-aligned K for fc1
OUT_DIM = 10
OUT_PAD = 128             # lane-aligned N for fc5 / output store
N_BIAS_ROWS = 8           # 5 bias rows padded up to a full (8, 512) tile


def _round_up(x, m):
    return (x + m - 1) // m * m


def _choose_tb(batch):
    """Pick the batch-tile size.

    * multiples of 16 (bf16 packs 16 rows per sublane group), ideally 256
      (MXU row count on v6e/v7x)
    * for large batches: at least 2 grid steps so Mosaic can shard the
      "parallel" batch axis across both v7x TensorCores
    * capped at 1024: fits comfortably in v7x's 64 MiB VMEM while still
      amortizing the ~0.35 us per-step pipeline overhead on v6e/v5e
    """
    b16 = _round_up(max(batch, 16), 16)
    if b16 <= 256:
        return b16
    half = -(-b16 // 2)                       # cdiv(b16, 2)
    return min(_round_up(half, 256), 1024)


def _mlp_kernel(x_ref, w1_ref, w234_ref, w5_ref, b_ref, o_ref):
    """Fused 5-layer MLP on one (TB, .) batch tile, everything in VMEM."""

    def layer(h_bf16, w, b):
        acc = jnp.dot(h_bf16, w, preferred_element_type=jnp.float32)
        return jnp.maximum(acc + b, 0.0)          # bias + ReLU in f32

    b_all = b_ref[...]                            # (8, 512) f32
    h = x_ref[...]                                # (TB, 896) bf16
    h = layer(h, w1_ref[...],              b_all[0:1, :]).astype(jnp.bfloat16)
    h = layer(h, w234_ref[:, 0:H],         b_all[1:2, :]).astype(jnp.bfloat16)
    h = layer(h, w234_ref[:, H:2 * H],     b_all[2:3, :]).astype(jnp.bfloat16)
    h = layer(h, w234_ref[:, 2 * H:3 * H], b_all[3:4, :]).astype(jnp.bfloat16)
    h = layer(h, w5_ref[...],              b_all[4:5, 0:OUT_PAD])  # keep f32
    o_ref[...] = h.astype(o_ref.dtype)            # (TB, 128) f32


def _pallas_forward(x_pad, w1, w234, w5, b_all, *, tb, use_buffered):
    b_pad = x_pad.shape[0]
    grid = (b_pad // tb,)

    if use_buffered:
        # Constant block index + single buffer: loaded once, stays VMEM-resident,
        # and does not pay for a second (double-buffer) copy.
        def resident(shape):
            return pl.BlockSpec(shape, lambda i: (0, 0),
                                pipeline_mode=pl.Buffered(1))
    else:
        def resident(shape):
            return pl.BlockSpec(shape, lambda i: (0, 0))

    in_specs = [
        pl.BlockSpec((tb, IN_PAD), lambda i: (i, 0)),     # x tile (pipelined)
        resident((IN_PAD, H)),                            # fc1 weight (896, 512)
        resident((H, 3 * H)),                             # fc2..fc4 weights (512, 1536)
        resident((H, OUT_PAD)),                           # fc5 weight (512, 128)
        resident((N_BIAS_ROWS, H)),                       # all biases (8, 512)
    ]
    out_spec = pl.BlockSpec((tb, OUT_PAD), lambda i: (i, 0))

    flops = 2 * b_pad * (IN_PAD * H + 3 * H * H + H * OUT_PAD)
    weight_bytes = 2 * (IN_PAD * H + 3 * H * H + H * OUT_PAD)     # bf16
    bytes_accessed = (weight_bytes + 4 * N_BIAS_ROWS * H          # biases f32
                      + 2 * b_pad * IN_PAD                        # x bf16
                      + 4 * b_pad * OUT_PAD)                      # out f32

    return pl.pallas_call(
        _mlp_kernel,
        out_shape=jax.ShapeDtypeStruct((b_pad, OUT_PAD), jnp.float32),
        grid=grid,
        in_specs=in_specs,
        out_specs=out_spec,
        compiler_params=pltpu.CompilerParams(
            dimension_semantics=("parallel",),
            vmem_limit_bytes=48 * 1024 * 1024,
        ),
        cost_estimate=pl.CostEstimate(
            flops=flops, bytes_accessed=bytes_accessed, transcendentals=0),
    )(x_pad, w1, w234, w5, b_all)


@functools.partial(jax.jit, static_argnames=("tb", "use_buffered"))
def _forward_jit(x_nchw, w1, w234, w5, b_all, *, tb, use_buffered):
    batch = x_nchw.shape[0]
    b_pad = _round_up(batch, tb)
    # reshape + bf16 cast + pad fuse into one XLA pass under jit.
    x = x_nchw.reshape(batch, IN_DIM).astype(jnp.bfloat16)
    x = jnp.pad(x, ((0, b_pad - batch), (0, IN_PAD - IN_DIM)))   # (b_pad, 896)
    out = _pallas_forward(x, w1, w234, w5, b_all,
                          tb=tb, use_buffered=use_buffered)
    return out[:batch, :OUT_DIM]


_BUFFERED_OK = None   # lazily probed: fall back if Buffered(1) is rejected


def mlp_forward(x_nchw, prepared_params):
    """x_nchw: (B, 1, 28, 28) float32.  Returns (B, 10) float32."""
    global _BUFFERED_OK
    w1, w234, w5, b_all = prepared_params
    tb = _choose_tb(x_nchw.shape[0])
    if _BUFFERED_OK is None:
        try:
            out = jax.block_until_ready(
                _forward_jit(x_nchw, w1, w234, w5, b_all,
                             tb=tb, use_buffered=True))
            _BUFFERED_OK = True
            return out
        except Exception:
            _BUFFERED_OK = False
    return _forward_jit(x_nchw, w1, w234, w5, b_all,
                        tb=tb, use_buffered=_BUFFERED_OK)


def init_params(key):
    """Deterministic init matching the PyTorch module (f32, unpadded).

    Weights: kaiming_normal_ (fan_in, gain=sqrt(2))  -> std = sqrt(2/fan_in)
    Biases:  PyTorch nn.Linear default U(-1/sqrt(fan_in), 1/sqrt(fan_in))
    Stored transposed as (in_features, out_features) for x @ W; biases (1, N).
    """
    dims = [(IN_DIM, H), (H, H), (H, H), (H, H), (H, OUT_DIM)]
    params = []
    for (fan_in, fan_out) in dims:
        key, kw, kb = jax.random.split(key, 3)
        std = (2.0 / fan_in) ** 0.5
        w = std * jax.random.normal(kw, (fan_in, fan_out), dtype=jnp.float32)
        bound = 1.0 / (fan_in ** 0.5)
        b = jax.random.uniform(kb, (1, fan_out), dtype=jnp.float32,
                               minval=-bound, maxval=bound)
        params.append((w, b))
    return params


def prepare_params(params):
    """One-time pad + cast + consolidation (no per-call relayout).

    - W1 zero-padded along K: (784, 512) -> (896, 512), bf16
    - W2..W4 concatenated:    3 x (512, 512) -> (512, 1536), bf16
    - W5 zero-padded along N: (512, 10) -> (512, 128), bf16
    - all 5 biases stacked into one (8, 512) f32 array (rows 5..7 zero;
      row 4 holds b5 in its first 10 lanes)
    """
    (w1, b1), (w2, b2), (w3, b3), (w4, b4), (w5, b5) = params
    w1p = jnp.pad(w1, ((0, IN_PAD - IN_DIM), (0, 0))).astype(jnp.bfloat16)
    w234 = jnp.concatenate([w2, w3, w4], axis=1).astype(jnp.bfloat16)
    w5p = jnp.pad(w5, ((0, 0), (0, OUT_PAD - OUT_DIM))).astype(jnp.bfloat16)

    b_all = jnp.zeros((N_BIAS_ROWS, H), jnp.float32)
    b_all = b_all.at[0, :].set(b1[0].astype(jnp.float32))
    b_all = b_all.at[1, :].set(b2[0].astype(jnp.float32))
    b_all = b_all.at[2, :].set(b3[0].astype(jnp.float32))
    b_all = b_all.at[3, :].set(b4[0].astype(jnp.float32))
    b_all = b_all.at[4, :OUT_DIM].set(b5[0].astype(jnp.float32))

    # TODO(synk): quantize weights (int8/int4 on v5e/v6e, fp8 on v7x) with
    # per-output-channel scales folded into the f32 bias+ReLU epilogue.
    return tuple(jax.device_put(t) for t in (w1p, w234, w5p, b_all))


def mlp_reference(x_nchw, params):
    """Pure-JAX f32 reference matching the PyTorch forward (eval mode)."""
    h = x_nchw.reshape(x_nchw.shape[0], IN_DIM).astype(jnp.float32)
    for (w, b) in params:
        h = jnp.maximum(h @ w + b, 0.0)
    return h


if __name__ == "__main__":
    key = jax.random.PRNGKey(0)
    key, kx = jax.random.split(key)

    # Small MNIST-shaped batch, NCHW like PyTorch: (8, 1, 28, 28).
    x = jax.random.normal(kx, (8, 1, 28, 28), dtype=jnp.float32)

    params = init_params(key)
    prepared = prepare_params(params)

    out = mlp_forward(x, prepared)
    out = jax.block_until_ready(out)

    # sanity: shape, finiteness, and agreement with the f32 reference
    # (bf16 weights/activations with f32 accumulation -> generous tolerance).
    assert out.shape == (8, 10), out.shape
    assert bool(jnp.all(jnp.isfinite(out)))
    ref = mlp_reference(x, params)
    rel_err = float(jnp.max(jnp.abs(out - ref)) / (jnp.max(jnp.abs(ref)) + 1e-6))
    assert rel_err < 5e-2, f"relative error too high: {rel_err}"

    print("KERNEL_OK")
</pallas_src>

<mosaic_0001>
module attributes {stable_mosaic.version = 11 : i64} {
  func.func @_mlp_kernel(%arg0: i32, %arg1: memref<16x896xbf16, #tpu.memory_space<vmem>>, %arg2: memref<896x512xbf16, #tpu.memory_space<vmem>>, %arg3: memref<512x1536xbf16, #tpu.memory_space<vmem>>, %arg4: memref<512x128xbf16, #tpu.memory_space<vmem>>, %arg5: memref<8x512xf32, #tpu.memory_space<vmem>>, %arg6: memref<16x128xf32, #tpu.memory_space<vmem>>) attributes {dimension_semantics = [#tpu.dimension_semantics<parallel>], iteration_bounds = array<i64: 1>, scalar_prefetch = 0 : i64, scratch_operands = 0 : i64, tpu.core_type = #tpu.core_type<tc>, window_params = [{transform_indices = @transform_0, window_bounds = array<i64: 16, 896>}, {pipeline_mode = #tpu.pipeline_mode<synchronous>, transform_indices = @transform_1, window_bounds = array<i64: 896, 512>}, {pipeline_mode = #tpu.pipeline_mode<synchronous>, transform_indices = @transform_2, window_bounds = array<i64: 512, 1536>}, {pipeline_mode = #tpu.pipeline_mode<synchronous>, transform_indices = @transform_3, window_bounds = array<i64: 512, 128>}, {pipeline_mode = #tpu.pipeline_mode<synchronous>, transform_indices = @transform_4, window_bounds = array<i64: 8, 512>}, {transform_indices = @transform_5, window_bounds = array<i64: 16, 128>}]} {
    %c0 = arith.constant 0 : index
    %c0_0 = arith.constant 0 : index
    %0 = vector.load %arg5[%c0, %c0_0] : memref<8x512xf32, #tpu.memory_space<vmem>>, vector<8x512xf32>
    %c0_1 = arith.constant 0 : index
    %c0_2 = arith.constant 0 : index
    %1 = vector.load %arg1[%c0_1, %c0_2] : memref<16x896xbf16, #tpu.memory_space<vmem>>, vector<16x896xbf16>
    %c0_3 = arith.constant 0 : index
    %c0_4 = arith.constant 0 : index
    %2 = vector.load %arg2[%c0_3, %c0_4] : memref<896x512xbf16, #tpu.memory_space<vmem>>, vector<896x512xbf16>
    %3 = vector.extract_strided_slice %0 {offsets = [0, 0], sizes = [1, 512], strides = [1, 1]} : vector<8x512xf32> to vector<1x512xf32>
    %cst = arith.constant dense<0.000000e+00> : vector<16x512xf32>
    %4 = tpu.matmul %1, %2, %cst {dimension_numbers = #tpu.dot_dimension_numbers<[1], [0], [0], [1], [0, 0, 1, 1], [], []>} : vector<16x896xbf16>, vector<896x512xbf16>, vector<16x512xf32> -> vector<16x512xf32>
    %5 = vector.broadcast %3 : vector<1x512xf32> to vector<16x512xf32>
    %6 = arith.addf %4, %5 : vector<16x512xf32>
    %cst_5 = arith.constant 0.000000e+00 : f32
    %7 = vector.broadcast %cst_5 : f32 to vector<16x512xf32>
    %8 = arith.maximumf %6, %7 : vector<16x512xf32>
    %9 = arith.truncf %8 : vector<16x512xf32> to vector<16x512xbf16>
    %c0_6 = arith.constant 0 : index
    %c0_7 = arith.constant 0 : index
    %10 = vector.load %arg3[%c0_6, %c0_7] : memref<512x1536xbf16, #tpu.memory_space<vmem>>, vector<512x512xbf16>
    %11 = vector.extract_strided_slice %0 {offsets = [1, 0], sizes = [1, 512], strides = [1, 1]} : vector<8x512xf32> to vector<1x512xf32>
    %cst_8 = arith.constant dense<0.000000e+00> : vector<16x512xf32>
    %12 = tpu.matmul %9, %10, %cst_8 {dimension_numbers = #tpu.dot_dimension_numbers<[1], [0], [0], [1], [0, 0, 1, 1], [], []>} : vector<16x512xbf16>, vector<512x512xbf16>, vector<16x512xf32> -> vector<16x512xf32>
    %13 = vector.broadcast %11 : vector<1x512xf32> to vector<16x512xf32>
    %14 = arith.addf %12, %13 : vector<16x512xf32>
    %cst_9 = arith.constant 0.000000e+00 : f32
    %15 = vector.broadcast %cst_9 : f32 to vector<16x512xf32>
    %16 = arith.maximumf %14, %15 : vector<16x512xf32>
    %17 = arith.truncf %16 : vector<16x512xf32> to vector<16x512xbf16>
    %c0_10 = arith.constant 0 : index
    %c512 = arith.constant 512 : index
    %18 = vector.load %arg3[%c0_10, %c512] : memref<512x1536xbf16, #tpu.memory_space<vmem>>, vector<512x512xbf16>
    %19 = vector.extract_strided_slice %0 {offsets = [2, 0], sizes = [1, 512], strides = [1, 1]} : vector<8x512xf32> to vector<1x512xf32>
    %cst_11 = arith.constant dense<0.000000e+00> : vector<16x512xf32>
    %20 = tpu.matmul %17, %18, %cst_11 {dimension_numbers = #tpu.dot_dimension_numbers<[1], [0], [0], [1], [0, 0, 1, 1], [], []>} : vector<16x512xbf16>, vector<512x512xbf16>, vector<16x512xf32> -> vector<16x512xf32>
    %21 = vector.broadcast %19 : vector<1x512xf32> to vector<16x512xf32>
    %22 = arith.addf %20, %21 : vector<16x512xf32>
    %cst_12 = arith.constant 0.000000e+00 : f32
    %23 = vector.broadcast %cst_12 : f32 to vector<16x512xf32>
    %24 = arith.maximumf %22, %23 : vector<16x512xf32>
    %25 = arith.truncf %24 : vector<16x512xf32> to vector<16x512xbf16>
    %c0_13 = arith.constant 0 : index
    %c1024 = arith.constant 1024 : index
    %26 = vector.load %arg3[%c0_13, %c1024] : memref<512x1536xbf16, #tpu.memory_space<vmem>>, vector<512x512xbf16>
    %27 = vector.extract_strided_slice %0 {offsets = [3, 0], sizes = [1, 512], strides = [1, 1]} : vector<8x512xf32> to vector<1x512xf32>
    %cst_14 = arith.constant dense<0.000000e+00> : vector<16x512xf32>
    %28 = tpu.matmul %25, %26, %cst_14 {dimension_numbers = #tpu.dot_dimension_numbers<[1], [0], [0], [1], [0, 0, 1, 1], [], []>} : vector<16x512xbf16>, vector<512x512xbf16>, vector<16x512xf32> -> vector<16x512xf32>
    %29 = vector.broadcast %27 : vector<1x512xf32> to vector<16x512xf32>
    %30 = arith.addf %28, %29 : vector<16x512xf32>
    %cst_15 = arith.constant 0.000000e+00 : f32
    %31 = vector.broadcast %cst_15 : f32 to vector<16x512xf32>
    %32 = arith.maximumf %30, %31 : vector<16x512xf32>
    %33 = arith.truncf %32 : vector<16x512xf32> to vector<16x512xbf16>
    %c0_16 = arith.constant 0 : index
    %c0_17 = arith.constant 0 : index
    %34 = vector.load %arg4[%c0_16, %c0_17] : memref<512x128xbf16, #tpu.memory_space<vmem>>, vector<512x128xbf16>
    %35 = vector.extract_strided_slice %0 {offsets = [4, 0], sizes = [1, 128], strides = [1, 1]} : vector<8x512xf32> to vector<1x128xf32>
    %cst_18 = arith.constant dense<0.000000e+00> : vector<16x128xf32>
    %36 = tpu.matmul %33, %34, %cst_18 {dimension_numbers = #tpu.dot_dimension_numbers<[1], [0], [0], [1], [0, 0, 1, 1], [], []>} : vector<16x512xbf16>, vector<512x128xbf16>, vector<16x128xf32> -> vector<16x128xf32>
    %37 = vector.broadcast %35 : vector<1x128xf32> to vector<16x128xf32>
    %38 = arith.addf %36, %37 : vector<16x128xf32>
    %cst_19 = arith.constant 0.000000e+00 : f32
    %39 = vector.broadcast %cst_19 : f32 to vector<16x128xf32>
    %40 = arith.maximumf %38, %39 : vector<16x128xf32>
    %c0_20 = arith.constant 0 : index
    %c0_21 = arith.constant 0 : index
    %41 = vector.load %arg6[%c0_20, %c0_21] : memref<16x128xf32, #tpu.memory_space<vmem>>, vector<16x128xf32>
    tpu.vector_store %arg6[%c0_20, %c0_21], %40 {strides = array<i32>} : memref<16x128xf32, #tpu.memory_space<vmem>>, vector<16x128xf32>,
    return
  }
  func.func @transform_0(%arg0: i32) -> (i32, i32) {
    %c0_i32 = arith.constant 0 : i32
    %c0_i32_0 = arith.constant 0 : i32
    return %arg0, %c0_i32 : i32, i32
  }
  func.func @transform_1(%arg0: i32) -> (i32, i32) {
    %c0_i32 = arith.constant 0 : i32
    %c0_i32_0 = arith.constant 0 : i32
    %c0_i32_1 = arith.constant 0 : i32
    return %c0_i32, %c0_i32_0 : i32, i32
  }
  func.func @transform_2(%arg0: i32) -> (i32, i32) {
    %c0_i32 = arith.constant 0 : i32
    %c0_i32_0 = arith.constant 0 : i32
    %c0_i32_1 = arith.constant 0 : i32
    return %c0_i32, %c0_i32_0 : i32, i32
  }
  func.func @transform_3(%arg0: i32) -> (i32, i32) {
    %c0_i32 = arith.constant 0 : i32
    %c0_i32_0 = arith.constant 0 : i32
    %c0_i32_1 = arith.constant 0 : i32
    return %c0_i32, %c0_i32_0 : i32, i32
  }
  func.func @transform_4(%arg0: i32) -> (i32, i32) {
    %c0_i32 = arith.constant 0 : i32
    %c0_i32_0 = arith.constant 0 : i32
    %c0_i32_1 = arith.constant 0 : i32
    return %c0_i32, %c0_i32_0 : i32, i32
  }
  func.func @transform_5(%arg0: i32) -> (i32, i32) {
    %c0_i32 = arith.constant 0 : i32
    %c0_i32_0 = arith.constant 0 : i32
    return %arg0, %c0_i32 : i32, i32
  }
}

module attributes {stable_mosaic.version = 11 : i64} {
  func.func @_mlp_kernel(%arg0: i32, %arg1: memref<16x896xbf16, #tpu.memory_space<vmem>>, %arg2: memref<896x512xbf16, #tpu.memory_space<vmem>>, %arg3: memref<512x1536xbf16, #tpu.memory_space<vmem>>, %arg4: memref<512x128xbf16, #tpu.memory_space<vmem>>, %arg5: memref<8x512xf32, #tpu.memory_space<vmem>>, %arg6: memref<16x128xf32, #tpu.memory_space<vmem>>) attributes {dimension_semantics = [#tpu.dimension_semantics<parallel>], iteration_bounds = array<i64: 1>, scalar_prefetch = 0 : i64, scratch_operands = 0 : i64, tpu.core_type = #tpu.core_type<tc>, window_params = [{transform_indices = @transform_0, window_bounds = array<i64: 16, 896>}, {pipeline_mode = #tpu.pipeline_mode<synchronous>, transform_indices = @transform_1, window_bounds = array<i64: 896, 512>}, {pipeline_mode = #tpu.pipeline_mode<synchronous>, transform_indices = @transform_2, window_bounds = array<i64: 512, 1536>}, {pipeline_mode = #tpu.pipeline_mode<synchronous>, transform_indices = @transform_3, window_bounds = array<i64: 512, 128>}, {pipeline_mode = #tpu.pipeline_mode<synchronous>, transform_indices = @transform_4, window_bounds = array<i64: 8, 512>}, {transform_indices = @transform_5, window_bounds = array<i64: 16, 128>}]} {
    %c0 = arith.constant 0 : index
    %c0_0 = arith.constant 0 : index
    %0 = vector.load %arg5[%c0, %c0_0] : memref<8x512xf32, #tpu.memory_space<vmem>>, vector<8x512xf32>
    %c0_1 = arith.constant 0 : index
    %c0_2 = arith.constant 0 : index
    %1 = vector.load %arg1[%c0_1, %c0_2] : memref<16x896xbf16, #tpu.memory_space<vmem>>, vector<16x896xbf16>
    %c0_3 = arith.constant 0 : index
    %c0_4 = arith.constant 0 : index
    %2 = vector.load %arg2[%c0_3, %c0_4] : memref<896x512xbf16, #tpu.memory_space<vmem>>, vector<896x512xbf16>
    %3 = vector.extract_strided_slice %0 {offsets = [0, 0], sizes = [1, 512], strides = [1, 1]} : vector<8x512xf32> to vector<1x512xf32>
    %cst = arith.constant dense<0.000000e+00> : vector<16x512xf32>
    %4 = tpu.matmul %1, %2, %cst {dimension_numbers = #tpu.dot_dimension_numbers<[1], [0], [0], [1], [0, 0, 1, 1], [], []>} : vector<16x896xbf16>, vector<896x512xbf16>, vector<16x512xf32> -> vector<16x512xf32>
    %5 = vector.broadcast %3 : vector<1x512xf32> to vector<16x512xf32>
    %6 = arith.addf %4, %5 : vector<16x512xf32>
    %cst_5 = arith.constant 0.000000e+00 : f32
    %7 = vector.broadcast %cst_5 : f32 to vector<16x512xf32>
    %8 = arith.maximumf %6, %7 : vector<16x512xf32>
    %9 = arith.truncf %8 : vector<16x512xf32> to vector<16x512xbf16>
    %c0_6 = arith.constant 0 : index
    %c0_7 = arith.constant 0 : index
    %10 = vector.load %arg3[%c0_6, %c0_7] : memref<512x1536xbf16, #tpu.memory_space<vmem>>, vector<512x512xbf16>
    %11 = vector.extract_strided_slice %0 {offsets = [1, 0], sizes = [1, 512], strides = [1, 1]} : vector<8x512xf32> to vector<1x512xf32>
    %cst_8 = arith.constant dense<0.000000e+00> : vector<16x512xf32>
    %12 = tpu.matmul %9, %10, %cst_8 {dimension_numbers = #tpu.dot_dimension_numbers<[1], [0], [0], [1], [0, 0, 1, 1], [], []>} : vector<16x512xbf16>, vector<512x512xbf16>, vector<16x512xf32> -> vector<16x512xf32>
    %13 = vector.broadcast %11 : vector<1x512xf32> to vector<16x512xf32>
    %14 = arith.addf %12, %13 : vector<16x512xf32>
    %cst_9 = arith.constant 0.000000e+00 : f32
    %15 = vector.broadcast %cst_9 : f32 to vector<16x512xf32>
    %16 = arith.maximumf %14, %15 : vector<16x512xf32>
    %17 = arith.truncf %16 : vector<16x512xf32> to vector<16x512xbf16>
    %c0_10 = arith.constant 0 : index
    %c512 = arith.constant 512 : index
    %18 = vector.load %arg3[%c0_10, %c512] : memref<512x1536xbf16, #tpu.memory_space<vmem>>, vector<512x512xbf16>
    %19 = vector.extract_strided_slice %0 {offsets = [2, 0], sizes = [1, 512], strides = [1, 1]} : vector<8x512xf32> to vector<1x512xf32>
    %cst_11 = arith.constant dense<0.000000e+00> : vector<16x512xf32>
    %20 = tpu.matmul %17, %18, %cst_11 {dimension_numbers = #tpu.dot_dimension_numbers<[1], [0], [0], [1], [0, 0, 1, 1], [], []>} : vector<16x512xbf16>, vector<512x512xbf16>, vector<16x512xf32> -> vector<16x512xf32>
    %21 = vector.broadcast %19 : vector<1x512xf32> to vector<16x512xf32>
    %22 = arith.addf %20, %21 : vector<16x512xf32>
    %cst_12 = arith.constant 0.000000e+00 : f32
    %23 = vector.broadcast %cst_12 : f32 to vector<16x512xf32>
    %24 = arith.maximumf %22, %23 : vector<16x512xf32>
    %25 = arith.truncf %24 : vector<16x512xf32> to vector<16x512xbf16>
    %c0_13 = arith.constant 0 : index
    %c1024 = arith.constant 1024 : index
    %26 = vector.load %arg3[%c0_13, %c1024] : memref<512x1536xbf16, #tpu.memory_space<vmem>>, vector<512x512xbf16>
    %27 = vector.extract_strided_slice %0 {offsets = [3, 0], sizes = [1, 512], strides = [1, 1]} : vector<8x512xf32> to vector<1x512xf32>
    %cst_14 = arith.constant dense<0.000000e+00> : vector<16x512xf32>
    %28 = tpu.matmul %25, %26, %cst_14 {dimension_numbers = #tpu.dot_dimension_numbers<[1], [0], [0], [1], [0, 0, 1, 1], [], []>} : vector<16x512xbf16>, vector<512x512xbf16>, vector<16x512xf32> -> vector<16x512xf32>
    %29 = vector.broadcast %27 : vector<1x512xf32> to vector<16x512xf32>
    %30 = arith.addf %28, %29 : vector<16x512xf32>
    %cst_15 = arith.constant 0.000000e+00 : f32
    %31 = vector.broadcast %cst_15 : f32 to vector<16x512xf32>
    %32 = arith.maximumf %30, %31 : vector<16x512xf32>
    %33 = arith.truncf %32 : vector<16x512xf32> to vector<16x512xbf16>
    %c0_16 = arith.constant 0 : index
    %c0_17 = arith.constant 0 : index
    %34 = vector.load %arg4[%c0_16, %c0_17] : memref<512x128xbf16, #tpu.memory_space<vmem>>, vector<512x128xbf16>
    %35 = vector.extract_strided_slice %0 {offsets = [4, 0], sizes = [1, 128], strides = [1, 1]} : vector<8x512xf32> to vector<1x128xf32>
    %cst_18 = arith.constant dense<0.000000e+00> : vector<16x128xf32>
    %36 = tpu.matmul %33, %34, %cst_18 {dimension_numbers = #tpu.dot_dimension_numbers<[1], [0], [0], [1], [0, 0, 1, 1], [], []>} : vector<16x512xbf16>, vector<512x128xbf16>, vector<16x128xf32> -> vector<16x128xf32>
    %37 = vector.broadcast %35 : vector<1x128xf32> to vector<16x128xf32>
    %38 = arith.addf %36, %37 : vector<16x128xf32>
    %cst_19 = arith.constant 0.000000e+00 : f32
    %39 = vector.broadcast %cst_19 : f32 to vector<16x128xf32>
    %40 = arith.maximumf %38, %39 : vector<16x128xf32>
    %c0_20 = arith.constant 0 : index
    %c0_21 = arith.constant 0 : index
    %41 = vector.load %arg6[%c0_20, %c0_21] : memref<16x128xf32, #tpu.memory_space<vmem>>, vector<16x128xf32>
    tpu.vector_store %arg6[%c0_20, %c0_21], %40 {strides = array<i32>} : memref<16x128xf32, #tpu.memory_space<vmem>>, vector<16x128xf32>,
    return
  }
  func.func @transform_0(%arg0: i32) -> (i32, i32) {
    %c0_i32 = arith.constant 0 : i32
    %c0_i32_0 = arith.constant 0 : i32
    return %arg0, %c0_i32 : i32, i32
  }
  func.func @transform_1(%arg0: i32) -> (i32, i32) {
    %c0_i32 = arith.constant 0 : i32
    %c0_i32_0 = arith.constant 0 : i32
    %c0_i32_1 = arith.constant 0 : i32
    return %c0_i32, %c0_i32_0 : i32, i32
  }
  func.func @transform_2(%arg0: i32) -> (i32, i32) {
    %c0_i32 = arith.constant 0 : i32
    %c0_i32_0 = arith.constant 0 : i32
    %c0_i32_1 = arith.constant 0 : i32
    return %c0_i32, %c0_i32_0 : i32, i32
  }
  func.func @transform_3(%arg0: i32) -> (i32, i32) {
    %c0_i32 = arith.constant 0 : i32
    %c0_i32_0 = arith.constant 0 : i32
    %c0_i32_1 = arith.constant 0 : i32
    return %c0_i32, %c0_i32_0 : i32, i32
  }
  func.func @transform_4(%arg0: i32) -> (i32, i32) {
    %c0_i32 = arith.constant 0 : i32
    %c0_i32_0 = arith.constant 0 : i32
    %c0_i32_1 = arith.constant 0 : i32
    return %c0_i32, %c0_i32_0 : i32, i32
  }
  func.func @transform_5(%arg0: i32) -> (i32, i32) {
    %c0_i32 = arith.constant 0 : i32
    %c0_i32_0 = arith.constant 0 : i32
    return %arg0, %c0_i32 : i32, i32
  }
}

</mosaic_0001>

<bundles_post_ra>
// kernel: _forward_jit.1
= control target key start
LH: loop header
LB: loop body
LE: loop exit
PB: predicated region body
PF: predicated region fallthrough
CT: control target
= control target key end

     0   :  { %10 = vsyncpa [#allocation3], 0  ;;  %s7033_s0 = inlined_call_operand.vmem [shape: bf16[16,896], index: 0, kind: input, shape index: {}]   ;;  %s7034_s1 = inlined_call_operand.hbm [shape: bf16[896,512], index: 1, kind: input, shape index: {}]   ;;  %s7035_s2 = inlined_call_operand.hbm [shape: bf16[512,1536], index: 2, kind: input, shape index: {}]   ;;  %s7036_s3 = inlined_call_operand.hbm [shape: bf16[512,128], index: 3, kind: input, shape index: {}]   ;;  %s7037_s4 = inlined_call_operand.hbm [shape: f32[8,512], index: 4, kind: input, shape index: {}]   ;;  %s7038_s5 = inlined_call_operand.vmem [shape: f32[16,128], index: 5, kind: output, shape index: {}]  }
   0x1   :  { %11 = vsyncpa [#allocation5], 0 }
   0x2   :  { %12 = vsyncpa [#allocation8], 0  ;;  %s6843_s18 = smov [#allocation4]  }
   0x3   :  { %s32_s19 = sshll.u32 %s6843_s18, 4  ;;  %s33_s19 = int_to_ptr.vmem [resolvable:$true] %s32_s19 }
   0x4   :  { %s6765_s20 = scalar_lea.vmem %s33_s19, 49152  ;;  %p6770_p1 = scmp.lt.s32.totalorder %s33_s19, %s33_s19 }
   0x5   :  { %p6766_p0 = scmp.ne.s32.totalorder %s33_s19, %s6765_s20  ;;  %p6771_p2 = scmp.lt.s32.totalorder %s6765_s20, %s6765_s20 }
   0x7   :  { %p6772_p3 = por %p6771_p2, %p6770_p1 }
   0x9   :  { %p6773_p4 = pnand %p6772_p3, %p6766_p0 }
   0xb   :  { %6776 = shalt.err (!%p6773_p4)
}
   0xc   :  { %s6844_s21 = smov 768   ;;  %s6845_s22 = smov 48  }
   0xd   :  { %38 = dma.hbm_to_vmem [thread:$0]  %s7035_s2, 49152, %s33_s19, [#allocation5], %s6844_s21, %s6844_s21, %s6845_s22  }
   0xe   :  { %s6846_s25 = smov [#allocation2]  }
   0xf   :  { %s20_s26 = sshll.u32 %s6846_s25, 4  ;;  %s21_s26 = int_to_ptr.vmem [resolvable:$true] %s20_s26 }
  0x10   :  { %s6785_s27 = scalar_lea.vmem %s21_s26, 28672  ;;  %p6790_p6 = scmp.lt.s32.totalorder %s21_s26, %s21_s26 }
  0x11   :  { %p6786_p5 = scmp.ne.s32.totalorder %s21_s26, %s6785_s27  ;;  %p6791_p7 = scmp.lt.s32.totalorder %s6785_s27, %s6785_s27 }
  0x13   :  { %p6792_p8 = por %p6791_p7, %p6790_p6 }
  0x15   :  { %p6793_p9 = pnand %p6792_p8, %p6786_p5 }
  0x17   :  { %6796 = shalt.err (!%p6793_p9)
}
  0x18   :  { %s6847_s28 = smov 256   ;;  %s6848_s29 = smov 16  }
  0x19   :  { %26 = dma.hbm_to_vmem [thread:$0]  %s7034_s1, 28672, %s21_s26, [#allocation3], %s6847_s28, %s6847_s28, %s6848_s29  }
  0x1a   :  { %s6849_s7 = smov [#allocation6]  }
  0x1b   :  { %s44_s8 = sshll.u32 %s6849_s7, 4  ;;  %s45_s8 = int_to_ptr.vmem [resolvable:$true] %s44_s8 }
  0x1c   :  { %s6805_s2 = scalar_lea.vmem %s45_s8, 4096  ;;  %p6810_p11 = scmp.lt.s32.totalorder %s45_s8, %s45_s8 }
  0x1d   :  { %p6806_p10 = scmp.ne.s32.totalorder %s45_s8, %s6805_s2  ;;  %p6811_p12 = scmp.lt.s32.totalorder %s6805_s2, %s6805_s2 }
  0x1f   :  { %p6812_p13 = por %p6811_p12, %p6810_p11 }
  0x21   :  { %p6813_p0 = pnand %p6812_p13, %p6806_p10 }
  0x23   :  { %6816 = shalt.err (!%p6813_p0)
}
  0x24   :  { %s6850_s9 = smov 64   ;;  %s6851_s10 = smov 4  }
  0x25   :  { %50 = dma.hbm_to_vmem [thread:$0]  %s7036_s3, 4096, %s45_s8, [#allocation5], %s6850_s9, %s6850_s9, %s6851_s10  }
  0x26   :  { %s6852_s13 = smov [#allocation7]  }
  0x27   :  { %s57_s14 = sshll.u32 %s6852_s13, 4  ;;  %s58_s14 = int_to_ptr.vmem [resolvable:$true] %s57_s14 }
  0x28   :  { %s6825_s1 = scalar_lea.vmem %s58_s14, 512  ;;  %p6830_p2 = scmp.lt.s32.totalorder %s58_s14, %s58_s14 }
  0x29   :  { %p6826_p1 = scmp.ne.s32.totalorder %s58_s14, %s6825_s1  ;;  %p6831_p3 = scmp.lt.s32.totalorder %s6825_s1, %s6825_s1 }
  0x2b   :  { %p6832_p4 = por %p6831_p3, %p6830_p2 }
  0x2d   :  { %p6833_p5 = pnand %p6832_p4, %p6826_p1 }
  0x2f   :  { %6836 = shalt.err (!%p6833_p5)
}
  0x30   :  { %60 = dma.hbm_to_vmem [thread:$0]  %s7037_s4, 512, %s58_s14, [#allocation8]  }
  0x31   :  { %6837 = dma.done.wait [#allocation3], 28672  }
  0x32   :  { %6838 = vsyncadd [#allocation3], 4294938624 }
  0x33   :  { %6839 = dma.done.wait [#allocation5], 53248  }
  0x34   :  { %6840 = vsyncadd [#allocation5], 4294914048 }
  0x35   :  { %6841 = dma.done.wait [#allocation8], 512  }
  0x36   :  { %6842 = vsyncadd [#allocation8], 4294966784  ;;  %v5797_v0 = vld [vmem:[#allocation2 + $0xe4] ss:$16 sps:$4 sm:$0xff]   ;;  %v5801_v2 = vld [vmem:[#allocation2 + $0xe0] ss:$16 sps:$4 sm:$0xff]  }
  0x37   :  { %v5799_v1 = vld [vmem:[#allocation2 + $0x2e4] ss:$16 sps:$4 sm:$0xff]   ;;  %1482 = vmatprep.subr.bf16.mxu0 %v5797_v0  ;;  %v5802_v3 = vld [vmem:[#allocation2 + $0x2e0] ss:$16 sps:$4 sm:$0xff]   ;;  %v6904_v51 = vld [vmem:[%s7033_s0 + $0xc] ss:$28 sps:$4 sm:$0xff]  }
  0x38   :  { %1525 = vmatprep.subr.bf16.mxu1 %v5799_v1  ;;  %v5803_v4 = vld [vmem:[#allocation2 + $0xc4] ss:$16 sps:$4 sm:$0xff]   ;;  %1483 = vmatpush1.bf16.msra.mxu0 %v5801_v2  ;;  %v5807_v6 = vld [vmem:[#allocation2 + $0xc0] ss:$16 sps:$4 sm:$0xff]  }
  0x39   :  { %1526 = vmatpush1.bf16.msra.mxu1 %v5802_v3  ;;  %v5805_v5 = vld [vmem:[#allocation2 + $0x2c4] ss:$16 sps:$4 sm:$0xff]   ;;  %1484 = vmatprep.subr.bf16.mxu0 %v5803_v4  ;;  %v5808_v7 = vld [vmem:[#allocation2 + $0x2c0] ss:$16 sps:$4 sm:$0xff]  }
  0x3a   :  { %1527 = vmatprep.subr.bf16.mxu1 %v5805_v5  ;;  %v5809_v8 = vld [vmem:[#allocation2 + $0xa4] ss:$16 sps:$4 sm:$0xff]   ;;  %v5813_v10 = vld [vmem:[#allocation2 + $0xa0] ss:$16 sps:$4 sm:$0xff]   ;;  %1557 = vmatprep.mubr.bf16.mxu1 %v6904_v51 }
  0x3b   :  { %v5811_v9 = vld [vmem:[#allocation2 + $0x2a4] ss:$16 sps:$4 sm:$0xff]   ;;  %v5814_v11 = vld [vmem:[#allocation2 + $0x2a0] ss:$16 sps:$4 sm:$0xff]  }
  0x3c   :  { %1485 = vmatpush1.bf16.msra.mxu0 %v5807_v6  ;;  %v5815_v12 = vld [vmem:[#allocation2 + $0x84] ss:$16 sps:$4 sm:$0xff]   ;;  %v5819_v14 = vld [vmem:[#allocation2 + $0x80] ss:$16 sps:$4 sm:$0xff]  }
  0x3d   :  { %1528 = vmatpush1.bf16.msra.mxu1 %v5808_v7  ;;  %1486 = vmatprep.subr.bf16.mxu0 %v5809_v8  ;;  %v5817_v13 = vld [vmem:[#allocation2 + $0x284] ss:$16 sps:$4 sm:$0xff]   ;;  %v5820_v15 = vld [vmem:[#allocation2 + $0x280] ss:$16 sps:$4 sm:$0xff]  }
  0x3e   :  { %1529 = vmatprep.subr.bf16.mxu1 %v5811_v9  ;;  %v5821_v16 = vld [vmem:[#allocation2 + $0x64] ss:$16 sps:$4 sm:$0xff]   ;;  %v5825_v18 = vld [vmem:[#allocation2 + $0x60] ss:$16 sps:$4 sm:$0xff]  }
  0x3f   :  { %v5823_v17 = vld [vmem:[#allocation2 + $0x264] ss:$16 sps:$4 sm:$0xff]   ;;  %v5826_v19 = vld [vmem:[#allocation2 + $0x260] ss:$16 sps:$4 sm:$0xff]  }
  0x40   :  { %1487 = vmatpush1.bf16.msra.mxu0 %v5813_v10  ;;  %v5827_v20 = vld [vmem:[#allocation2 + $0x44] ss:$16 sps:$4 sm:$0xff]   ;;  %v5831_v22 = vld [vmem:[#allocation2 + $0x40] ss:$16 sps:$4 sm:$0xff]  }
  0x41   :  { %1530 = vmatpush1.bf16.msra.mxu1 %v5814_v11  ;;  %1488 = vmatprep.subr.bf16.mxu0 %v5815_v12  ;;  %v5829_v21 = vld [vmem:[#allocation2 + $0x244] ss:$16 sps:$4 sm:$0xff]   ;;  %v5832_v23 = vld [vmem:[#allocation2 + $0x240] ss:$16 sps:$4 sm:$0xff]  }
  0x42   :  { %1531 = vmatprep.subr.bf16.mxu1 %v5817_v13  ;;  %v5833_v24 = vld [vmem:[#allocation2 + $0x24] ss:$16 sps:$4 sm:$0xff]   ;;  %v5837_v26 = vld [vmem:[#allocation2 + $0x20] ss:$16 sps:$4 sm:$0xff]  }
  0x43   :  { %v5835_v25 = vld [vmem:[#allocation2 + $0x224] ss:$16 sps:$4 sm:$0xff]   ;;  %v5838_v27 = vld [vmem:[#allocation2 + $0x220] ss:$16 sps:$4 sm:$0xff]  }
  0x44   :  { %1489 = vmatpush1.bf16.msra.mxu0 %v5819_v14  ;;  %v5839_v28 = vld [vmem:[#allocation2 + $0x4] ss:$16 sps:$4 sm:$0xff]   ;;  %v5843_v30 = vld [vmem:[#allocation2] ss:$16 sps:$4 sm:$0xff]   ;;  %v6853_v14 = vmov 0  }
  0x45   :  { %1532 = vmatpush1.bf16.msra.mxu1 %v5820_v15  ;;  %1490 = vmatprep.subr.bf16.mxu0 %v5821_v16  ;;  %v5841_v29 = vld [vmem:[#allocation2 + $0x204] ss:$16 sps:$4 sm:$0xff]   ;;  %v5844_v31 = vld [vmem:[#allocation2 + $0x200] ss:$16 sps:$4 sm:$0xff]  }
  0x46   :  { %1533 = vmatprep.subr.bf16.mxu1 %v5823_v17  ;;  %v5845_v32 = vld [vmem:[#allocation2 + $0x1e4] ss:$16 sps:$4 sm:$0xff]   ;;  %v5849_v34 = vld [vmem:[#allocation2 + $0x1e0] ss:$16 sps:$4 sm:$0xff]  }
  0x47   :  { %v5847_v33 = vld [vmem:[#allocation2 + $0x3e4] ss:$16 sps:$4 sm:$0xff]   ;;  %v5850_v35 = vld [vmem:[#allocation2 + $0x3e0] ss:$16 sps:$4 sm:$0xff]  }
  0x48   :  { %1491 = vmatpush1.bf16.msra.mxu0 %v5825_v18  ;;  %v5851_v36 = vld [vmem:[#allocation2 + $0x1c4] ss:$16 sps:$4 sm:$0xff]   ;;  %v5855_v38 = vld [vmem:[#allocation2 + $0x1c0] ss:$16 sps:$4 sm:$0xff]  }
  0x49   :  { %1534 = vmatpush1.bf16.msra.mxu1 %v5826_v19  ;;  %1492 = vmatprep.subr.bf16.mxu0 %v5827_v20  ;;  %v5853_v37 = vld [vmem:[#allocation2 + $0x3c4] ss:$16 sps:$4 sm:$0xff]   ;;  %v5856_v39 = vld [vmem:[#allocation2 + $0x3c0] ss:$16 sps:$4 sm:$0xff]  }
  0x4a   :  { %1535 = vmatprep.subr.bf16.mxu1 %v5829_v21  ;;  %v5857_v40 = vld [vmem:[#allocation2 + $0x1a4] ss:$16 sps:$4 sm:$0xff]   ;;  %v5861_v42 = vld [vmem:[#allocation2 + $0x1a0] ss:$16 sps:$4 sm:$0xff]  }
  0x4b   :  { %v5859_v41 = vld [vmem:[#allocation2 + $0x3a4] ss:$16 sps:$4 sm:$0xff]   ;;  %v5862_v43 = vld [vmem:[#allocation2 + $0x3a0] ss:$16 sps:$4 sm:$0xff]  }
  0x4c   :  { %1493 = vmatpush1.bf16.msra.mxu0 %v5831_v22  ;;  %v5863_v44 = vld [vmem:[#allocation2 + $0x184] ss:$16 sps:$4 sm:$0xff]   ;;  %v5867_v46 = vld [vmem:[#allocation2 + $0x180] ss:$16 sps:$4 sm:$0xff]  }
  0x4d   :  { %1536 = vmatpush1.bf16.msra.mxu1 %v5832_v23  ;;  %1494 = vmatprep.subr.bf16.mxu0 %v5833_v24  ;;  %v5865_v45 = vld [vmem:[#allocation2 + $0x384] ss:$16 sps:$4 sm:$0xff]   ;;  %v5868_v47 = vld [vmem:[#allocation2 + $0x380] ss:$16 sps:$4 sm:$0xff]  }
  0x4e   :  { %1537 = vmatprep.subr.bf16.mxu1 %v5835_v25  ;;  %v5869_v48 = vld [vmem:[#allocation2 + $0x164] ss:$16 sps:$4 sm:$0xff]   ;;  %v5873_v52 = vld [vmem:[#allocation2 + $0x160] ss:$16 sps:$4 sm:$0xff]  }
  0x4f   :  { %v6899_v49 = vld [vmem:[%s7033_s0 + $0x4] ss:$28 sps:$4 sm:$0xff]  }
  0x50   :  { %1495 = vmatpush1.bf16.msra.mxu0 %v5837_v26  ;;  %v5871_v50 = vld [vmem:[#allocation2 + $0x364] ss:$16 sps:$4 sm:$0xff]   ;;  %1514 = vmatprep.mubr.bf16.mxu0 %v6899_v49  ;;  %v5874_v53 = vld [vmem:[#allocation2 + $0x360] ss:$16 sps:$4 sm:$0xff]  }
  0x51   :  { %1538 = vmatpush1.bf16.msra.mxu1 %v5838_v27  ;;  %1496 = vmatprep.subr.bf16.mxu0 %v5839_v28  ;;  %v5875_v54 = vld [vmem:[#allocation2 + $0x144] ss:$16 sps:$4 sm:$0xff]   ;;  %v5879_v56 = vld [vmem:[#allocation2 + $0x140] ss:$16 sps:$4 sm:$0xff]  }
  0x52   :  { %1539 = vmatprep.subr.bf16.mxu1 %v5841_v29  ;;  %v5877_v55 = vld [vmem:[#allocation2 + $0x344] ss:$16 sps:$4 sm:$0xff]   ;;  %v5880_v57 = vld [vmem:[#allocation2 + $0x340] ss:$16 sps:$4 sm:$0xff]  }
  0x53   :  { %v5881_v58 = vld [vmem:[#allocation2 + $0x124] ss:$16 sps:$4 sm:$0xff]   ;;  %v5885_v60 = vld [vmem:[#allocation2 + $0x120] ss:$16 sps:$4 sm:$0xff]  }
  0x54   :  { %1497 = vmatpush1.bf16.msra.mxu0 %v5843_v30  ;;  %v5883_v59 = vld [vmem:[#allocation2 + $0x324] ss:$16 sps:$4 sm:$0xff]   ;;  %v5886_v61 = vld [vmem:[#allocation2 + $0x320] ss:$16 sps:$4 sm:$0xff]  }
  0x55   :  { %1540 = vmatpush1.bf16.msra.mxu1 %v5844_v31  ;;  %1498 = vmatprep.subr.bf16.mxu0 %v5845_v32  ;;  %v5887_v62 = vld [vmem:[#allocation2 + $0x104] ss:$16 sps:$4 sm:$0xff]   ;;  %v5891_v0 = vld [vmem:[#allocation2 + $0x100] ss:$16 sps:$4 sm:$0xff]  }
  0x56   :  { %1541 = vmatprep.subr.bf16.mxu1 %v5847_v33  ;;  %v5889_v63 = vld [vmem:[#allocation2 + $0x304] ss:$16 sps:$4 sm:$0xff]   ;;  %v5892_v1 = vld [vmem:[#allocation2 + $0x300] ss:$16 sps:$4 sm:$0xff]  }
  0x57   :  { %v5901_v2 = vld [vmem:[#allocation2 + $0x4e4] ss:$16 sps:$4 sm:$0xff]   ;;  %v6911_v4 = vld [vmem:[%s7033_s0] ss:$28 sps:$4 sm:$0xff]  }
  0x58   :  { %1499 = vmatpush2.bf16.msra.mxu0 %v5849_v34  ;;  %v5904_v3 = vld [vmem:[#allocation2 + $0x6e4] ss:$16 sps:$4 sm:$0xff]   ;;  %v5899_v6 = vld [vmem:[#allocation2 + $0x4e0] ss:$16 sps:$4 sm:$0xff]  }
  0x59   :  { %1542 = vmatpush2.bf16.msra.mxu1 %v5850_v35  ;;  %1500 = vmatprep.subr.bf16.mxu0 %v5851_v36  ;;  %v5896_v5 = vld [vmem:[%s7033_s0 + $0x8] ss:$28 sps:$4 sm:$0xff]   ;;  %v5902_v7 = vld [vmem:[#allocation2 + $0x6e0] ss:$16 sps:$4 sm:$0xff]  }
  0x5a   :  { %1543 = vmatprep.subr.bf16.mxu1 %v5853_v37  ;;  %v5907_v8 = vld [vmem:[#allocation2 + $0x4c4] ss:$16 sps:$4 sm:$0xff]   ;;  %v5905_v10 = vld [vmem:[#allocation2 + $0x4c0] ss:$16 sps:$4 sm:$0xff]  }
  0x5b   :  { %v5910_v9 = vld [vmem:[#allocation2 + $0x6c4] ss:$16 sps:$4 sm:$0xff]   ;;  %v5908_v11 = vld [vmem:[#allocation2 + $0x6c0] ss:$16 sps:$4 sm:$0xff]  }
  0x5c   :  { %1501 = vmatpush2.bf16.msra.mxu0 %v5855_v38  ;;  %v5913_v12 = vld [vmem:[#allocation2 + $0x4a4] ss:$16 sps:$4 sm:$0xff]   ;;  %v5911_v15 = vld [vmem:[#allocation2 + $0x4a0] ss:$16 sps:$4 sm:$0xff]  }
  0x5d   :  { %1544 = vmatpush2.bf16.msra.mxu1 %v5856_v39  ;;  %1502 = vmatprep.subr.bf16.mxu0 %v5857_v40  ;;  %v5916_v13 = vld [vmem:[#allocation2 + $0x6a4] ss:$16 sps:$4 sm:$0xff]   ;;  %v5914_v16 = vld [vmem:[#allocation2 + $0x6a0] ss:$16 sps:$4 sm:$0xff]   ;;  %v5953_v39 = vld [vmem:[#allocation2 + $0xec] ss:$16 sps:$4 sm:$0xff]  }
  0x5e   :  { %1545 = vmatprep.subr.bf16.mxu1 %v5859_v41  ;;  %v5919_v17 = vld [vmem:[#allocation2 + $0x484] ss:$16 sps:$4 sm:$0xff]   ;;  %v5917_v19 = vld [vmem:[#allocation2 + $0x480] ss:$16 sps:$4 sm:$0xff]  }
  0x5f   :  { %v5922_v18 = vld [vmem:[#allocation2 + $0x684] ss:$16 sps:$4 sm:$0xff]   ;;  %v5920_v20 = vld [vmem:[#allocation2 + $0x680] ss:$16 sps:$4 sm:$0xff]  }
  0x60   :  { %1503 = vmatpush2.bf16.msra.mxu0 %v5861_v42  ;;  %v5925_v21 = vld [vmem:[#allocation2 + $0x464] ss:$16 sps:$4 sm:$0xff]   ;;  %v5923_v23 = vld [vmem:[#allocation2 + $0x460] ss:$16 sps:$4 sm:$0xff]   ;;  %v5951_v42 = vld [vmem:[#allocation2 + $0xe8] ss:$16 sps:$4 sm:$0xff]  }
  0x61   :  { %1546 = vmatpush2.bf16.msra.mxu1 %v5862_v43  ;;  %1504 = vmatprep.subr.bf16.mxu0 %v5863_v44  ;;  %v5928_v22 = vld [vmem:[#allocation2 + $0x664] ss:$16 sps:$4 sm:$0xff]   ;;  %v5926_v24 = vld [vmem:[#allocation2 + $0x660] ss:$16 sps:$4 sm:$0xff]   ;;  %v5959_v44 = vld [vmem:[#allocation2 + $0xcc] ss:$16 sps:$4 sm:$0xff]  }
  0x62   :  { %1547 = vmatprep.subr.bf16.mxu1 %v5865_v45  ;;  %v5931_v25 = vld [vmem:[#allocation2 + $0x444] ss:$16 sps:$4 sm:$0xff]   ;;  %v5929_v27 = vld [vmem:[#allocation2 + $0x440] ss:$16 sps:$4 sm:$0xff]  }
  0x63   :  { %v5934_v26 = vld [vmem:[#allocation2 + $0x644] ss:$16 sps:$4 sm:$0xff]   ;;  %v5932_v28 = vld [vmem:[#allocation2 + $0x640] ss:$16 sps:$4 sm:$0xff]  }
  0x64   :  { %1505 = vmatpush2.bf16.msra.mxu0 %v5867_v46  ;;  %v5937_v29 = vld [vmem:[#allocation2 + $0x424] ss:$16 sps:$4 sm:$0xff]   ;;  %v5935_v31 = vld [vmem:[#allocation2 + $0x420] ss:$16 sps:$4 sm:$0xff]   ;;  %v5957_v46 = vld [vmem:[#allocation2 + $0xc8] ss:$16 sps:$4 sm:$0xff]  }
  0x65   :  { %1548 = vmatpush2.bf16.msra.mxu1 %v5868_v47  ;;  %1506 = vmatprep.subr.bf16.mxu0 %v5869_v48  ;;  %v5940_v30 = vld [vmem:[#allocation2 + $0x624] ss:$16 sps:$4 sm:$0xff]   ;;  %v5938_v32 = vld [vmem:[#allocation2 + $0x620] ss:$16 sps:$4 sm:$0xff]   ;;  %v5965_v48 = vld [vmem:[#allocation2 + $0xac] ss:$16 sps:$4 sm:$0xff]  }
  0x66   :  { %1549 = vmatprep.subr.bf16.mxu1 %v5871_v50  ;;  %v5943_v33 = vld [vmem:[#allocation2 + $0x404] ss:$16 sps:$4 sm:$0xff]   ;;  %v5941_v36 = vld [vmem:[#allocation2 + $0x400] ss:$16 sps:$4 sm:$0xff]  }
  0x67   :  { %v5946_v34 = vld [vmem:[#allocation2 + $0x604] ss:$16 sps:$4 sm:$0xff]   ;;  %v5944_v37 = vld [vmem:[#allocation2 + $0x600] ss:$16 sps:$4 sm:$0xff]  }
  0x68   :  { %1507 = vmatpush2.bf16.msra.mxu0 %v5873_v52  ;;  %v6921_v35 = vld [vmem:[%s7033_s0 + $0x14] ss:$28 sps:$4 sm:$0xff]   ;;  %v5963_v52 = vld [vmem:[#allocation2 + $0xa8] ss:$16 sps:$4 sm:$0xff]  }
  0x69   :  { %1550 = vmatpush2.bf16.msra.mxu1 %v5874_v53  ;;  %1508 = vmatprep.subr.bf16.mxu0 %v5875_v54  ;;  %v5949_v38 = vld [vmem:[#allocation2 + $0x5e4] ss:$16 sps:$4 sm:$0xff]   ;;  %v5947_v40 = vld [vmem:[#allocation2 + $0x5e0] ss:$16 sps:$4 sm:$0xff]   ;;  %v5971_v54 = vld [vmem:[#allocation2 + $0x8c] ss:$16 sps:$4 sm:$0xff]  }
  0x6a   :  { %1551 = vmatprep.subr.bf16.mxu1 %v5877_v55  ;;  %v5950_v41 = vld [vmem:[%s7033_s0 + $0x18] ss:$28 sps:$4 sm:$0xff]   ;;  %v5954_v45 = vld [vmem:[#allocation2 + $0x5c0] ss:$16 sps:$4 sm:$0xff]  }
  0x6b   :  { %v5956_v43 = vld [vmem:[#allocation2 + $0x5c4] ss:$16 sps:$4 sm:$0xff]   ;;  %v5960_v50 = vld [vmem:[#allocation2 + $0x5a0] ss:$16 sps:$4 sm:$0xff]  }
  0x6c   :  { %1509 = vmatpush2.bf16.msra.mxu0 %v5879_v56  ;;  %v5962_v47 = vld [vmem:[#allocation2 + $0x5a4] ss:$16 sps:$4 sm:$0xff]   ;;  %v5966_v55 = vld [vmem:[#allocation2 + $0x580] ss:$16 sps:$4 sm:$0xff]   ;;  %v5969_v56 = vld [vmem:[#allocation2 + $0x88] ss:$16 sps:$4 sm:$0xff]  }
  0x6d   :  { %1552 = vmatpush2.bf16.msra.mxu1 %v5880_v57  ;;  %1510 = vmatprep.subr.bf16.mxu0 %v5881_v58  ;;  %v5968_v53 = vld [vmem:[#allocation2 + $0x584] ss:$16 sps:$4 sm:$0xff]   ;;  %v5977_v58 = vld [vmem:[#allocation2 + $0x6c] ss:$16 sps:$4 sm:$0xff]  }
  0x6e   :  { %1553 = vmatprep.subr.bf16.mxu1 %v5883_v59  ;;  %v5974_v57 = vld [vmem:[#allocation2 + $0x564] ss:$16 sps:$4 sm:$0xff]   ;;  %v5972_v59 = vld [vmem:[#allocation2 + $0x560] ss:$16 sps:$4 sm:$0xff]  }
  0x70   :  { %1511 = vmatpush2.bf16.msra.mxu0 %v5885_v60  ;;  %v5980_v60 = vld [vmem:[#allocation2 + $0x544] ss:$16 sps:$4 sm:$0xff]  }
  0x71   :  { %1554 = vmatpush2.bf16.msra.mxu1 %v5886_v61  ;;  %1512 = vmatprep.subr.bf16.mxu0 %v5887_v62  ;;  %v5983_v61 = vld [vmem:[#allocation2 + $0x4c] ss:$16 sps:$4 sm:$0xff]   ;;  %v5978_v62 = vld [vmem:[#allocation2 + $0x540] ss:$16 sps:$4 sm:$0xff]  }
  0x72   :  { %1555 = vmatprep.subr.bf16.mxu1 %v5889_v63  ;;  %v5981_v63 = vld [vmem:[#allocation2 + $0x48] ss:$16 sps:$4 sm:$0xff]  }
  0x74   :  { %1513 = vmatpush2.bf16.msra.mxu0 %v5891_v0  ;;  %v5986_v0 = vld [vmem:[#allocation2 + $0x524] ss:$16 sps:$4 sm:$0xff]  }
  0x75   :  { %1556 = vmatpush2.bf16.msra.mxu1 %v5892_v1  ;;  %1568 = vmatprep.subr.bf16.mxu0 %v5901_v2  ;;  %v5989_v1 = vld [vmem:[#allocation2 + $0x2c] ss:$16 sps:$4 sm:$0xff]   ;;  %v5984_v2 = vld [vmem:[#allocation2 + $0x520] ss:$16 sps:$4 sm:$0xff]  }
  0x76   :  { %1611 = vmatprep.subr.bf16.mxu1 %v5904_v3  ;;  %v5987_v3 = vld [vmem:[#allocation2 + $0x28] ss:$16 sps:$4 sm:$0xff]  }
  0x77   :  { %1515 = vmatmul.mubr.bf16.vlgmr.msra.gmra.mxu0 %v6911_v4 }
  0x78   :  { %1558 = vmatmul.mubr.bf16.vlgmr.msra.gmra.mxu1 %v5896_v5  ;;  %1569 = vmatpush1.bf16.msra.mxu0 %v5899_v6  ;;  %v5992_v5 = vld [vmem:[#allocation2 + $0x504] ss:$16 sps:$4 sm:$0xff]   ;;  %v5995_v6 = vld [vmem:[#allocation2 + $0xc] ss:$16 sps:$4 sm:$0xff]  }
  0x79   :  { %1612 = vmatpush1.bf16.msra.mxu1 %v5902_v7  ;;  %1570 = vmatprep.subr.bf16.mxu0 %v5907_v8  ;;  %v5990_v7 = vld [vmem:[#allocation2 + $0x500] ss:$16 sps:$4 sm:$0xff]   ;;  %v5993_v8 = vld [vmem:[#allocation2 + $0x8] ss:$16 sps:$4 sm:$0xff]  }
  0x7a   :  { %1613 = vmatprep.subr.bf16.mxu1 %v5910_v9  ;;  %1643 = vmatprep.mubr.bf16.mxu1 %v6853_v14  ;;  %v6001_v9 = vld [vmem:[#allocation2 + $0x1ec] ss:$16 sps:$4 sm:$0xff]  }
  0x7b   :  { %1600 = vmatprep.mubr.bf16.mxu0 %v6921_v35 }
  0x7c   :  { %1571 = vmatpush1.bf16.msra.mxu0 %v5905_v10  ;;  %v6004_v10 = vld [vmem:[#allocation2 + $0x2ec] ss:$16 sps:$4 sm:$0xff]  }
  0x7d   :  { %1614 = vmatpush1.bf16.msra.mxu1 %v5908_v11  ;;  %1572 = vmatprep.subr.bf16.mxu0 %v5913_v12  ;;  %v6931_v11 = vld [vmem:[%s7033_s0 + $0x10] ss:$28 sps:$4 sm:$0xff]   ;;  %v5999_v12 = vld [vmem:[#allocation2 + $0x1e8] ss:$16 sps:$4 sm:$0xff]  }
  0x7e   :  { %1615 = vmatprep.subr.bf16.mxu1 %v5916_v13  ;;  %v6002_v13 = vld [vmem:[#allocation2 + $0x2e8] ss:$16 sps:$4 sm:$0xff]  }
  0x80   :  { %1573 = vmatpush1.bf16.msra.mxu0 %v5911_v15  ;;  %v6007_v15 = vld [vmem:[#allocation2 + $0x1cc] ss:$16 sps:$4 sm:$0xff]  }
  0x81   :  { %1616 = vmatpush1.bf16.msra.mxu1 %v5914_v16  ;;  %1574 = vmatprep.subr.bf16.mxu0 %v5919_v17  ;;  %v6010_v16 = vld [vmem:[#allocation2 + $0x2cc] ss:$16 sps:$4 sm:$0xff]   ;;  %v6005_v17 = vld [vmem:[#allocation2 + $0x1c8] ss:$16 sps:$4 sm:$0xff]  }
  0x82   :  { %1617 = vmatprep.subr.bf16.mxu1 %v5922_v18  ;;  %v6008_v18 = vld [vmem:[#allocation2 + $0x2c8] ss:$16 sps:$4 sm:$0xff]  }
  0x84   :  { %1575 = vmatpush1.bf16.msra.mxu0 %v5917_v19  ;;  %v6013_v19 = vld [vmem:[#allocation2 + $0x1ac] ss:$16 sps:$4 sm:$0xff]  }
  0x85   :  { %1618 = vmatpush1.bf16.msra.mxu1 %v5920_v20  ;;  %1576 = vmatprep.subr.bf16.mxu0 %v5925_v21  ;;  %v6016_v20 = vld [vmem:[#allocation2 + $0x2ac] ss:$16 sps:$4 sm:$0xff]   ;;  %v6011_v21 = vld [vmem:[#allocation2 + $0x1a8] ss:$16 sps:$4 sm:$0xff]  }
  0x86   :  { %1619 = vmatprep.subr.bf16.mxu1 %v5928_v22  ;;  %v6014_v22 = vld [vmem:[#allocation2 + $0x2a8] ss:$16 sps:$4 sm:$0xff]  }
  0x88   :  { %1577 = vmatpush1.bf16.msra.mxu0 %v5923_v23  ;;  %v6019_v23 = vld [vmem:[#allocation2 + $0x18c] ss:$16 sps:$4 sm:$0xff]  }
  0x89   :  { %1620 = vmatpush1.bf16.msra.mxu1 %v5926_v24  ;;  %1578 = vmatprep.subr.bf16.mxu0 %v5931_v25  ;;  %v6022_v24 = vld [vmem:[#allocation2 + $0x28c] ss:$16 sps:$4 sm:$0xff]   ;;  %v6017_v25 = vld [vmem:[#allocation2 + $0x188] ss:$16 sps:$4 sm:$0xff]  }
  0x8a   :  { %1621 = vmatprep.subr.bf16.mxu1 %v5934_v26  ;;  %v6020_v26 = vld [vmem:[#allocation2 + $0x288] ss:$16 sps:$4 sm:$0xff]  }
  0x8c   :  { %1579 = vmatpush1.bf16.msra.mxu0 %v5929_v27  ;;  %v6025_v27 = vld [vmem:[#allocation2 + $0x16c] ss:$16 sps:$4 sm:$0xff]  }
  0x8d   :  { %1622 = vmatpush1.bf16.msra.mxu1 %v5932_v28  ;;  %1580 = vmatprep.subr.bf16.mxu0 %v5937_v29  ;;  %v6028_v28 = vld [vmem:[#allocation2 + $0x26c] ss:$16 sps:$4 sm:$0xff]   ;;  %v6023_v29 = vld [vmem:[#allocation2 + $0x168] ss:$16 sps:$4 sm:$0xff]  }
  0x8e   :  { %1623 = vmatprep.subr.bf16.mxu1 %v5940_v30  ;;  %v6031_v30 = vld [vmem:[#allocation2 + $0x14c] ss:$16 sps:$4 sm:$0xff]  }
  0x90   :  { %1581 = vmatpush1.bf16.msra.mxu0 %v5935_v31  ;;  %v6034_v31 = vld [vmem:[#allocation2 + $0x24c] ss:$16 sps:$4 sm:$0xff]  }
  0x91   :  { %1624 = vmatpush1.bf16.msra.mxu1 %v5938_v32  ;;  %1582 = vmatprep.subr.bf16.mxu0 %v5943_v33  ;;  %v6029_v32 = vld [vmem:[#allocation2 + $0x148] ss:$16 sps:$4 sm:$0xff]  }
  0x92   :  { %1625 = vmatprep.subr.bf16.mxu1 %v5946_v34  ;;  %v6032_v33 = vld [vmem:[#allocation2 + $0x248] ss:$16 sps:$4 sm:$0xff]   ;;  %v6037_v34 = vld [vmem:[#allocation2 + $0x12c] ss:$16 sps:$4 sm:$0xff]  }
  0x94   :  { %1583 = vmatpush1.bf16.msra.mxu0 %v5941_v36  ;;  %v6040_v36 = vld [vmem:[#allocation2 + $0x22c] ss:$16 sps:$4 sm:$0xff]  }
  0x95   :  { %1626 = vmatpush1.bf16.msra.mxu1 %v5944_v37  ;;  %1584 = vmatprep.subr.bf16.mxu0 %v5949_v38  ;;  %v6035_v37 = vld [vmem:[#allocation2 + $0x128] ss:$16 sps:$4 sm:$0xff]  }
  0x96   :  { %1654 = vmatprep.subr.bf16.mxu1 %v5953_v39  ;;  %v6038_v38 = vld [vmem:[#allocation2 + $0x228] ss:$16 sps:$4 sm:$0xff]   ;;  %v6043_v39 = vld [vmem:[#allocation2 + $0x10c] ss:$16 sps:$4 sm:$0xff]  }
  0x98   :  { %1644 = vmatmul.mubr.bf16.vlgmr.msra.gmra.mxu1 %v5950_v41  ;;  %1585 = vmatpush2.bf16.msra.mxu0 %v5947_v40  ;;  %v6046_v40 = vld [vmem:[#allocation2 + $0x20c] ss:$16 sps:$4 sm:$0xff]   ;;  %v6041_v41 = vld [vmem:[#allocation2 + $0x108] ss:$16 sps:$4 sm:$0xff]  }
  0x99   :  { %1655 = vmatpush1.bf16.msra.mxu1 %v5951_v42  ;;  %1586 = vmatprep.subr.bf16.mxu0 %v5956_v43  ;;  %v6044_v42 = vld [vmem:[#allocation2 + $0x208] ss:$16 sps:$4 sm:$0xff]   ;;  %v6049_v43 = vld [vmem:[#allocation2 + $0x3ec] ss:$16 sps:$4 sm:$0xff]  }
  0x9a   :  { %1656 = vmatprep.subr.bf16.mxu1 %v5959_v44  ;;  %1686 = vmatprep.mubr.bf16.mxu1 %v6899_v49  ;;  %v5975_v49 = vld [vmem:[#allocation2 + $0x68] ss:$16 sps:$4 sm:$0xff]   ;;  %v6052_v44 = vld [vmem:[#allocation2 + $0x4ec] ss:$16 sps:$4 sm:$0xff]  }
  0x9c   :  { %1587 = vmatpush2.bf16.msra.mxu0 %v5954_v45  ;;  %v6047_v45 = vld [vmem:[#allocation2 + $0x3e8] ss:$16 sps:$4 sm:$0xff]  }
  0x9d   :  { %1657 = vmatpush1.bf16.msra.mxu1 %v5957_v46  ;;  %1588 = vmatprep.subr.bf16.mxu0 %v5962_v47  ;;  %v6050_v46 = vld [vmem:[#allocation2 + $0x4e8] ss:$16 sps:$4 sm:$0xff]   ;;  %v6055_v47 = vld [vmem:[#allocation2 + $0x3cc] ss:$16 sps:$4 sm:$0xff]  }
  0x9e   :  { %1658 = vmatprep.subr.bf16.mxu1 %v5965_v48  ;;  %v6058_v48 = vld [vmem:[#allocation2 + $0x4cc] ss:$16 sps:$4 sm:$0xff]  }
  0xa0   :  { %1589 = vmatpush2.bf16.msra.mxu0 %v5960_v50  ;;  %v6053_v50 = vld [vmem:[#allocation2 + $0x3c8] ss:$16 sps:$4 sm:$0xff]  }
  0xa1   :  { %1659 = vmatpush1.bf16.msra.mxu1 %v5963_v52  ;;  %1590 = vmatprep.subr.bf16.mxu0 %v5968_v53  ;;  %v6056_v52 = vld [vmem:[#allocation2 + $0x4c8] ss:$16 sps:$4 sm:$0xff]   ;;  %v6061_v53 = vld [vmem:[#allocation2 + $0x3ac] ss:$16 sps:$4 sm:$0xff]  }
  0xa2   :  { %1660 = vmatprep.subr.bf16.mxu1 %v5971_v54  ;;  %v6064_v54 = vld [vmem:[#allocation2 + $0x4ac] ss:$16 sps:$4 sm:$0xff]  }
  0xa4   :  { %1591 = vmatpush2.bf16.msra.mxu0 %v5966_v55  ;;  %v6059_v55 = vld [vmem:[#allocation2 + $0x3a8] ss:$16 sps:$4 sm:$0xff]  }
  0xa5   :  { %1661 = vmatpush1.bf16.msra.mxu1 %v5969_v56  ;;  %1592 = vmatprep.subr.bf16.mxu0 %v5974_v57  ;;  %v6062_v56 = vld [vmem:[#allocation2 + $0x4a8] ss:$16 sps:$4 sm:$0xff]   ;;  %v6067_v57 = vld [vmem:[#allocation2 + $0x38c] ss:$16 sps:$4 sm:$0xff]  }
  0xa6   :  { %1662 = vmatprep.subr.bf16.mxu1 %v5977_v58  ;;  %v6070_v58 = vld [vmem:[#allocation2 + $0x48c] ss:$16 sps:$4 sm:$0xff]  }
  0xa8   :  { %1593 = vmatpush2.bf16.msra.mxu0 %v5972_v59  ;;  %v6065_v59 = vld [vmem:[#allocation2 + $0x388] ss:$16 sps:$4 sm:$0xff]  }
  0xa9   :  { %1663 = vmatpush1.bf16.msra.mxu1 %v5975_v49  ;;  %1594 = vmatprep.subr.bf16.mxu0 %v5980_v60  ;;  %v6073_v49 = vld [vmem:[#allocation2 + $0x36c] ss:$16 sps:$4 sm:$0xff]  }
  0xaa   :  { %1664 = vmatprep.subr.bf16.mxu1 %v5983_v61  ;;  %v6076_v60 = vld [vmem:[#allocation2 + $0x46c] ss:$16 sps:$4 sm:$0xff]   ;;  %v6071_v61 = vld [vmem:[#allocation2 + $0x368] ss:$16 sps:$4 sm:$0xff]  }
  0xac   :  { %1595 = vmatpush2.bf16.msra.mxu0 %v5978_v62  ;;  %v6074_v62 = vld [vmem:[#allocation2 + $0x468] ss:$16 sps:$4 sm:$0xff]  }
  0xad   :  { %1665 = vmatpush1.bf16.msra.mxu1 %v5981_v63  ;;  %1596 = vmatprep.subr.bf16.mxu0 %v5986_v0  ;;  %v6079_v63 = vld [vmem:[#allocation2 + $0x34c] ss:$16 sps:$4 sm:$0xff]  }
  0xae   :  { %1666 = vmatprep.subr.bf16.mxu1 %v5989_v1  ;;  %v6082_v0 = vld [vmem:[#allocation2 + $0x44c] ss:$16 sps:$4 sm:$0xff]   ;;  %v6080_v1 = vld [vmem:[#allocation2 + $0x448] ss:$16 sps:$4 sm:$0xff]  }
  0xb0   :  { %1597 = vmatpush2.bf16.msra.mxu0 %v5984_v2  ;;  %v6085_v2 = vld [vmem:[#allocation2 + $0x32c] ss:$16 sps:$4 sm:$0xff]  }
  0xb1   :  { %1667 = vmatpush1.bf16.msra.mxu1 %v5987_v3  ;;  %1598 = vmatprep.subr.bf16.mxu0 %v5992_v5  ;;  %v6088_v3 = vld [vmem:[#allocation2 + $0x42c] ss:$16 sps:$4 sm:$0xff]   ;;  %v6083_v5 = vld [vmem:[#allocation2 + $0x328] ss:$16 sps:$4 sm:$0xff]  }
  0xb2   :  { %1668 = vmatprep.subr.bf16.mxu1 %v5995_v6  ;;  %v6086_v6 = vld [vmem:[#allocation2 + $0x428] ss:$16 sps:$4 sm:$0xff]  }
  0xb4   :  { %1599 = vmatpush2.bf16.msra.mxu0 %v5990_v7  ;;  %v6091_v7 = vld [vmem:[#allocation2 + $0x30c] ss:$16 sps:$4 sm:$0xff]  }
  0xb5   :  { %1669 = vmatpush1.bf16.msra.mxu1 %v5993_v8  ;;  %1697 = vmatprep.subr.bf16.mxu0 %v6004_v10  ;;  %v6094_v8 = vld [vmem:[#allocation2 + $0x40c] ss:$16 sps:$4 sm:$0xff]   ;;  %v6092_v10 = vld [vmem:[#allocation2 + $0x408] ss:$16 sps:$4 sm:$0xff]  }
  0xb6   :  { %1670 = vmatprep.subr.bf16.mxu1 %v6001_v9  ;;  %v6089_v9 = vld [vmem:[#allocation2 + $0x308] ss:$16 sps:$4 sm:$0xff]  }
  0xb7   :  { %1601 = vmatmul.mubr.bf16.vlgmr.msra.gmra.mxu0 %v6931_v11 }
  0xb8   :  { %1698 = vmatpush1.bf16.msra.mxu0 %v6002_v13  ;;  %1729 = vmatprep.mubr.bf16.mxu0 %v6904_v51  ;;  %v6026_v51 = vld [vmem:[#allocation2 + $0x268] ss:$16 sps:$4 sm:$0xff]   ;;  %v6100_v13 = vld [vmem:[#allocation2 + $0x6ec] ss:$16 sps:$4 sm:$0xff]  }
  0xb9   :  { %1671 = vmatpush2.bf16.msra.mxu1 %v5999_v12  ;;  %1699 = vmatprep.subr.bf16.mxu0 %v6010_v16  ;;  %v6097_v12 = vld [vmem:[#allocation2 + $0x5ec] ss:$16 sps:$4 sm:$0xff]   ;;  %v6098_v16 = vld [vmem:[#allocation2 + $0x6e8] ss:$16 sps:$4 sm:$0xff]  }
  0xba   :  { %1672 = vmatprep.subr.bf16.mxu1 %v6007_v15  ;;  %v6095_v15 = vld [vmem:[#allocation2 + $0x5e8] ss:$16 sps:$4 sm:$0xff]  }
  0xbc   :  { %1700 = vmatpush1.bf16.msra.mxu0 %v6008_v18  ;;  %v6106_v18 = vld [vmem:[#allocation2 + $0x6cc] ss:$16 sps:$4 sm:$0xff]  }
  0xbd   :  { %1673 = vmatpush2.bf16.msra.mxu1 %v6005_v17  ;;  %1701 = vmatprep.subr.bf16.mxu0 %v6016_v20  ;;  %v6103_v17 = vld [vmem:[#allocation2 + $0x5cc] ss:$16 sps:$4 sm:$0xff]   ;;  %v6104_v20 = vld [vmem:[#allocation2 + $0x6c8] ss:$16 sps:$4 sm:$0xff]  }
  0xbe   :  { %1674 = vmatprep.subr.bf16.mxu1 %v6013_v19  ;;  %v6101_v19 = vld [vmem:[#allocation2 + $0x5c8] ss:$16 sps:$4 sm:$0xff]  }
  0xc0   :  { %1702 = vmatpush1.bf16.msra.mxu0 %v6014_v22  ;;  %v6109_v22 = vld [vmem:[#allocation2 + $0x5ac] ss:$16 sps:$4 sm:$0xff]  }
  0xc1   :  { %1675 = vmatpush2.bf16.msra.mxu1 %v6011_v21  ;;  %1703 = vmatprep.subr.bf16.mxu0 %v6022_v24  ;;  %v6751_v21 = vld [vmem:[%s7033_s0 + $0x8] ss:$28 sps:$4 sm:$0xff]  }
  0xc2   :  { %1676 = vmatprep.subr.bf16.mxu1 %v6019_v23  ;;  %v6112_v23 = vld [vmem:[#allocation2 + $0x6ac] ss:$16 sps:$4 sm:$0xff]   ;;  %v6107_v24 = vld [vmem:[#allocation2 + $0x5a8] ss:$16 sps:$4 sm:$0xff]  }
  0xc4   :  { %1704 = vmatpush1.bf16.msra.mxu0 %v6020_v26  ;;  %v6115_v26 = vld [vmem:[#allocation2 + $0x58c] ss:$16 sps:$4 sm:$0xff]  }
  0xc5   :  { %1677 = vmatpush2.bf16.msra.mxu1 %v6017_v25  ;;  %1705 = vmatprep.subr.bf16.mxu0 %v6028_v28  ;;  %v6110_v25 = vld [vmem:[#allocation2 + $0x6a8] ss:$16 sps:$4 sm:$0xff]  }
  0xc6   :  { %1678 = vmatprep.subr.bf16.mxu1 %v6025_v27  ;;  %v6118_v27 = vld [vmem:[#allocation2 + $0x68c] ss:$16 sps:$4 sm:$0xff]   ;;  %v6113_v28 = vld [vmem:[#allocation2 + $0x588] ss:$16 sps:$4 sm:$0xff]  }
  0xc8   :  { %1706 = vmatpush1.bf16.msra.mxu0 %v6026_v51  ;;  %v6121_v51 = vld [vmem:[#allocation2 + $0x56c] ss:$16 sps:$4 sm:$0xff]  }
  0xc9   :  { %1679 = vmatpush2.bf16.msra.mxu1 %v6023_v29  ;;  %1707 = vmatprep.subr.bf16.mxu0 %v6034_v31  ;;  %v6116_v29 = vld [vmem:[#allocation2 + $0x688] ss:$16 sps:$4 sm:$0xff]  }
  0xca   :  { %1680 = vmatprep.subr.bf16.mxu1 %v6031_v30  ;;  %v6124_v30 = vld [vmem:[#allocation2 + $0x66c] ss:$16 sps:$4 sm:$0xff]   ;;  %v6119_v31 = vld [vmem:[#allocation2 + $0x568] ss:$16 sps:$4 sm:$0xff]  }
  0xcc   :  { %1708 = vmatpush1.bf16.msra.mxu0 %v6032_v33  ;;  %v6127_v33 = vld [vmem:[#allocation2 + $0x54c] ss:$16 sps:$4 sm:$0xff]  }
  0xcd   :  { %1681 = vmatpush2.bf16.msra.mxu1 %v6029_v32  ;;  %1709 = vmatprep.subr.bf16.mxu0 %v6040_v36  ;;  %v6122_v32 = vld [vmem:[#allocation2 + $0x668] ss:$16 sps:$4 sm:$0xff]  }
  0xce   :  { %1682 = vmatprep.subr.bf16.mxu1 %v6037_v34  ;;  %v6125_v34 = vld [vmem:[#allocation2 + $0x548] ss:$16 sps:$4 sm:$0xff]  }
  0xcf   :  { %v6128_v36 = vld [vmem:[#allocation2 + $0x648] ss:$16 sps:$4 sm:$0xff]  }
  0xd0   :  { %1710 = vmatpush1.bf16.msra.mxu0 %v6038_v38  ;;  %v6136_v38 = vld [vmem:[#allocation2 + $0x62c] ss:$16 sps:$4 sm:$0xff]  }
  0xd1   :  { %1683 = vmatpush2.bf16.msra.mxu1 %v6035_v37  ;;  %1711 = vmatprep.subr.bf16.mxu0 %v6046_v40  ;;  %v6133_v37 = vld [vmem:[#allocation2 + $0x52c] ss:$16 sps:$4 sm:$0xff]   ;;  %v6134_v40 = vld [vmem:[#allocation2 + $0x628] ss:$16 sps:$4 sm:$0xff]  }
  0xd2   :  { %1684 = vmatprep.subr.bf16.mxu1 %v6043_v39  ;;  %v6131_v39 = vld [vmem:[#allocation2 + $0x528] ss:$16 sps:$4 sm:$0xff]  }
  0xd4   :  { %1712 = vmatpush1.bf16.msra.mxu0 %v6044_v42  ;;  %v6142_v42 = vld [vmem:[#allocation2 + $0x60c] ss:$16 sps:$4 sm:$0xff]  }
  0xd5   :  { %1685 = vmatpush2.bf16.msra.mxu1 %v6041_v41  ;;  %1713 = vmatprep.subr.bf16.mxu0 %v6049_v43  ;;  %v6139_v41 = vld [vmem:[#allocation2 + $0x50c] ss:$16 sps:$4 sm:$0xff]   ;;  %v6137_v43 = vld [vmem:[#allocation2 + $0x508] ss:$16 sps:$4 sm:$0xff]  }
  0xd6   :  { %1740 = vmatprep.subr.bf16.mxu1 %v6052_v44  ;;  %v6140_v44 = vld [vmem:[#allocation2 + $0x608] ss:$16 sps:$4 sm:$0xff]  }
  0xd8   :  { %1687 = vmatmul.mubr.bf16.vlgmr.msra.gmra.mxu1 %v6911_v4  ;;  %1714 = vmatpush2.bf16.msra.mxu0 %v6047_v45  ;;  %v6068_v4 = vld [vmem:[#allocation2 + $0x488] ss:$16 sps:$4 sm:$0xff]   ;;  %v6145_v45 = vld [vmem:[#allocation4 + $0x2a4] ss:$48 sps:$4 sm:$0xff]  }
  0xd9   :  { %1741 = vmatpush1.bf16.msra.mxu1 %v6050_v46  ;;  %1715 = vmatprep.subr.bf16.mxu0 %v6055_v47  ;;  %v6143_v46 = vld [vmem:[#allocation4 + $0x2a0] ss:$48 sps:$4 sm:$0xff]   ;;  %v6148_v47 = vld [vmem:[#allocation4 + $0x244] ss:$48 sps:$4 sm:$0xff]  }
  0xda   :  { %1742 = vmatprep.subr.bf16.mxu1 %v6058_v48  ;;  %1772 = vmatprep.mubr.bf16.mxu1 %v6921_v35  ;;  %v6077_v35 = vld [vmem:[#allocation2 + $0x348] ss:$16 sps:$4 sm:$0xff]  }
  0xdb   :  { %v6752_v48 = vld [vmem:[%s7033_s0 + $0x18] ss:$28 sps:$4 sm:$0xff]  }
  0xdc   :  { %1716 = vmatpush2.bf16.msra.mxu0 %v6053_v50  ;;  %v6146_v50 = vld [vmem:[#allocation4 + $0x240] ss:$48 sps:$4 sm:$0xff]  }
  0xdd   :  { %1743 = vmatpush1.bf16.msra.mxu1 %v6056_v52  ;;  %1717 = vmatprep.subr.bf16.mxu0 %v6061_v53  ;;  %v6151_v52 = vld [vmem:[#allocation4 + $0x1e4] ss:$48 sps:$4 sm:$0xff]   ;;  %v6149_v53 = vld [vmem:[#allocation4 + $0x1e0] ss:$48 sps:$4 sm:$0xff]  }
  0xde   :  { %1744 = vmatprep.subr.bf16.mxu1 %v6064_v54  ;;  %v6154_v54 = vld [vmem:[#allocation4 + $0x184] ss:$48 sps:$4 sm:$0xff]  }
  0xe0   :  { %1718 = vmatpush2.bf16.msra.mxu0 %v6059_v55  ;;  %v6152_v55 = vld [vmem:[#allocation4 + $0x180] ss:$48 sps:$4 sm:$0xff]  }
  0xe1   :  { %1745 = vmatpush1.bf16.msra.mxu1 %v6062_v56  ;;  %1719 = vmatprep.subr.bf16.mxu0 %v6067_v57  ;;  %v6157_v56 = vld [vmem:[#allocation4 + $0x124] ss:$48 sps:$4 sm:$0xff]   ;;  %v6155_v57 = vld [vmem:[#allocation4 + $0x120] ss:$48 sps:$4 sm:$0xff]  }
  0xe2   :  { %1746 = vmatprep.subr.bf16.mxu1 %v6070_v58  ;;  %v6217_v58 = vld [vmem:[#allocation4 + $0x8a4] ss:$48 sps:$4 sm:$0xff]  }
  0xe4   :  { %1720 = vmatpush2.bf16.msra.mxu0 %v6065_v59  ;;  %v6160_v59 = vld [vmem:[#allocation4 + $0xc4] ss:$48 sps:$4 sm:$0xff]  }
  0xe5   :  { %1747 = vmatpush1.bf16.msra.mxu1 %v6068_v4  ;;  %1721 = vmatprep.subr.bf16.mxu0 %v6073_v49  ;;  %v6158_v4 = vld [vmem:[#allocation4 + $0xc0] ss:$48 sps:$4 sm:$0xff]  }
  0xe6   :  { %1748 = vmatprep.subr.bf16.mxu1 %v6076_v60  ;;  %v6221_v49 = vld [vmem:[#allocation4 + $0x840] ss:$48 sps:$4 sm:$0xff]   ;;  %v6223_v60 = vld [vmem:[#allocation4 + $0x844] ss:$48 sps:$4 sm:$0xff]  }
  0xe8   :  { %1722 = vmatpush2.bf16.msra.mxu0 %v6071_v61  ;;  %v6163_v61 = vld [vmem:[#allocation4 + $0x64] ss:$48 sps:$4 sm:$0xff]  }
  0xe9   :  { %1749 = vmatpush1.bf16.msra.mxu1 %v6074_v62  ;;  %1723 = vmatprep.subr.bf16.mxu0 %v6079_v63  ;;  %v6161_v62 = vld [vmem:[#allocation4 + $0x60] ss:$48 sps:$4 sm:$0xff]  }
  0xea   :  { %1750 = vmatprep.subr.bf16.mxu1 %v6082_v0  ;;  %v6227_v63 = vld [vmem:[#allocation4 + $0x7e0] ss:$48 sps:$4 sm:$0xff]   ;;  %v6229_v0 = vld [vmem:[#allocation4 + $0x7e4] ss:$48 sps:$4 sm:$0xff]  }
  0xec   :  { %1724 = vmatpush2.bf16.msra.mxu0 %v6077_v35  ;;  %v6166_v35 = vld [vmem:[#allocation4 + $0x4] ss:$48 sps:$4 sm:$0xff]  }
  0xed   :  { %1751 = vmatpush1.bf16.msra.mxu1 %v6080_v1  ;;  %1725 = vmatprep.subr.bf16.mxu0 %v6085_v2  ;;  %v6164_v1 = vld [vmem:[#allocation4] ss:$48 sps:$4 sm:$0xff]  }
  0xee   :  { %1752 = vmatprep.subr.bf16.mxu1 %v6088_v3  ;;  %v6233_v2 = vld [vmem:[#allocation4 + $0x780] ss:$48 sps:$4 sm:$0xff]   ;;  %v6235_v3 = vld [vmem:[#allocation4 + $0x784] ss:$48 sps:$4 sm:$0xff]  }
  0xf0   :  { %1726 = vmatpush2.bf16.msra.mxu0 %v6083_v5  ;;  %v6169_v5 = vld [vmem:[#allocation4 + $0x5a4] ss:$48 sps:$4 sm:$0xff]  }
  0xf1   :  { %1753 = vmatpush1.bf16.msra.mxu1 %v6086_v6  ;;  %1727 = vmatprep.subr.bf16.mxu0 %v6091_v7  ;;  %v6167_v6 = vld [vmem:[#allocation4 + $0x5a0] ss:$48 sps:$4 sm:$0xff]  }
  0xf2   :  { %1754 = vmatprep.subr.bf16.mxu1 %v6094_v8  ;;  %v6239_v7 = vld [vmem:[#allocation4 + $0x720] ss:$48 sps:$4 sm:$0xff]   ;;  %v6241_v8 = vld [vmem:[#allocation4 + $0x724] ss:$48 sps:$4 sm:$0xff]  }
  0xf4   :  { %1728 = vmatpush2.bf16.msra.mxu0 %v6089_v9  ;;  %v6172_v9 = vld [vmem:[#allocation4 + $0x544] ss:$48 sps:$4 sm:$0xff]  }
  0xf5   :  { %1755 = vmatpush1.bf16.msra.mxu1 %v6092_v10  ;;  %1783 = vmatprep.subr.bf16.mxu0 %v6100_v13  ;;  %v6170_v10 = vld [vmem:[#allocation4 + $0x540] ss:$48 sps:$4 sm:$0xff]   ;;  %v6247_v13 = vld [vmem:[#allocation4 + $0x6c4] ss:$48 sps:$4 sm:$0xff]  }
  0xf6   :  { %1756 = vmatprep.subr.bf16.mxu1 %v6097_v12  ;;  %v6175_v12 = vld [vmem:[#allocation4 + $0x4e4] ss:$48 sps:$4 sm:$0xff]  }
  0xf7   :  { %1730 = vmatmul.mubr.bf16.vlgmr.msra.gmra.mxu0 %v6751_v21  ;;  %v6257_v21 = vld [vmem:[#allocation4 + $0x600] ss:$48 sps:$4 sm:$0xff]  }
  0xf8   :  { %1784 = vmatpush1.bf16.msra.mxu0 %v6098_v16  ;;  %1815 = vmatprep.mubr.bf16.mxu0 %v6853_v14  ;;  %v6130_v14 = vld [vmem:[#allocation2 + $0x64c] ss:$16 sps:$4 sm:$0xff]   ;;  %v6245_v16 = vld [vmem:[#allocation4 + $0x6c0] ss:$48 sps:$4 sm:$0xff]  }
  0xf9   :  { %1757 = vmatpush2.bf16.msra.mxu1 %v6095_v15  ;;  %1785 = vmatprep.subr.bf16.mxu0 %v6106_v18  ;;  %v6173_v15 = vld [vmem:[#allocation4 + $0x4e0] ss:$48 sps:$4 sm:$0xff]   ;;  %v6253_v18 = vld [vmem:[#allocation4 + $0x664] ss:$48 sps:$4 sm:$0xff]  }
  0xfa   :  { %1758 = vmatprep.subr.bf16.mxu1 %v6103_v17  ;;  %v6178_v17 = vld [vmem:[#allocation4 + $0x484] ss:$48 sps:$4 sm:$0xff]  }
  0xfc   :  { %1786 = vmatpush1.bf16.msra.mxu0 %v6104_v20  ;;  %v6176_v20 = vld [vmem:[#allocation4 + $0x480] ss:$48 sps:$4 sm:$0xff]  }
  0xfd   :  { %1759 = vmatpush2.bf16.msra.mxu1 %v6101_v19  ;;  %1787 = vmatprep.subr.bf16.mxu0 %v6112_v23  ;;  %v6251_v19 = vld [vmem:[#allocation4 + $0x660] ss:$48 sps:$4 sm:$0xff]   ;;  %v6181_v23 = vld [vmem:[#allocation4 + $0x424] ss:$48 sps:$4 sm:$0xff]  }
  0xfe   :  { %1760 = vmatprep.subr.bf16.mxu1 %v6109_v22  ;;  %v6259_v22 = vld [vmem:[#allocation4 + $0x604] ss:$48 sps:$4 sm:$0xff]  }
 0x100   :  { %1788 = vmatpush1.bf16.msra.mxu0 %v6110_v25  ;;  %v6184_v25 = vld [vmem:[#allocation4 + $0x3c4] ss:$48 sps:$4 sm:$0xff]  }
 0x101   :  { %1761 = vmatpush2.bf16.msra.mxu1 %v6107_v24  ;;  %1789 = vmatprep.subr.bf16.mxu0 %v6118_v27  ;;  %v6179_v24 = vld [vmem:[#allocation4 + $0x420] ss:$48 sps:$4 sm:$0xff]   ;;  %v6265_v27 = vld [vmem:[#allocation4 + $0xba4] ss:$48 sps:$4 sm:$0xff]  }
 0x102   :  { %1762 = vmatprep.subr.bf16.mxu1 %v6115_v26  ;;  %v6263_v26 = vld [vmem:[#allocation4 + $0xba0] ss:$48 sps:$4 sm:$0xff]  }
 0x104   :  { %1790 = vmatpush1.bf16.msra.mxu0 %v6116_v29  ;;  %v6182_v29 = vld [vmem:[#allocation4 + $0x3c0] ss:$48 sps:$4 sm:$0xff]  }
 0x105   :  { %1763 = vmatpush2.bf16.msra.mxu1 %v6113_v28  ;;  %1791 = vmatprep.subr.bf16.mxu0 %v6124_v30  ;;  %v6268_v28 = vld [vmem:[#allocation4 + $0xb44] ss:$48 sps:$4 sm:$0xff]  }
 0x106   :  { %1764 = vmatprep.subr.bf16.mxu1 %v6121_v51  ;;  %v6266_v51 = vld [vmem:[#allocation4 + $0xb40] ss:$48 sps:$4 sm:$0xff]   ;;  %v6187_v30 = vld [vmem:[#allocation4 + $0x364] ss:$48 sps:$4 sm:$0xff]  }
 0x108   :  { %1792 = vmatpush1.bf16.msra.mxu0 %v6122_v32  ;;  %v6185_v32 = vld [vmem:[#allocation4 + $0x360] ss:$48 sps:$4 sm:$0xff]  }
 0x109   :  { %1765 = vmatpush2.bf16.msra.mxu1 %v6119_v31  ;;  %1793 = vmatprep.subr.bf16.mxu0 %v6130_v14  ;;  %v6271_v31 = vld [vmem:[#allocation4 + $0xae4] ss:$48 sps:$4 sm:$0xff]  }
 0x10a   :  { %1766 = vmatprep.subr.bf16.mxu1 %v6127_v33  ;;  %v6269_v33 = vld [vmem:[#allocation4 + $0xae0] ss:$48 sps:$4 sm:$0xff]   ;;  %v6190_v14 = vld [vmem:[#allocation4 + $0x304] ss:$48 sps:$4 sm:$0xff]  }
 0x10c   :  { %1794 = vmatpush1.bf16.msra.mxu0 %v6128_v36  ;;  %v6188_v36 = vld [vmem:[#allocation4 + $0x300] ss:$48 sps:$4 sm:$0xff]  }
 0x10d   :  { %1767 = vmatpush2.bf16.msra.mxu1 %v6125_v34  ;;  %1795 = vmatprep.subr.bf16.mxu0 %v6136_v38  ;;  %v6274_v34 = vld [vmem:[#allocation4 + $0xa84] ss:$48 sps:$4 sm:$0xff]   ;;  %v6193_v38 = vld [vmem:[#allocation4 + $0x2ac] ss:$48 sps:$4 sm:$0xff]  }
 0x10e   :  { %1768 = vmatprep.subr.bf16.mxu1 %v6133_v37  ;;  %v6272_v37 = vld [vmem:[#allocation4 + $0xa80] ss:$48 sps:$4 sm:$0xff]  }
 0x110   :  { %1796 = vmatpush1.bf16.msra.mxu0 %v6134_v40  ;;  %v6275_v40 = vld [vmem:[#allocation4 + $0xa20] ss:$48 sps:$4 sm:$0xff]  }
 0x111   :  { %1769 = vmatpush2.bf16.msra.mxu1 %v6131_v39  ;;  %1797 = vmatprep.subr.bf16.mxu0 %v6142_v42  ;;  %v6277_v39 = vld [vmem:[#allocation4 + $0xa24] ss:$48 sps:$4 sm:$0xff]   ;;  %v6278_v42 = vld [vmem:[#allocation4 + $0x9c0] ss:$48 sps:$4 sm:$0xff]  }
 0x112   :  { %1770 = vmatprep.subr.bf16.mxu1 %v6139_v41  ;;  %v6280_v41 = vld [vmem:[#allocation4 + $0x9c4] ss:$48 sps:$4 sm:$0xff]  }
 0x114   :  { %1798 = vmatpush1.bf16.msra.mxu0 %v6140_v44  ;;  %v6281_v44 = vld [vmem:[#allocation4 + $0x960] ss:$48 sps:$4 sm:$0xff]  }
 0x115   :  { %1771 = vmatpush2.bf16.msra.mxu1 %v6137_v43  ;;  %2622 = vmatprep.subr.bf16.mxu0 %v6145_v45  ;;  %v6283_v43 = vld [vmem:[#allocation4 + $0x964] ss:$48 sps:$4 sm:$0xff]  }
 0x116   :  { %2665 = vmatprep.subr.bf16.mxu1 %v6217_v58  ;;  %v6286_v45 = vld [vmem:[#allocation4 + $0x904] ss:$48 sps:$4 sm:$0xff]  }
 0x117   :  { %1816 = vmatmul.mubr.bf16.vlgmr.msra.gmra.mxu0 %v6752_v48 }
 0x118   :  { %1773 = vmatmul.mubr.bf16.vlgmr.msra.gmra.mxu1 %v6931_v11  ;;  %2623 = vmatpush1.bf16.msra.mxu0 %v6143_v46  ;;  %v6215_v11 = vld [vmem:[#allocation4 + $0x8a0] ss:$48 sps:$4 sm:$0xff]   ;;  %v310_v46 = vlaneseq }
 0x119   :  { %2624 = vmatprep.subr.bf16.mxu0 %v6148_v47  ;;  %2666 = vmatpush1.bf16.msra.mxu1 %v6215_v11  ;;  %v6284_v47 = vld [vmem:[#allocation4 + $0x900] ss:$48 sps:$4 sm:$0xff]  }
 0x11a   :  { %2667 = vmatprep.subr.bf16.mxu1 %v6223_v60 }
 0x11c   :  { %2625 = vmatpush1.bf16.msra.mxu0 %v6146_v50  ;;  %v6289_v50 = vld [vmem:[#allocation4 + $0x8ac] ss:$48 sps:$4 sm:$0xff]  }
 0x11d   :  { %2626 = vmatprep.subr.bf16.mxu0 %v6151_v52  ;;  %2668 = vmatpush1.bf16.msra.mxu1 %v6221_v49  ;;  %v6945_v52 = vshrl.u32 %v310_v46, 7  ;;  %v6226_v46 = vld [vmem:[#allocation4 + $0x54c] ss:$48 sps:$4 sm:$0xff]  }
 0x11e   :  { %2669 = vmatprep.subr.bf16.mxu1 %v6229_v0 }
 0x120   :  { %2627 = vmatpush1.bf16.msra.mxu0 %v6149_v53  ;;  %v6947_v53 = vld [vmem:[#allocation7] sm:$0xff] }
 0x121   :  { %2628 = vmatprep.subr.bf16.mxu0 %v6154_v54  ;;  %2670 = vmatpush1.bf16.msra.mxu1 %v6227_v63 }
 0x122   :  { %2671 = vmatprep.subr.bf16.mxu1 %v6235_v3 }
 0x124   :  { %2629 = vmatpush1.bf16.msra.mxu0 %v6152_v55 }
 0x125   :  { %2630 = vmatprep.subr.bf16.mxu0 %v6157_v56  ;;  %2672 = vmatpush1.bf16.msra.mxu1 %v6233_v2  ;;  %v6950_v56 = vsub.s32 0, %v6945_v52 }
 0x126   :  { %2673 = vmatprep.subr.bf16.mxu1 %v6241_v8 }
 0x128   :  { %2631 = vmatpush1.bf16.msra.mxu0 %v6155_v57  ;;  %v6952_v57 = vld [vmem:[#allocation7 + $0x8] sm:$0xff] }
 0x129   :  { %2632 = vmatprep.subr.bf16.mxu0 %v6160_v59  ;;  %2674 = vmatpush1.bf16.msra.mxu1 %v6239_v7  ;;  %v313_v59 = vrot.slane %v6947_v53, %v6950_v56 }
 0x12a   :  { %2675 = vmatprep.subr.bf16.mxu1 %v6247_v13 }
 0x12c   :  { %2633 = vmatpush1.bf16.msra.mxu0 %v6158_v4  ;;  %v317_v4 = vrot.slane %v6952_v57, %v6950_v56 }
 0x12d   :  { %2634 = vmatprep.subr.bf16.mxu0 %v6163_v61  ;;  %2676 = vmatpush1.bf16.msra.mxu1 %v6245_v16 }
 0x12e   :  { %2677 = vmatprep.subr.bf16.mxu1 %v6253_v18 }
 0x130   :  { %2635 = vmatpush1.bf16.msra.mxu0 %v6161_v62 }
 0x131   :  { %2636 = vmatprep.subr.bf16.mxu0 %v6166_v35  ;;  %2678 = vmatpush1.bf16.msra.mxu1 %v6251_v19 }
 0x132   :  { %2679 = vmatprep.subr.bf16.mxu1 %v6259_v22 }
 0x134   :  { %2637 = vmatpush1.bf16.msra.mxu0 %v6164_v1 }
 0x135   :  { %2638 = vmatprep.subr.bf16.mxu0 %v6169_v5  ;;  %2680 = vmatpush1.bf16.msra.mxu1 %v6257_v21 }
 0x136   :  { %2681 = vmatprep.subr.bf16.mxu1 %v6265_v27 }
 0x137   :  { %v1516_v54 = vpop.f32.mrf.mxu0 }
 0x138   :  { %2639 = vmatpush2.bf16.msra.mxu0 %v6167_v6  ;;  %v1559_v48 = vpop.f32.mrf.mxu1  ;;  %v1517_v61 = vadd.f32 %v1516_v54, %v313_v59  ;;  %v6238_v54 = vld [vmem:[#allocation4 + $0x48c] ss:$48 sps:$4 sm:$0xff]  }
 0x139   :  { %2640 = vmatprep.subr.bf16.mxu0 %v6172_v9  ;;  %2682 = vmatpush2.bf16.msra.mxu1 %v6263_v26  ;;  %v1518_v11 = vpop.f32.mrf.mxu0 }
 0x13a   :  { %2683 = vmatprep.subr.bf16.mxu1 %v6268_v28  ;;  %v1561_v55 = vpop.f32.mrf.mxu1  ;;  %v1519_v63 = vadd.f32 %v1518_v11, %v317_v4  ;;  %v1560_v35 = vadd.f32 %v1559_v48, %v1517_v61  ;;  %v6232_v48 = vld [vmem:[#allocation4 + $0x4ec] ss:$48 sps:$4 sm:$0xff]  }
 0x13b   :  { %v1520_v49 = vpop.f32.mrf.mxu0  ;;  %v6244_v11 = vld [vmem:[#allocation4 + $0x42c] ss:$48 sps:$4 sm:$0xff]  }
 0x13c   :  { %2641 = vmatpush2.bf16.msra.mxu0 %v6170_v10  ;;  %v1563_v58 = vpop.f32.mrf.mxu1  ;;  %v1521_v1 = vadd.f32 %v1520_v49, %v313_v59  ;;  %v1562_v5 = vadd.f32 %v1561_v55, %v1519_v63  ;;  %v6236_v55 = vld [vmem:[#allocation4 + $0x488] ss:$48 sps:$4 sm:$0xff]   ;;  %v6250_v59 = vld [vmem:[#allocation4 + $0x3cc] ss:$48 sps:$4 sm:$0xff]  }
 0x13d   :  { %2642 = vmatprep.subr.bf16.mxu0 %v6175_v12  ;;  %2684 = vmatpush2.bf16.msra.mxu1 %v6266_v51  ;;  %v1522_v0 = vpop.f32.mrf.mxu0  ;;  %v6196_v51 = vld [vmem:[#allocation4 + $0x24c] ss:$48 sps:$4 sm:$0xff]  }
 0x13e   :  { %2685 = vmatprep.subr.bf16.mxu1 %v6271_v31  ;;  %v1565_v60 = vpop.f32.mrf.mxu1  ;;  %v1523_v6 = vadd.f32 %v1522_v0, %v317_v4  ;;  %v1564_v9 = vadd.f32 %v1563_v58, %v1521_v1  ;;  %v6194_v31 = vld [vmem:[#allocation4 + $0x248] ss:$48 sps:$4 sm:$0xff]   ;;  %v6256_v49 = vld [vmem:[#allocation4 + $0x36c] ss:$48 sps:$4 sm:$0xff]  }
 0x13f   :  { %v6242_v58 = vld [vmem:[#allocation4 + $0x428] ss:$48 sps:$4 sm:$0xff]   ;;  %v6262_v61 = vld [vmem:[#allocation4 + $0x30c] ss:$48 sps:$4 sm:$0xff]  }
 0x140   :  { %2643 = vmatpush2.bf16.msra.mxu0 %v6173_v15  ;;  %v1566_v15 = vadd.f32 %v1565_v60, %v1523_v6  ;;  %v6248_v4 = vld [vmem:[#allocation4 + $0x3c8] ss:$48 sps:$4 sm:$0xff]   ;;  %v6340_v6 = vld [vmem:[#allocation4 + $0x254] ss:$48 sps:$4 sm:$0xff]  }
 0x141   :  { %2644 = vmatprep.subr.bf16.mxu0 %v6178_v17  ;;  %2686 = vmatpush2.bf16.msra.mxu1 %v6269_v33  ;;  %v6197_v33 = vld [vmem:[#allocation4 + $0x1e8] ss:$48 sps:$4 sm:$0xff]  }
 0x142   :  { %2687 = vmatprep.subr.bf16.mxu1 %v6274_v34  ;;  %v6200_v34 = vld [vmem:[#allocation4 + $0x188] ss:$48 sps:$4 sm:$0xff]  }
 0x143   :  { %v6254_v60 = vld [vmem:[#allocation4 + $0x368] ss:$48 sps:$4 sm:$0xff]  }
 0x144   :  { %2645 = vmatpush2.bf16.msra.mxu0 %v6176_v20 }
 0x145   :  { %2646 = vmatprep.subr.bf16.mxu0 %v6181_v23  ;;  %2688 = vmatpush2.bf16.msra.mxu1 %v6272_v37  ;;  %v6203_v37 = vld [vmem:[#allocation4 + $0x128] ss:$48 sps:$4 sm:$0xff]  }
 0x146   :  { %2689 = vmatprep.subr.bf16.mxu1 %v6277_v39  ;;  %v6206_v39 = vld [vmem:[#allocation4 + $0xc8] ss:$48 sps:$4 sm:$0xff]  }
 0x148   :  { %2647 = vmatpush2.bf16.msra.mxu0 %v6179_v24 }
 0x149   :  { %2648 = vmatprep.subr.bf16.mxu0 %v6184_v25  ;;  %2690 = vmatpush2.bf16.msra.mxu1 %v6275_v40  ;;  %v6211_v40 = vld [vmem:[#allocation4 + $0x6c] ss:$48 sps:$4 sm:$0xff]  }
 0x14a   :  { %2691 = vmatprep.subr.bf16.mxu1 %v6280_v41  ;;  %v6209_v41 = vld [vmem:[#allocation4 + $0x68] ss:$48 sps:$4 sm:$0xff]  }
 0x14c   :  { %2649 = vmatpush2.bf16.msra.mxu0 %v6182_v29  ;;  %v6191_v29 = vld [vmem:[#allocation4 + $0x2a8] ss:$48 sps:$4 sm:$0xff]  }
 0x14d   :  { %2650 = vmatprep.subr.bf16.mxu0 %v6187_v30  ;;  %2692 = vmatpush2.bf16.msra.mxu1 %v6278_v42  ;;  %v6214_v42 = vld [vmem:[#allocation4 + $0xc] ss:$48 sps:$4 sm:$0xff]  }
 0x14e   :  { %2693 = vmatprep.subr.bf16.mxu1 %v6283_v43  ;;  %v6212_v43 = vld [vmem:[#allocation4 + $0x8] ss:$48 sps:$4 sm:$0xff]  }
 0x150   :  { %2651 = vmatpush2.bf16.msra.mxu0 %v6185_v32  ;;  %v6199_v32 = vld [vmem:[#allocation4 + $0x1ec] ss:$48 sps:$4 sm:$0xff]  }
 0x151   :  { %2652 = vmatprep.subr.bf16.mxu0 %v6190_v14  ;;  %2694 = vmatpush2.bf16.msra.mxu1 %v6281_v44  ;;  %v6202_v14 = vld [vmem:[#allocation4 + $0x18c] ss:$48 sps:$4 sm:$0xff]  }
 0x152   :  { %2695 = vmatprep.subr.bf16.mxu1 %v6286_v45  ;;  %v6220_v44 = vld [vmem:[#allocation4 + $0x5ac] ss:$48 sps:$4 sm:$0xff]   ;;  %v6218_v45 = vld [vmem:[#allocation4 + $0x5a8] ss:$48 sps:$4 sm:$0xff]  }
 0x154   :  { %2653 = vmatpush2.bf16.msra.mxu0 %v6188_v36  ;;  %v6205_v36 = vld [vmem:[#allocation4 + $0x12c] ss:$48 sps:$4 sm:$0xff]  }
 0x155   :  { %2708 = vmatprep.subr.bf16.mxu0 %v6193_v38  ;;  %2696 = vmatpush2.bf16.msra.mxu1 %v6284_v47  ;;  %v6208_v38 = vld [vmem:[#allocation4 + $0xcc] ss:$48 sps:$4 sm:$0xff]   ;;  %v6224_v47 = vld [vmem:[#allocation4 + $0x548] ss:$48 sps:$4 sm:$0xff]  }
 0x156   :  { %2751 = vmatprep.subr.bf16.mxu1 %v6289_v50  ;;  %v6230_v50 = vld [vmem:[#allocation4 + $0x4e8] ss:$48 sps:$4 sm:$0xff]  }
 0x158   :  { %v1645_v62 = vpop.f32.mrf.mxu1 }
 0x15a   :  { %v1647_v2 = vpop.f32.mrf.mxu1 }
 0x15c   :  { %v1649_v12 = vpop.f32.mrf.mxu1 }
 0x15e   :  { %v1651_v22 = vpop.f32.mrf.mxu1 }
 0x177   :  { %v1602_v3 = vpop.f32.mrf.mxu0 }
 0x178   :  { %v1603_v7 = vadd.f32 %v1602_v3, %v1560_v35  ;;  %v6337_v3 = vld [vmem:[#allocation4 + $0x2b4] ss:$48 sps:$4 sm:$0xff]  }
 0x179   :  { %v1604_v8 = vpop.f32.mrf.mxu0 }
 0x17a   :  { %v1605_v10 = vadd.f32 %v1604_v8, %v1562_v5  ;;  %v1646_v16 = vadd.f32 %v1645_v62, %v1603_v7  ;;  %v6260_v62 = vld [vmem:[#allocation4 + $0x308] ss:$48 sps:$4 sm:$0xff]   ;;  %v6964_v7 = vld [vmem:[#allocation7 + $0x10] sm:$0xff] }
 0x17b   :  { %v1606_v13 = vpop.f32.mrf.mxu0  ;;  %v6962_v5 = vld [vmem:[#allocation7 + $0x18] sm:$0xff] }
 0x17c   :  { %v1607_v17 = vadd.f32 %v1606_v13, %v1564_v9  ;;  %v1648_v19 = vadd.f32 %v1647_v2, %v1605_v10  ;;  %v1826_v23 = vmax.f32 %v1646_v16, 0.0  ;;  %v6335_v2 = vld [vmem:[#allocation4 + $0x2b0] ss:$48 sps:$4 sm:$0xff]   ;;  %v6343_v13 = vld [vmem:[#allocation4 + $0x1f4] ss:$48 sps:$4 sm:$0xff]  }
 0x17d   :  { %v1608_v18 = vpop.f32.mrf.mxu0  ;;  %v6338_v10 = vld [vmem:[#allocation4 + $0x250] ss:$48 sps:$4 sm:$0xff]  }
 0x17e   :  { %v1650_v20 = vadd.f32 %v1649_v12, %v1607_v17  ;;  %v1609_v21 = vadd.f32 %v1608_v18, %v1566_v15  ;;  %v1827_v26 = vmax.f32 %v1648_v19, 0.0  ;;  %v325_v12 = vrot.slane %v6962_v5, %v6950_v56  ;;  %v6341_v18 = vld [vmem:[#allocation4 + $0x1f0] ss:$48 sps:$4 sm:$0xff]  }
 0x17f   :  { %v321_v15 = vrot.slane %v6964_v7, %v6950_v56 }
 0x180   :  { %v1830_v24 = vmax.f32 %v1650_v20, 0.0  ;;  %v1652_v25 = vadd.f32 %v1651_v22, %v1609_v21  ;;  %v6346_v20 = vld [vmem:[#allocation4 + $0x194] ss:$48 sps:$4 sm:$0xff]  }
 0x182   :  { %v1831_v27 = vmax.f32 %v1652_v25, 0.0  ;;  %v6958_v30 = vpack.c.bf16 %v1830_v24, %v1826_v23 }
 0x184   :  { %v1835_v28 = vpack.c.bf16 %v1831_v27, %v1827_v26 }
 0x186   :  { %2654 = vmatprep.mubr.bf16.mxu0 %v1835_v28 }
 0x187   :  { %2655 = vmatmul.mubr.bf16.vlgmr.msra.gmra.mxu0 %v6958_v30 }
 0x188   :  { %2709 = vmatpush1.bf16.msra.mxu0 %v6191_v29  ;;  %2740 = vmatprep.mubr.bf16.mxu0 %v1835_v28  ;;  %v6344_v29 = vld [vmem:[#allocation4 + $0x190] ss:$48 sps:$4 sm:$0xff]  }
 0x189   :  { %2710 = vmatprep.subr.bf16.mxu0 %v6196_v51 }
 0x18c   :  { %2711 = vmatpush1.bf16.msra.mxu0 %v6194_v31  ;;  %v6349_v31 = vld [vmem:[#allocation4 + $0x134] ss:$48 sps:$4 sm:$0xff]  }
 0x18d   :  { %2712 = vmatprep.subr.bf16.mxu0 %v6199_v32 }
 0x190   :  { %2713 = vmatpush1.bf16.msra.mxu0 %v6197_v33 }
 0x191   :  { %2714 = vmatprep.subr.bf16.mxu0 %v6202_v14 }
 0x194   :  { %2715 = vmatpush1.bf16.msra.mxu0 %v6200_v34 }
 0x195   :  { %2716 = vmatprep.subr.bf16.mxu0 %v6205_v36 }
 0x198   :  { %2717 = vmatpush1.bf16.msra.mxu0 %v6203_v37  ;;  %v1688_v63 = vpop.f32.mrf.mxu1 }
 0x199   :  { %2718 = vmatprep.subr.bf16.mxu0 %v6208_v38  ;;  %v1689_v21 = vadd.f32 %v1688_v63, %v321_v15  ;;  %v6347_v38 = vld [vmem:[#allocation4 + $0x130] ss:$48 sps:$4 sm:$0xff]   ;;  %v6304_v63 = vld [vmem:[#allocation4 + $0x6cc] ss:$48 sps:$4 sm:$0xff]  }
 0x19a   :  { %v1690_v35 = vpop.f32.mrf.mxu1 }
 0x19b   :  { %v1691_v19 = vadd.f32 %v1690_v35, %v325_v12  ;;  %v6307_v35 = vld [vmem:[#allocation4 + $0x66c] ss:$48 sps:$4 sm:$0xff]  }
 0x19c   :  { %2719 = vmatpush1.bf16.msra.mxu0 %v6206_v39  ;;  %v1692_v8 = vpop.f32.mrf.mxu1 }
 0x19d   :  { %2720 = vmatprep.subr.bf16.mxu0 %v6211_v40  ;;  %v1693_v24 = vadd.f32 %v1692_v8, %v321_v15  ;;  %v6311_v8 = vld [vmem:[#allocation4 + $0xba8] ss:$48 sps:$4 sm:$0xff]   ;;  %v6319_v15 = vld [vmem:[#allocation4 + $0xaec] ss:$48 sps:$4 sm:$0xff]  }
 0x19e   :  { %v1694_v16 = vpop.f32.mrf.mxu1 }
 0x19f   :  { %v1695_v51 = vadd.f32 %v1694_v16, %v325_v12  ;;  %v6314_v12 = vld [vmem:[#allocation4 + $0xb48] ss:$48 sps:$4 sm:$0xff]   ;;  %v6355_v16 = vld [vmem:[#allocation4 + $0x74] ss:$48 sps:$4 sm:$0xff]  }
 0x1a0   :  { %2721 = vmatpush1.bf16.msra.mxu0 %v6209_v41 }
 0x1a1   :  { %2722 = vmatprep.subr.bf16.mxu0 %v6214_v42 }
 0x1a4   :  { %2723 = vmatpush1.bf16.msra.mxu0 %v6212_v43 }
 0x1a5   :  { %2724 = vmatprep.subr.bf16.mxu0 %v6220_v44 }
 0x1a8   :  { %2725 = vmatpush2.bf16.msra.mxu0 %v6218_v45 }
 0x1a9   :  { %2726 = vmatprep.subr.bf16.mxu0 %v6226_v46 }
 0x1ac   :  { %2727 = vmatpush2.bf16.msra.mxu0 %v6224_v47 }
 0x1ad   :  { %2728 = vmatprep.subr.bf16.mxu0 %v6232_v48 }
 0x1b0   :  { %2729 = vmatpush2.bf16.msra.mxu0 %v6230_v50 }
 0x1b1   :  { %2730 = vmatprep.subr.bf16.mxu0 %v6238_v54  ;;  %v6287_v54 = vld [vmem:[#allocation4 + $0x8a8] ss:$48 sps:$4 sm:$0xff]  }
 0x1b4   :  { %2731 = vmatpush2.bf16.msra.mxu0 %v6236_v55 }
 0x1b5   :  { %2732 = vmatprep.subr.bf16.mxu0 %v6244_v11  ;;  %v6292_v11 = vld [vmem:[#allocation4 + $0x84c] ss:$48 sps:$4 sm:$0xff]  }
 0x1b7   :  { %v1731_v0 = vpop.f32.mrf.mxu0 }
 0x1b8   :  { %2733 = vmatpush2.bf16.msra.mxu0 %v6242_v58  ;;  %v1732_v26 = vadd.f32 %v1731_v0, %v1689_v21  ;;  %v6290_v58 = vld [vmem:[#allocation4 + $0x848] ss:$48 sps:$4 sm:$0xff]   ;;  %v6358_v21 = vld [vmem:[#allocation4 + $0x14] ss:$48 sps:$4 sm:$0xff]  }
 0x1b9   :  { %2734 = vmatprep.subr.bf16.mxu0 %v6250_v59  ;;  %v1733_v1 = vpop.f32.mrf.mxu0  ;;  %v6295_v59 = vld [vmem:[#allocation4 + $0x7ec] ss:$48 sps:$4 sm:$0xff]   ;;  %v6302_v0 = vld [vmem:[#allocation4 + $0x6c8] ss:$48 sps:$4 sm:$0xff]  }
 0x1ba   :  { %v1734_v25 = vadd.f32 %v1733_v1, %v1691_v19  ;;  %v6305_v1 = vld [vmem:[#allocation4 + $0x668] ss:$48 sps:$4 sm:$0xff]   ;;  %v6322_v19 = vld [vmem:[#allocation4 + $0xa8c] ss:$48 sps:$4 sm:$0xff]  }
 0x1bb   :  { %v1735_v9 = vpop.f32.mrf.mxu0 }
 0x1bc   :  { %2735 = vmatpush2.bf16.msra.mxu0 %v6248_v4  ;;  %v6293_v4 = vld [vmem:[#allocation4 + $0x7e8] ss:$48 sps:$4 sm:$0xff]  }
 0x1bd   :  { %2736 = vmatprep.subr.bf16.mxu0 %v6256_v49  ;;  %v1737_v17 = vpop.f32.mrf.mxu0  ;;  %v6298_v49 = vld [vmem:[#allocation4 + $0x78c] ss:$48 sps:$4 sm:$0xff]  }
 0x1be   :  { %v1738_v34 = vadd.f32 %v1737_v17, %v1695_v51  ;;  %v6317_v17 = vld [vmem:[#allocation4 + $0xae8] ss:$48 sps:$4 sm:$0xff]   ;;  %v6367_v51 = vld [vmem:[#allocation4 + $0x4f4] ss:$48 sps:$4 sm:$0xff]  }
 0x1c0   :  { %2737 = vmatpush2.bf16.msra.mxu0 %v6254_v60  ;;  %v6296_v60 = vld [vmem:[#allocation4 + $0x788] ss:$48 sps:$4 sm:$0xff]  }
 0x1c1   :  { %2738 = vmatprep.subr.bf16.mxu0 %v6262_v61  ;;  %v6301_v61 = vld [vmem:[#allocation4 + $0x72c] ss:$48 sps:$4 sm:$0xff]  }
 0x1c4   :  { %2739 = vmatpush2.bf16.msra.mxu0 %v6260_v62  ;;  %v6299_v62 = vld [vmem:[#allocation4 + $0x728] ss:$48 sps:$4 sm:$0xff]  }
 0x1c5   :  { %3590 = vmatprep.subr.bf16.mxu0 %v6337_v3  ;;  %v6308_v3 = vld [vmem:[#allocation4 + $0x608] ss:$48 sps:$4 sm:$0xff]  }
 0x1c7   :  { %2741 = vmatmul.mubr.bf16.vlgmr.msra.gmra.mxu0 %v6958_v30  ;;  %v1736_v30 = vadd.f32 %v1735_v9, %v1693_v24  ;;  %v6316_v9 = vld [vmem:[#allocation4 + $0xb4c] ss:$48 sps:$4 sm:$0xff]  }
 0x1c8   :  { %3591 = vmatpush1.bf16.msra.mxu0 %v6335_v2  ;;  %v6310_v2 = vld [vmem:[#allocation4 + $0x60c] ss:$48 sps:$4 sm:$0xff]  }
 0x1c9   :  { %3592 = vmatprep.subr.bf16.mxu0 %v6340_v6  ;;  %v6313_v6 = vld [vmem:[#allocation4 + $0xbac] ss:$48 sps:$4 sm:$0xff]  }
 0x1ca   :  { %v6325_v24 = vld [vmem:[#allocation4 + $0xa2c] ss:$48 sps:$4 sm:$0xff]  }
 0x1cc   :  { %3593 = vmatpush1.bf16.msra.mxu0 %v6338_v10  ;;  %v6352_v10 = vld [vmem:[#allocation4 + $0xd4] ss:$48 sps:$4 sm:$0xff]  }
 0x1cd   :  { %3594 = vmatprep.subr.bf16.mxu0 %v6343_v13  ;;  %v6350_v13 = vld [vmem:[#allocation4 + $0xd0] ss:$48 sps:$4 sm:$0xff]  }
 0x1d0   :  { %3595 = vmatpush1.bf16.msra.mxu0 %v6341_v18  ;;  %v6353_v18 = vld [vmem:[#allocation4 + $0x70] ss:$48 sps:$4 sm:$0xff]  }
 0x1d1   :  { %3596 = vmatprep.subr.bf16.mxu0 %v6346_v20  ;;  %v6356_v20 = vld [vmem:[#allocation4 + $0x10] ss:$48 sps:$4 sm:$0xff]  }
 0x1d4   :  { %3597 = vmatpush1.bf16.msra.mxu0 %v6344_v29  ;;  %v6362_v29 = vld [vmem:[#allocation4 + $0x550] ss:$48 sps:$4 sm:$0xff]  }
 0x1d5   :  { %3598 = vmatprep.subr.bf16.mxu0 %v6349_v31  ;;  %v6365_v31 = vld [vmem:[#allocation4 + $0x4f0] ss:$48 sps:$4 sm:$0xff]  }
 0x1d7   :  { %v1817_v23 = vpop.f32.mrf.mxu0 }
 0x1d8   :  { %v1774_v22 = vpop.f32.mrf.mxu1  ;;  %3599 = vmatpush1.bf16.msra.mxu0 %v6347_v38  ;;  %v6371_v38 = vld [vmem:[#allocation4 + $0x430] ss:$48 sps:$4 sm:$0xff]  }
 0x1d9   :  { %v1819_v28 = vpop.f32.mrf.mxu0  ;;  %v1775_v32 = vadd.f32 %v1774_v22, %v1732_v26  ;;  %3600 = vmatprep.subr.bf16.mxu0 %v6352_v10  ;;  %v6361_v22 = vld [vmem:[#allocation4 + $0x5b4] ss:$48 sps:$4 sm:$0xff]  }
 0x1da   :  { %v1776_v27 = vpop.f32.mrf.mxu1  ;;  %v6364_v26 = vld [vmem:[#allocation4 + $0x554] ss:$48 sps:$4 sm:$0xff]  }
 0x1db   :  { %v1777_v56 = vadd.f32 %v1776_v27, %v1734_v25  ;;  %v1821_v14 = vpop.f32.mrf.mxu0  ;;  %v1818_v42 = vadd.f32 %v1817_v23, %v1775_v32  ;;  %v6320_v23 = vld [vmem:[#allocation4 + $0xa88] ss:$48 sps:$4 sm:$0xff]   ;;  %v6359_v25 = vld [vmem:[#allocation4 + $0x5b0] ss:$48 sps:$4 sm:$0xff]   ;;  %v6370_v32 = vld [vmem:[#allocation4 + $0x494] ss:$48 sps:$4 sm:$0xff]  }
 0x1dc   :  { %v1778_v33 = vpop.f32.mrf.mxu1  ;;  %3601 = vmatpush1.bf16.msra.mxu0 %v6350_v13  ;;  %v6323_v27 = vld [vmem:[#allocation4 + $0xa28] ss:$48 sps:$4 sm:$0xff]   ;;  %v6451_v10 = vld [vmem:[#allocation4 + $0xa94] ss:$48 sps:$4 sm:$0xff]  }
 0x1dd   :  { %v1779_v36 = vadd.f32 %v1778_v33, %v1736_v30  ;;  %v1820_v39 = vadd.f32 %v1819_v28, %v1777_v56  ;;  %v1823_v43 = vpop.f32.mrf.mxu0  ;;  %v1828_v48 = vmax.f32 %v1818_v42, 0.0  ;;  %3602 = vmatprep.subr.bf16.mxu0 %v6355_v16  ;;  %v6328_v28 = vld [vmem:[#allocation4 + $0x9cc] ss:$48 sps:$4 sm:$0xff]   ;;  %v6326_v30 = vld [vmem:[#allocation4 + $0x9c8] ss:$48 sps:$4 sm:$0xff]  }
 0x1de   :  { %v1780_v37 = vpop.f32.mrf.mxu1  ;;  %v6331_v56 = vld [vmem:[#allocation4 + $0x96c] ss:$48 sps:$4 sm:$0xff]   ;;  %v6329_v33 = vld [vmem:[#allocation4 + $0x968] ss:$48 sps:$4 sm:$0xff]   ;;  %v6377_v42 = vld [vmem:[#allocation4 + $0x370] ss:$48 sps:$4 sm:$0xff]  }
 0x1df   :  { %v1822_v40 = vadd.f32 %v1821_v14, %v1779_v36  ;;  %v1781_v41 = vadd.f32 %v1780_v37, %v1738_v34  ;;  %v1829_v46 = vmax.f32 %v1820_v39, 0.0  ;;  %v6334_v14 = vld [vmem:[#allocation4 + $0x90c] ss:$48 sps:$4 sm:$0xff]   ;;  %v6368_v34 = vld [vmem:[#allocation4 + $0x490] ss:$48 sps:$4 sm:$0xff]  }
 0x1e0   :  { %3603 = vmatpush1.bf16.msra.mxu0 %v6353_v18  ;;  %v6373_v36 = vld [vmem:[#allocation4 + $0x434] ss:$48 sps:$4 sm:$0xff]   ;;  %v6332_v37 = vld [vmem:[#allocation4 + $0x908] ss:$48 sps:$4 sm:$0xff]   ;;  %v6461_v16 = vld [vmem:[#allocation4 + $0x9d0] ss:$48 sps:$4 sm:$0xff]  }
 0x1e1   :  { %v1824_v44 = vadd.f32 %v1823_v43, %v1781_v41  ;;  %v1832_v45 = vmax.f32 %v1822_v40, 0.0  ;;  %3604 = vmatprep.subr.bf16.mxu0 %v6358_v21  ;;  %v6376_v39 = vld [vmem:[#allocation4 + $0x3d4] ss:$48 sps:$4 sm:$0xff]   ;;  %v6374_v40 = vld [vmem:[#allocation4 + $0x3d0] ss:$48 sps:$4 sm:$0xff]  }
 0x1e2   :  { %v6379_v41 = vld [vmem:[#allocation4 + $0x374] ss:$48 sps:$4 sm:$0xff]   ;;  %v6467_v18 = vld [vmem:[#allocation4 + $0x970] ss:$48 sps:$4 sm:$0xff]   ;;  %v6481_v21 = vld [vmem:[#allocation4 + $0x8bc] ss:$48 sps:$4 sm:$0xff]  }
 0x1e3   :  { %v1833_v47 = vmax.f32 %v1824_v44, 0.0  ;;  %v6970_v55 = vpack.c.bf16 %v1832_v45, %v1828_v48  ;;  %v6382_v43 = vld [vmem:[#allocation4 + $0x314] ss:$48 sps:$4 sm:$0xff]   ;;  %v6380_v44 = vld [vmem:[#allocation4 + $0x310] ss:$48 sps:$4 sm:$0xff]  }
 0x1e4   :  { %3605 = vmatpush1.bf16.msra.mxu0 %v6356_v20  ;;  %v6383_v45 = vld [vmem:[#allocation4 + $0x8b0] ss:$48 sps:$4 sm:$0xff]   ;;  %v6457_v13 = vld [vmem:[#allocation4 + $0xa34] ss:$48 sps:$4 sm:$0xff]  }
 0x1e5   :  { %v1837_v50 = vpack.c.bf16 %v1833_v47, %v1829_v46  ;;  %3606 = vmatprep.subr.bf16.mxu0 %v6361_v22  ;;  %v6385_v46 = vld [vmem:[#allocation4 + $0x8b4] ss:$48 sps:$4 sm:$0xff]   ;;  %v6388_v47 = vld [vmem:[#allocation4 + $0x2bc] ss:$48 sps:$4 sm:$0xff]   ;;  %v6389_v48 = vld [vmem:[#allocation4 + $0x850] ss:$48 sps:$4 sm:$0xff]  }
 0x1e6   :  { %v6473_v20 = vld [vmem:[#allocation4 + $0x910] ss:$48 sps:$4 sm:$0xff]  }
 0x1e7   :  { %2697 = vmatprep.mubr.bf16.mxu1 %v1837_v50 }
 0x1e8   :  { %2698 = vmatmul.mubr.bf16.vlgmr.msra.gmra.mxu1 %v6970_v55  ;;  %3607 = vmatpush2.bf16.msra.mxu0 %v6359_v25 }
 0x1e9   :  { %2752 = vmatpush1.bf16.msra.mxu1 %v6287_v54  ;;  %2783 = vmatprep.mubr.bf16.mxu1 %v1837_v50  ;;  %v6391_v50 = vld [vmem:[#allocation4 + $0x854] ss:$48 sps:$4 sm:$0xff]   ;;  %v6395_v54 = vld [vmem:[#allocation4 + $0x7f0] ss:$48 sps:$4 sm:$0xff]  }
 0x1ea   :  { %2753 = vmatprep.subr.bf16.mxu1 %v6292_v11  ;;  %3608 = vmatprep.subr.bf16.mxu0 %v6364_v26  ;;  %v6401_v11 = vld [vmem:[#allocation4 + $0x790] ss:$48 sps:$4 sm:$0xff]  }
 0x1ec   :  { %3609 = vmatpush2.bf16.msra.mxu0 %v6362_v29 }
 0x1ed   :  { %2754 = vmatpush1.bf16.msra.mxu1 %v6290_v58  ;;  %3610 = vmatprep.subr.bf16.mxu0 %v6367_v51  ;;  %v6403_v58 = vld [vmem:[#allocation4 + $0x794] ss:$48 sps:$4 sm:$0xff]  }
 0x1ee   :  { %2755 = vmatprep.subr.bf16.mxu1 %v6295_v59  ;;  %v6407_v59 = vld [vmem:[#allocation4 + $0x730] ss:$48 sps:$4 sm:$0xff]  }
 0x1f0   :  { %3611 = vmatpush2.bf16.msra.mxu0 %v6365_v31 }
 0x1f1   :  { %2756 = vmatpush1.bf16.msra.mxu1 %v6293_v4  ;;  %3612 = vmatprep.subr.bf16.mxu0 %v6370_v32  ;;  %v6409_v4 = vld [vmem:[#allocation4 + $0x734] ss:$48 sps:$4 sm:$0xff]  }
 0x1f2   :  { %2757 = vmatprep.subr.bf16.mxu1 %v6298_v49  ;;  %v6413_v49 = vld [vmem:[#allocation4 + $0x6d0] ss:$48 sps:$4 sm:$0xff]  }
 0x1f4   :  { %3613 = vmatpush2.bf16.msra.mxu0 %v6368_v34 }
 0x1f5   :  { %2758 = vmatpush1.bf16.msra.mxu1 %v6296_v60  ;;  %3614 = vmatprep.subr.bf16.mxu0 %v6373_v36  ;;  %v6415_v60 = vld [vmem:[#allocation4 + $0x6d4] ss:$48 sps:$4 sm:$0xff]  }
 0x1f6   :  { %2759 = vmatprep.subr.bf16.mxu1 %v6301_v61  ;;  %v6419_v61 = vld [vmem:[#allocation4 + $0x670] ss:$48 sps:$4 sm:$0xff]  }
 0x1f8   :  { %3615 = vmatpush2.bf16.msra.mxu0 %v6371_v38 }
 0x1f9   :  { %2760 = vmatpush1.bf16.msra.mxu1 %v6299_v62  ;;  %3616 = vmatprep.subr.bf16.mxu0 %v6376_v39  ;;  %v6421_v62 = vld [vmem:[#allocation4 + $0x674] ss:$48 sps:$4 sm:$0xff]  }
 0x1fa   :  { %2761 = vmatprep.subr.bf16.mxu1 %v6304_v63  ;;  %v6425_v63 = vld [vmem:[#allocation4 + $0x610] ss:$48 sps:$4 sm:$0xff]  }
 0x1fc   :  { %3617 = vmatpush2.bf16.msra.mxu0 %v6374_v40 }
 0x1fd   :  { %2762 = vmatpush1.bf16.msra.mxu1 %v6302_v0  ;;  %3618 = vmatprep.subr.bf16.mxu0 %v6379_v41  ;;  %v6427_v0 = vld [vmem:[#allocation4 + $0x614] ss:$48 sps:$4 sm:$0xff]  }
 0x1fe   :  { %2763 = vmatprep.subr.bf16.mxu1 %v6307_v35  ;;  %v6431_v35 = vld [vmem:[#allocation4 + $0xbb0] ss:$48 sps:$4 sm:$0xff]  }
 0x200   :  { %3619 = vmatpush2.bf16.msra.mxu0 %v6377_v42 }
 0x201   :  { %2764 = vmatpush1.bf16.msra.mxu1 %v6305_v1  ;;  %3620 = vmatprep.subr.bf16.mxu0 %v6382_v43  ;;  %v6433_v1 = vld [vmem:[#allocation4 + $0xbb4] ss:$48 sps:$4 sm:$0xff]   ;;  %v6386_v43 = vld [vmem:[#allocation4 + $0x2b8] ss:$48 sps:$4 sm:$0xff]  }
 0x202   :  { %2765 = vmatprep.subr.bf16.mxu1 %v6310_v2  ;;  %v6437_v2 = vld [vmem:[#allocation4 + $0xb50] ss:$48 sps:$4 sm:$0xff]  }
 0x204   :  { %3621 = vmatpush2.bf16.msra.mxu0 %v6380_v44  ;;  %v6394_v44 = vld [vmem:[#allocation4 + $0x25c] ss:$48 sps:$4 sm:$0xff]  }
 0x205   :  { %2766 = vmatpush1.bf16.msra.mxu1 %v6308_v3  ;;  %3676 = vmatprep.subr.bf16.mxu0 %v6388_v47  ;;  %v6439_v3 = vld [vmem:[#allocation4 + $0xb54] ss:$48 sps:$4 sm:$0xff]   ;;  %v6398_v47 = vld [vmem:[#allocation4 + $0x1f8] ss:$48 sps:$4 sm:$0xff]  }
 0x206   :  { %2767 = vmatprep.subr.bf16.mxu1 %v6313_v6  ;;  %v6443_v6 = vld [vmem:[#allocation4 + $0xaf0] ss:$48 sps:$4 sm:$0xff]  }
 0x209   :  { %2768 = vmatpush2.bf16.msra.mxu1 %v6311_v8  ;;  %v6445_v8 = vld [vmem:[#allocation4 + $0xaf4] ss:$48 sps:$4 sm:$0xff]  }
 0x20a   :  { %2769 = vmatprep.subr.bf16.mxu1 %v6316_v9  ;;  %v6449_v9 = vld [vmem:[#allocation4 + $0xa90] ss:$48 sps:$4 sm:$0xff]  }
 0x20d   :  { %2770 = vmatpush2.bf16.msra.mxu1 %v6314_v12  ;;  %v6455_v12 = vld [vmem:[#allocation4 + $0xa30] ss:$48 sps:$4 sm:$0xff]  }
 0x20e   :  { %2771 = vmatprep.subr.bf16.mxu1 %v6319_v15  ;;  %v6463_v15 = vld [vmem:[#allocation4 + $0x9d4] ss:$48 sps:$4 sm:$0xff]  }
 0x211   :  { %2772 = vmatpush2.bf16.msra.mxu1 %v6317_v17  ;;  %v6469_v17 = vld [vmem:[#allocation4 + $0x974] ss:$48 sps:$4 sm:$0xff]  }
 0x212   :  { %2773 = vmatprep.subr.bf16.mxu1 %v6322_v19  ;;  %v6475_v19 = vld [vmem:[#allocation4 + $0x914] ss:$48 sps:$4 sm:$0xff]  }
 0x215   :  { %2774 = vmatpush2.bf16.msra.mxu1 %v6320_v23 }
 0x216   :  { %2775 = vmatprep.subr.bf16.mxu1 %v6325_v24  ;;  %v6975_v24 = vsub.s32 1, %v6945_v52 }
 0x218   :  { %v1973_v26 = vrot.slane %v6952_v57, %v6975_v24 }
 0x219   :  { %2776 = vmatpush2.bf16.msra.mxu1 %v6323_v27  ;;  %v1969_v27 = vrot.slane %v6947_v53, %v6975_v24 }
 0x21a   :  { %2777 = vmatprep.subr.bf16.mxu1 %v6328_v28 }
 0x21d   :  { %2778 = vmatpush2.bf16.msra.mxu1 %v6326_v30 }
 0x21e   :  { %2779 = vmatprep.subr.bf16.mxu1 %v6331_v56 }
 0x221   :  { %2780 = vmatpush2.bf16.msra.mxu1 %v6329_v33 }
 0x222   :  { %2781 = vmatprep.subr.bf16.mxu1 %v6334_v14 }
 0x225   :  { %2782 = vmatpush2.bf16.msra.mxu1 %v6332_v37 }
 0x226   :  { %3633 = vmatprep.subr.bf16.mxu1 %v6385_v46  ;;  %v6400_v46 = vld [vmem:[#allocation4 + $0x1fc] ss:$48 sps:$4 sm:$0xff]  }
 0x228   :  { %2784 = vmatmul.mubr.bf16.vlgmr.msra.gmra.mxu1 %v6970_v55  ;;  %v6397_v55 = vld [vmem:[#allocation4 + $0x7f4] ss:$48 sps:$4 sm:$0xff]  }
 0x229   :  { %3634 = vmatpush1.bf16.msra.mxu1 %v6383_v45  ;;  %v6392_v45 = vld [vmem:[#allocation4 + $0x258] ss:$48 sps:$4 sm:$0xff]  }
 0x22a   :  { %3635 = vmatprep.subr.bf16.mxu1 %v6391_v50  ;;  %v6404_v50 = vld [vmem:[#allocation4 + $0x198] ss:$48 sps:$4 sm:$0xff]  }
 0x22d   :  { %3636 = vmatpush1.bf16.msra.mxu1 %v6389_v48  ;;  %v6406_v48 = vld [vmem:[#allocation4 + $0x19c] ss:$48 sps:$4 sm:$0xff]  }
 0x22e   :  { %3637 = vmatprep.subr.bf16.mxu1 %v6397_v55  ;;  %v6410_v55 = vld [vmem:[#allocation4 + $0x138] ss:$48 sps:$4 sm:$0xff]  }
 0x231   :  { %3638 = vmatpush1.bf16.msra.mxu1 %v6395_v54  ;;  %v6412_v54 = vld [vmem:[#allocation4 + $0x13c] ss:$48 sps:$4 sm:$0xff]  }
 0x232   :  { %3639 = vmatprep.subr.bf16.mxu1 %v6403_v58  ;;  %v6416_v58 = vld [vmem:[#allocation4 + $0xd8] ss:$48 sps:$4 sm:$0xff]  }
 0x235   :  { %3640 = vmatpush1.bf16.msra.mxu1 %v6401_v11  ;;  %v6418_v11 = vld [vmem:[#allocation4 + $0xdc] ss:$48 sps:$4 sm:$0xff]  }
 0x236   :  { %3641 = vmatprep.subr.bf16.mxu1 %v6409_v4  ;;  %v6422_v4 = vld [vmem:[#allocation4 + $0x78] ss:$48 sps:$4 sm:$0xff]  }
 0x239   :  { %3642 = vmatpush1.bf16.msra.mxu1 %v6407_v59  ;;  %v6424_v59 = vld [vmem:[#allocation4 + $0x7c] ss:$48 sps:$4 sm:$0xff]  }
 0x23a   :  { %3643 = vmatprep.subr.bf16.mxu1 %v6415_v60  ;;  %v6428_v60 = vld [vmem:[#allocation4 + $0x18] ss:$48 sps:$4 sm:$0xff]  }
 0x23d   :  { %3644 = vmatpush1.bf16.msra.mxu1 %v6413_v49  ;;  %v6430_v49 = vld [vmem:[#allocation4 + $0x1c] ss:$48 sps:$4 sm:$0xff]  }
 0x23e   :  { %3645 = vmatprep.subr.bf16.mxu1 %v6421_v62  ;;  %v6434_v62 = vld [vmem:[#allocation4 + $0x5b8] ss:$48 sps:$4 sm:$0xff]  }
 0x241   :  { %3646 = vmatpush1.bf16.msra.mxu1 %v6419_v61  ;;  %v6436_v61 = vld [vmem:[#allocation4 + $0x5bc] ss:$48 sps:$4 sm:$0xff]  }
 0x242   :  { %3647 = vmatprep.subr.bf16.mxu1 %v6427_v0  ;;  %v6440_v0 = vld [vmem:[#allocation4 + $0x558] ss:$48 sps:$4 sm:$0xff]  }
 0x245   :  { %3648 = vmatpush1.bf16.msra.mxu1 %v6425_v63  ;;  %v6442_v63 = vld [vmem:[#allocation4 + $0x55c] ss:$48 sps:$4 sm:$0xff]  }
 0x246   :  { %3649 = vmatprep.subr.bf16.mxu1 %v6433_v1  ;;  %v6446_v1 = vld [vmem:[#allocation4 + $0x4f8] ss:$48 sps:$4 sm:$0xff]  }
 0x247   :  { %v2656_v22 = vpop.f32.mrf.mxu0 }
 0x248   :  { %v2657_v31 = vadd.f32 %v2656_v22, %v1969_v27 }
 0x249   :  { %3650 = vmatpush2.bf16.msra.mxu1 %v6431_v35  ;;  %v2658_v23 = vpop.f32.mrf.mxu0  ;;  %v6448_v35 = vld [vmem:[#allocation4 + $0x4fc] ss:$48 sps:$4 sm:$0xff]  }
 0x24a   :  { %3651 = vmatprep.subr.bf16.mxu1 %v6439_v3  ;;  %v2659_v30 = vadd.f32 %v2658_v23, %v1973_v26 }
 0x24b   :  { %v2660_v25 = vpop.f32.mrf.mxu0 }
 0x24c   :  { %v2661_v56 = vadd.f32 %v2660_v25, %v1969_v27  ;;  %v6470_v25 = vld [vmem:[#allocation4 + $0x378] ss:$48 sps:$4 sm:$0xff]  }
 0x24d   :  { %3652 = vmatpush2.bf16.msra.mxu1 %v6437_v2  ;;  %v2662_v29 = vpop.f32.mrf.mxu0  ;;  %v6454_v2 = vld [vmem:[#allocation4 + $0x49c] ss:$48 sps:$4 sm:$0xff]  }
 0x24e   :  { %3653 = vmatprep.subr.bf16.mxu1 %v6445_v8  ;;  %v2663_v33 = vadd.f32 %v2662_v29, %v1973_v26  ;;  %v6460_v8 = vld [vmem:[#allocation4 + $0x43c] ss:$48 sps:$4 sm:$0xff]  }
 0x251   :  { %3654 = vmatpush2.bf16.msra.mxu1 %v6443_v6  ;;  %v6452_v6 = vld [vmem:[#allocation4 + $0x498] ss:$48 sps:$4 sm:$0xff]  }
 0x252   :  { %3655 = vmatprep.subr.bf16.mxu1 %v6451_v10  ;;  %v6458_v10 = vld [vmem:[#allocation4 + $0x438] ss:$48 sps:$4 sm:$0xff]  }
 0x255   :  { %3656 = vmatpush2.bf16.msra.mxu1 %v6449_v9 }
 0x256   :  { %3657 = vmatprep.subr.bf16.mxu1 %v6457_v13 }
 0x259   :  { %3658 = vmatpush2.bf16.msra.mxu1 %v6455_v12  ;;  %v6466_v12 = vld [vmem:[#allocation4 + $0x3dc] ss:$48 sps:$4 sm:$0xff]  }
 0x25a   :  { %3659 = vmatprep.subr.bf16.mxu1 %v6463_v15  ;;  %v1981_v15 = vrot.slane %v6962_v5, %v6975_v24 }
 0x25d   :  { %3660 = vmatpush2.bf16.msra.mxu1 %v6461_v16  ;;  %v6464_v16 = vld [vmem:[#allocation4 + $0x3d8] ss:$48 sps:$4 sm:$0xff]  }
 0x25e   :  { %3661 = vmatprep.subr.bf16.mxu1 %v6469_v17  ;;  %v1977_v17 = vrot.slane %v6964_v7, %v6975_v24  ;;  %v6476_v7 = vld [vmem:[#allocation4 + $0x318] ss:$48 sps:$4 sm:$0xff]  }
 0x261   :  { %3662 = vmatpush2.bf16.msra.mxu1 %v6467_v18 }
 0x262   :  { %3663 = vmatprep.subr.bf16.mxu1 %v6475_v19  ;;  %v6472_v19 = vld [vmem:[#allocation4 + $0x37c] ss:$48 sps:$4 sm:$0xff]  }
 0x265   :  { %3664 = vmatpush2.bf16.msra.mxu1 %v6473_v20 }
 0x266   :  { %3719 = vmatprep.subr.bf16.mxu1 %v6481_v21 }
 0x287   :  { %v2742_v3 = vpop.f32.mrf.mxu0 }
 0x288   :  { %v2743_v26 = vadd.f32 %v2742_v3, %v1977_v17  ;;  %v6508_v3 = vld [vmem:[#allocation4 + $0xb5c] ss:$48 sps:$4 sm:$0xff]  }
 0x289   :  { %v2744_v9 = vpop.f32.mrf.mxu0 }
 0x28a   :  { %v2745_v22 = vadd.f32 %v2744_v9, %v1981_v15  ;;  %v6506_v9 = vld [vmem:[#allocation4 + $0xb58] ss:$48 sps:$4 sm:$0xff]  }
 0x28b   :  { %v2746_v13 = vpop.f32.mrf.mxu0 }
 0x28c   :  { %v2747_v23 = vadd.f32 %v2746_v13, %v1977_v17  ;;  %v6553_v13 = vld [vmem:[#allocation4 + $0x5c4] ss:$48 sps:$4 sm:$0xff]   ;;  %v6551_v17 = vld [vmem:[#allocation4 + $0x5c0] ss:$48 sps:$4 sm:$0xff]  }
 0x28d   :  { %v2748_v20 = vpop.f32.mrf.mxu0 }
 0x28e   :  { %v2749_v29 = vadd.f32 %v2748_v20, %v1981_v15  ;;  %v6509_v15 = vld [vmem:[#allocation4 + $0xaf8] ss:$48 sps:$4 sm:$0xff]   ;;  %v6517_v20 = vld [vmem:[#allocation4 + $0xa3c] ss:$48 sps:$4 sm:$0xff]  }
 0x2a8   :  { %v2699_v28 = vpop.f32.mrf.mxu1 }
 0x2a9   :  { %v2700_v36 = vadd.f32 %v2699_v28, %v2657_v31  ;;  %v6478_v28 = vld [vmem:[#allocation4 + $0x31c] ss:$48 sps:$4 sm:$0xff]  }
 0x2aa   :  { %v2701_v51 = vpop.f32.mrf.mxu1 }
 0x2ab   :  { %v2702_v14 = vadd.f32 %v2701_v51, %v2659_v30  ;;  %v2794_v57 = vmax.f32 %v2700_v36, 0.0  ;;  %v6479_v36 = vld [vmem:[#allocation4 + $0x8b8] ss:$48 sps:$4 sm:$0xff]  }
 0x2ac   :  { %v2703_v32 = vpop.f32.mrf.mxu1 }
 0x2ad   :  { %v2704_v34 = vadd.f32 %v2703_v32, %v2661_v56  ;;  %v2795_v40 = vmax.f32 %v2702_v14, 0.0 }
 0x2ae   :  { %v2705_v37 = vpop.f32.mrf.mxu1 }
 0x2af   :  { %v2706_v38 = vadd.f32 %v2705_v37, %v2663_v33  ;;  %v2798_v39 = vmax.f32 %v2704_v34, 0.0 }
 0x2b1   :  { %v2799_v41 = vmax.f32 %v2706_v38, 0.0  ;;  %v6981_v53 = vpack.c.bf16 %v2798_v39, %v2794_v57  ;;  %v6484_v38 = vld [vmem:[#allocation4 + $0x85c] ss:$48 sps:$4 sm:$0xff]   ;;  %v6482_v39 = vld [vmem:[#allocation4 + $0x858] ss:$48 sps:$4 sm:$0xff]  }
 0x2b2   :  { %v6490_v57 = vld [vmem:[#allocation4 + $0x79c] ss:$48 sps:$4 sm:$0xff]  }
 0x2b3   :  { %v2803_v42 = vpack.c.bf16 %v2799_v41, %v2795_v40  ;;  %v6487_v40 = vld [vmem:[#allocation4 + $0x7fc] ss:$48 sps:$4 sm:$0xff]   ;;  %v6485_v41 = vld [vmem:[#allocation4 + $0x7f8] ss:$48 sps:$4 sm:$0xff]  }
 0x2b5   :  { %3622 = vmatprep.mubr.bf16.mxu0 %v2803_v42 }
 0x2b6   :  { %3623 = vmatmul.mubr.bf16.vlgmr.msra.gmra.mxu0 %v6981_v53 }
 0x2b7   :  { %3677 = vmatpush1.bf16.msra.mxu0 %v6386_v43  ;;  %3708 = vmatprep.mubr.bf16.mxu0 %v2803_v42  ;;  %v6527_v42 = vld [vmem:[#allocation4 + $0x2c0] ss:$48 sps:$4 sm:$0xff]   ;;  %v6529_v43 = vld [vmem:[#allocation4 + $0x2c4] ss:$48 sps:$4 sm:$0xff]  }
 0x2b8   :  { %3678 = vmatprep.subr.bf16.mxu0 %v6394_v44  ;;  %v6532_v44 = vld [vmem:[#allocation4 + $0x264] ss:$48 sps:$4 sm:$0xff]  }
 0x2bb   :  { %3679 = vmatpush1.bf16.msra.mxu0 %v6392_v45  ;;  %v6488_v45 = vld [vmem:[#allocation4 + $0x798] ss:$48 sps:$4 sm:$0xff]  }
 0x2bc   :  { %3680 = vmatprep.subr.bf16.mxu0 %v6400_v46  ;;  %v6493_v46 = vld [vmem:[#allocation4 + $0x73c] ss:$48 sps:$4 sm:$0xff]  }
 0x2bf   :  { %3681 = vmatpush1.bf16.msra.mxu0 %v6398_v47  ;;  %v6530_v47 = vld [vmem:[#allocation4 + $0x260] ss:$48 sps:$4 sm:$0xff]  }
 0x2c0   :  { %3682 = vmatprep.subr.bf16.mxu0 %v6406_v48  ;;  %v6491_v48 = vld [vmem:[#allocation4 + $0x738] ss:$48 sps:$4 sm:$0xff]  }
 0x2c3   :  { %3683 = vmatpush1.bf16.msra.mxu0 %v6404_v50  ;;  %v6496_v50 = vld [vmem:[#allocation4 + $0x6dc] ss:$48 sps:$4 sm:$0xff]  }
 0x2c4   :  { %3684 = vmatprep.subr.bf16.mxu0 %v6412_v54  ;;  %v6533_v54 = vld [vmem:[#allocation4 + $0x200] ss:$48 sps:$4 sm:$0xff]  }
 0x2c7   :  { %3685 = vmatpush1.bf16.msra.mxu0 %v6410_v55  ;;  %v6538_v55 = vld [vmem:[#allocation4 + $0x1a4] ss:$48 sps:$4 sm:$0xff]  }
 0x2c8   :  { %3686 = vmatprep.subr.bf16.mxu0 %v6418_v11  ;;  %v6494_v11 = vld [vmem:[#allocation4 + $0x6d8] ss:$48 sps:$4 sm:$0xff]  }
 0x2cb   :  { %3687 = vmatpush1.bf16.msra.mxu0 %v6416_v58  ;;  %v6499_v58 = vld [vmem:[#allocation4 + $0x67c] ss:$48 sps:$4 sm:$0xff]  }
 0x2cc   :  { %3688 = vmatprep.subr.bf16.mxu0 %v6424_v59  ;;  %v6536_v59 = vld [vmem:[#allocation4 + $0x1a0] ss:$48 sps:$4 sm:$0xff]  }
 0x2cf   :  { %3689 = vmatpush1.bf16.msra.mxu0 %v6422_v4  ;;  %v6541_v4 = vld [vmem:[#allocation4 + $0x144] ss:$48 sps:$4 sm:$0xff]  }
 0x2d0   :  { %3690 = vmatprep.subr.bf16.mxu0 %v6430_v49  ;;  %v6497_v49 = vld [vmem:[#allocation4 + $0x678] ss:$48 sps:$4 sm:$0xff]  }
 0x2d3   :  { %3691 = vmatpush1.bf16.msra.mxu0 %v6428_v60  ;;  %v6502_v60 = vld [vmem:[#allocation4 + $0x61c] ss:$48 sps:$4 sm:$0xff]  }
 0x2d4   :  { %3692 = vmatprep.subr.bf16.mxu0 %v6436_v61  ;;  %v6539_v61 = vld [vmem:[#allocation4 + $0x140] ss:$48 sps:$4 sm:$0xff]  }
 0x2d7   :  { %3693 = vmatpush2.bf16.msra.mxu0 %v6434_v62  ;;  %v6544_v62 = vld [vmem:[#allocation4 + $0xe4] ss:$48 sps:$4 sm:$0xff]  }
 0x2d8   :  { %3694 = vmatprep.subr.bf16.mxu0 %v6442_v63  ;;  %v6500_v63 = vld [vmem:[#allocation4 + $0x618] ss:$48 sps:$4 sm:$0xff]  }
 0x2db   :  { %3695 = vmatpush2.bf16.msra.mxu0 %v6440_v0  ;;  %v6505_v0 = vld [vmem:[#allocation4 + $0xbbc] ss:$48 sps:$4 sm:$0xff]  }
 0x2dc   :  { %3696 = vmatprep.subr.bf16.mxu0 %v6448_v35  ;;  %v6542_v35 = vld [vmem:[#allocation4 + $0xe0] ss:$48 sps:$4 sm:$0xff]  }
 0x2df   :  { %3697 = vmatpush2.bf16.msra.mxu0 %v6446_v1  ;;  %v6547_v1 = vld [vmem:[#allocation4 + $0x84] ss:$48 sps:$4 sm:$0xff]  }
 0x2e0   :  { %3698 = vmatprep.subr.bf16.mxu0 %v6454_v2  ;;  %v6503_v2 = vld [vmem:[#allocation4 + $0xbb8] ss:$48 sps:$4 sm:$0xff]  }
 0x2e3   :  { %3699 = vmatpush2.bf16.msra.mxu0 %v6452_v6  ;;  %v6545_v6 = vld [vmem:[#allocation4 + $0x80] ss:$48 sps:$4 sm:$0xff]  }
 0x2e4   :  { %3700 = vmatprep.subr.bf16.mxu0 %v6460_v8  ;;  %v6550_v8 = vld [vmem:[#allocation4 + $0x24] ss:$48 sps:$4 sm:$0xff]  }
 0x2e7   :  { %3701 = vmatpush2.bf16.msra.mxu0 %v6458_v10  ;;  %v6511_v10 = vld [vmem:[#allocation4 + $0xafc] ss:$48 sps:$4 sm:$0xff]  }
 0x2e8   :  { %v2785_v18 = vpop.f32.mrf.mxu1  ;;  %3702 = vmatprep.subr.bf16.mxu0 %v6466_v12  ;;  %v6548_v12 = vld [vmem:[#allocation4 + $0x20] ss:$48 sps:$4 sm:$0xff]  }
 0x2e9   :  { %v2786_v30 = vadd.f32 %v2785_v18, %v2743_v26  ;;  %v6556_v18 = vld [vmem:[#allocation4 + $0x564] ss:$48 sps:$4 sm:$0xff]   ;;  %v6557_v26 = vld [vmem:[#allocation4 + $0x500] ss:$48 sps:$4 sm:$0xff]  }
 0x2ea   :  { %v2787_v21 = vpop.f32.mrf.mxu1 }
 0x2eb   :  { %3703 = vmatpush2.bf16.msra.mxu0 %v6464_v16  ;;  %v2788_v5 = vadd.f32 %v2787_v21, %v2745_v22  ;;  %v2796_v14 = vmax.f32 %v2786_v30, 0.0  ;;  %v6514_v16 = vld [vmem:[#allocation4 + $0xa9c] ss:$48 sps:$4 sm:$0xff]   ;;  %v6554_v21 = vld [vmem:[#allocation4 + $0x560] ss:$48 sps:$4 sm:$0xff]  }
 0x2ec   :  { %v2789_v27 = vpop.f32.mrf.mxu1  ;;  %3704 = vmatprep.subr.bf16.mxu0 %v6472_v19  ;;  %v6512_v19 = vld [vmem:[#allocation4 + $0xa98] ss:$48 sps:$4 sm:$0xff]   ;;  %v6559_v22 = vld [vmem:[#allocation4 + $0x504] ss:$48 sps:$4 sm:$0xff]  }
 0x2ed   :  { %v2790_v51 = vadd.f32 %v2789_v27, %v2747_v23  ;;  %v2797_v32 = vmax.f32 %v2788_v5, 0.0  ;;  %v6515_v23 = vld [vmem:[#allocation4 + $0xa38] ss:$48 sps:$4 sm:$0xff]   ;;  %v6562_v27 = vld [vmem:[#allocation4 + $0x4a4] ss:$48 sps:$4 sm:$0xff]  }
 0x2ee   :  { %v2791_v56 = vpop.f32.mrf.mxu1  ;;  %v6560_v5 = vld [vmem:[#allocation4 + $0x4a0] ss:$48 sps:$4 sm:$0xff]   ;;  %v6521_v30 = vld [vmem:[#allocation4 + $0x978] ss:$48 sps:$4 sm:$0xff]  }
 0x2ef   :  { %v2792_v31 = vadd.f32 %v2791_v56, %v2749_v29  ;;  %3705 = vmatpush2.bf16.msra.mxu0 %v6470_v25  ;;  %v2800_v24 = vmax.f32 %v2790_v51, 0.0  ;;  %v6520_v25 = vld [vmem:[#allocation4 + $0x9dc] ss:$48 sps:$4 sm:$0xff]   ;;  %v6565_v51 = vld [vmem:[#allocation4 + $0x444] ss:$48 sps:$4 sm:$0xff]  }
 0x2f0   :  { %3706 = vmatprep.subr.bf16.mxu0 %v6478_v28  ;;  %v6518_v28 = vld [vmem:[#allocation4 + $0x9d8] ss:$48 sps:$4 sm:$0xff]   ;;  %v6523_v29 = vld [vmem:[#allocation4 + $0x97c] ss:$48 sps:$4 sm:$0xff]  }
 0x2f1   :  { %v2801_v33 = vmax.f32 %v2792_v31, 0.0  ;;  %v6988_v37 = vpack.c.bf16 %v2800_v24, %v2796_v14  ;;  %v6526_v56 = vld [vmem:[#allocation4 + $0x91c] ss:$48 sps:$4 sm:$0xff]   ;;  %v6563_v31 = vld [vmem:[#allocation4 + $0x440] ss:$48 sps:$4 sm:$0xff]  }
 0x2f2   :  { %v6568_v24 = vld [vmem:[#allocation4 + $0x3e4] ss:$48 sps:$4 sm:$0xff]   ;;  %v6569_v14 = vld [vmem:[#allocation4 + $0x380] ss:$48 sps:$4 sm:$0xff]  }
 0x2f3   :  { %v2805_v34 = vpack.c.bf16 %v2801_v33, %v2797_v32  ;;  %3707 = vmatpush2.bf16.msra.mxu0 %v6476_v7  ;;  %v6524_v7 = vld [vmem:[#allocation4 + $0x918] ss:$48 sps:$4 sm:$0xff]   ;;  %v6566_v32 = vld [vmem:[#allocation4 + $0x3e0] ss:$48 sps:$4 sm:$0xff]   ;;  %v6571_v33 = vld [vmem:[#allocation4 + $0x384] ss:$48 sps:$4 sm:$0xff]  }
 0x2f4   :  { %4558 = vmatprep.subr.bf16.mxu0 %v6529_v43  ;;  %v6593_v43 = vld [vmem:[#allocation4 + $0x7a0] ss:$48 sps:$4 sm:$0xff]  }
 0x2f5   :  { %3665 = vmatprep.mubr.bf16.mxu1 %v2805_v34 }
 0x2f6   :  { %3666 = vmatmul.mubr.bf16.vlgmr.msra.gmra.mxu1 %v6988_v37  ;;  %3709 = vmatmul.mubr.bf16.vlgmr.msra.gmra.mxu0 %v6981_v53  ;;  %v6535_v53 = vld [vmem:[#allocation4 + $0x204] ss:$48 sps:$4 sm:$0xff]  }
 0x2f7   :  { %3720 = vmatpush1.bf16.msra.mxu1 %v6479_v36  ;;  %3751 = vmatprep.mubr.bf16.mxu1 %v2805_v34  ;;  %v6574_v34 = vld [vmem:[#allocation4 + $0x324] ss:$48 sps:$4 sm:$0xff]   ;;  %v6572_v36 = vld [vmem:[#allocation4 + $0x320] ss:$48 sps:$4 sm:$0xff]  }
 0x2f8   :  { %3721 = vmatprep.subr.bf16.mxu1 %v6484_v38  ;;  %4559 = vmatpush1.bf16.msra.mxu0 %v6527_v42  ;;  %v6575_v38 = vld [vmem:[#allocation4 + $0x8c0] ss:$48 sps:$4 sm:$0xff]   ;;  %v6589_v42 = vld [vmem:[#allocation4 + $0x804] ss:$48 sps:$4 sm:$0xff]  }
 0x2f9   :  { %4560 = vmatprep.subr.bf16.mxu0 %v6532_v44  ;;  %v6595_v44 = vld [vmem:[#allocation4 + $0x7a4] ss:$48 sps:$4 sm:$0xff]  }
 0x2fb   :  { %3722 = vmatpush1.bf16.msra.mxu1 %v6482_v39  ;;  %v6577_v39 = vld [vmem:[#allocation4 + $0x8c4] ss:$48 sps:$4 sm:$0xff]  }
 0x2fc   :  { %3723 = vmatprep.subr.bf16.mxu1 %v6487_v40  ;;  %4561 = vmatpush1.bf16.msra.mxu0 %v6530_v47  ;;  %v6580_v40 = vld [vmem:[#allocation4 + $0x2cc] ss:$48 sps:$4 sm:$0xff]   ;;  %v6605_v47 = vld [vmem:[#allocation4 + $0x6e0] ss:$48 sps:$4 sm:$0xff]  }
 0x2fd   :  { %4562 = vmatprep.subr.bf16.mxu0 %v6535_v53  ;;  %v6607_v53 = vld [vmem:[#allocation4 + $0x6e4] ss:$48 sps:$4 sm:$0xff]  }
 0x2ff   :  { %3724 = vmatpush1.bf16.msra.mxu1 %v6485_v41  ;;  %v6581_v41 = vld [vmem:[#allocation4 + $0x860] ss:$48 sps:$4 sm:$0xff]  }
 0x300   :  { %3725 = vmatprep.subr.bf16.mxu1 %v6490_v57  ;;  %4563 = vmatpush1.bf16.msra.mxu0 %v6533_v54  ;;  %v6587_v57 = vld [vmem:[#allocation4 + $0x800] ss:$48 sps:$4 sm:$0xff]  }
 0x301   :  { %4564 = vmatprep.subr.bf16.mxu0 %v6538_v55  ;;  %v6617_v54 = vld [vmem:[#allocation4 + $0x620] ss:$48 sps:$4 sm:$0xff]   ;;  %v6619_v55 = vld [vmem:[#allocation4 + $0x624] ss:$48 sps:$4 sm:$0xff]  }
 0x303   :  { %3726 = vmatpush1.bf16.msra.mxu1 %v6488_v45  ;;  %v6599_v45 = vld [vmem:[#allocation4 + $0x740] ss:$48 sps:$4 sm:$0xff]  }
 0x304   :  { %3727 = vmatprep.subr.bf16.mxu1 %v6493_v46  ;;  %4565 = vmatpush1.bf16.msra.mxu0 %v6536_v59  ;;  %v6601_v46 = vld [vmem:[#allocation4 + $0x744] ss:$48 sps:$4 sm:$0xff]   ;;  %v6629_v59 = vld [vmem:[#allocation4 + $0xb60] ss:$48 sps:$4 sm:$0xff]  }
 0x305   :  { %4566 = vmatprep.subr.bf16.mxu0 %v6541_v4  ;;  %v6631_v4 = vld [vmem:[#allocation4 + $0xb64] ss:$48 sps:$4 sm:$0xff]  }
 0x307   :  { %3728 = vmatpush1.bf16.msra.mxu1 %v6491_v48  ;;  %v6611_v48 = vld [vmem:[#allocation4 + $0x680] ss:$48 sps:$4 sm:$0xff]  }
 0x308   :  { %3729 = vmatprep.subr.bf16.mxu1 %v6496_v50  ;;  %4567 = vmatpush1.bf16.msra.mxu0 %v6539_v61  ;;  %v6613_v50 = vld [vmem:[#allocation4 + $0x684] ss:$48 sps:$4 sm:$0xff]   ;;  %v6641_v61 = vld [vmem:[#allocation4 + $0xaa0] ss:$48 sps:$4 sm:$0xff]  }
 0x309   :  { %4568 = vmatprep.subr.bf16.mxu0 %v6544_v62  ;;  %v6643_v62 = vld [vmem:[#allocation4 + $0xaa4] ss:$48 sps:$4 sm:$0xff]  }
 0x30b   :  { %3730 = vmatpush1.bf16.msra.mxu1 %v6494_v11  ;;  %v6623_v11 = vld [vmem:[#allocation4 + $0xbc0] ss:$48 sps:$4 sm:$0xff]  }
 0x30c   :  { %3731 = vmatprep.subr.bf16.mxu1 %v6499_v58  ;;  %4569 = vmatpush1.bf16.msra.mxu0 %v6542_v35  ;;  %v6625_v58 = vld [vmem:[#allocation4 + $0xbc4] ss:$48 sps:$4 sm:$0xff]  }
 0x30d   :  { %4570 = vmatprep.subr.bf16.mxu0 %v6547_v1  ;;  %v6655_v35 = vld [vmem:[#allocation4 + $0x9e4] ss:$48 sps:$4 sm:$0xff]   ;;  %v6653_v1 = vld [vmem:[#allocation4 + $0x9e0] ss:$48 sps:$4 sm:$0xff]  }
 0x30f   :  { %3732 = vmatpush1.bf16.msra.mxu1 %v6497_v49  ;;  %v6635_v49 = vld [vmem:[#allocation4 + $0xb00] ss:$48 sps:$4 sm:$0xff]  }
 0x310   :  { %3733 = vmatprep.subr.bf16.mxu1 %v6502_v60  ;;  %4571 = vmatpush1.bf16.msra.mxu0 %v6545_v6  ;;  %v6637_v60 = vld [vmem:[#allocation4 + $0xb04] ss:$48 sps:$4 sm:$0xff]  }
 0x311   :  { %4572 = vmatprep.subr.bf16.mxu0 %v6550_v8  ;;  %v6667_v6 = vld [vmem:[#allocation4 + $0x924] ss:$48 sps:$4 sm:$0xff]   ;;  %v6665_v8 = vld [vmem:[#allocation4 + $0x920] ss:$48 sps:$4 sm:$0xff]  }
 0x313   :  { %3734 = vmatpush1.bf16.msra.mxu1 %v6500_v63  ;;  %v6647_v63 = vld [vmem:[#allocation4 + $0xa40] ss:$48 sps:$4 sm:$0xff]  }
 0x314   :  { %3735 = vmatprep.subr.bf16.mxu1 %v6505_v0  ;;  %4573 = vmatpush1.bf16.msra.mxu0 %v6548_v12  ;;  %v6649_v0 = vld [vmem:[#allocation4 + $0xa44] ss:$48 sps:$4 sm:$0xff]  }
 0x315   :  { %4574 = vmatprep.subr.bf16.mxu0 %v6553_v13  ;;  %v6994_v13 = vsub.s32 2, %v6945_v52 }
 0x317   :  { %3736 = vmatpush2.bf16.msra.mxu1 %v6503_v2  ;;  %v6661_v2 = vld [vmem:[#allocation4 + $0x984] ss:$48 sps:$4 sm:$0xff]  }
 0x318   :  { %3737 = vmatprep.subr.bf16.mxu1 %v6508_v3  ;;  %4575 = vmatpush2.bf16.msra.mxu0 %v6551_v17  ;;  %v6659_v3 = vld [vmem:[#allocation4 + $0x980] ss:$48 sps:$4 sm:$0xff]  }
 0x319   :  { %4576 = vmatprep.subr.bf16.mxu0 %v6556_v18  ;;  %v7000_v18 = vld [vmem:[#allocation7] sm:$0xff] }
 0x31b   :  { %3738 = vmatpush2.bf16.msra.mxu1 %v6506_v9  ;;  %v6673_v9 = vld [vmem:[#allocation4 + $0x8cc] ss:$48 sps:$4 sm:$0xff]  }
 0x31c   :  { %3739 = vmatprep.subr.bf16.mxu1 %v6511_v10  ;;  %4577 = vmatpush2.bf16.msra.mxu0 %v6554_v21 }
 0x31d   :  { %4578 = vmatprep.subr.bf16.mxu0 %v6559_v22 }
 0x31f   :  { %3740 = vmatpush2.bf16.msra.mxu1 %v6509_v15 }
 0x320   :  { %3741 = vmatprep.subr.bf16.mxu1 %v6514_v16  ;;  %4579 = vmatpush2.bf16.msra.mxu0 %v6557_v26  ;;  %v6996_v16 = vld [vmem:[#allocation7 + $0x8] sm:$0xff] }
 0x321   :  { %4580 = vmatprep.subr.bf16.mxu0 %v6562_v27  ;;  %v2941_v17 = vrot.slane %v6996_v16, %v6994_v13 }
 0x323   :  { %3742 = vmatpush2.bf16.msra.mxu1 %v6512_v19  ;;  %v2937_v19 = vrot.slane %v7000_v18, %v6994_v13 }
 0x324   :  { %3743 = vmatprep.subr.bf16.mxu1 %v6517_v20  ;;  %4581 = vmatpush2.bf16.msra.mxu0 %v6560_v5 }
 0x325   :  { %4582 = vmatprep.subr.bf16.mxu0 %v6565_v51 }
 0x327   :  { %3744 = vmatpush2.bf16.msra.mxu1 %v6515_v23 }
 0x328   :  { %3745 = vmatprep.subr.bf16.mxu1 %v6520_v25  ;;  %4583 = vmatpush2.bf16.msra.mxu0 %v6563_v31 }
 0x329   :  { %4584 = vmatprep.subr.bf16.mxu0 %v6568_v24 }
 0x32b   :  { %3746 = vmatpush2.bf16.msra.mxu1 %v6518_v28 }
 0x32c   :  { %3747 = vmatprep.subr.bf16.mxu1 %v6523_v29  ;;  %4585 = vmatpush2.bf16.msra.mxu0 %v6566_v32 }
 0x32d   :  { %4586 = vmatprep.subr.bf16.mxu0 %v6571_v33 }
 0x32f   :  { %3748 = vmatpush2.bf16.msra.mxu1 %v6521_v30 }
 0x330   :  { %3749 = vmatprep.subr.bf16.mxu1 %v6526_v56  ;;  %4587 = vmatpush2.bf16.msra.mxu0 %v6569_v14  ;;  %v6578_v14 = vld [vmem:[#allocation4 + $0x2c8] ss:$48 sps:$4 sm:$0xff]  }
 0x331   :  { %4588 = vmatprep.subr.bf16.mxu0 %v6574_v34 }
 0x333   :  { %3750 = vmatpush2.bf16.msra.mxu1 %v6524_v7 }
 0x334   :  { %4589 = vmatpush2.bf16.msra.mxu0 %v6572_v36  ;;  %4601 = vmatprep.subr.bf16.mxu1 %v6577_v39  ;;  %v6586_v36 = vld [vmem:[#allocation4 + $0x26c] ss:$48 sps:$4 sm:$0xff]  }
 0x335   :  { %4644 = vmatprep.subr.bf16.mxu0 %v6580_v40  ;;  %v6592_v39 = vld [vmem:[#allocation4 + $0x20c] ss:$48 sps:$4 sm:$0xff]   ;;  %v6590_v40 = vld [vmem:[#allocation4 + $0x208] ss:$48 sps:$4 sm:$0xff]  }
 0x336   :  { %3752 = vmatmul.mubr.bf16.vlgmr.msra.gmra.mxu1 %v6988_v37  ;;  %v6583_v37 = vld [vmem:[#allocation4 + $0x864] ss:$48 sps:$4 sm:$0xff]  }
 0x337   :  { %4602 = vmatpush1.bf16.msra.mxu1 %v6575_v38  ;;  %v6584_v38 = vld [vmem:[#allocation4 + $0x268] ss:$48 sps:$4 sm:$0xff]  }
 0x338   :  { %4603 = vmatprep.subr.bf16.mxu1 %v6583_v37  ;;  %v6596_v37 = vld [vmem:[#allocation4 + $0x1a8] ss:$48 sps:$4 sm:$0xff]  }
 0x33b   :  { %4604 = vmatpush1.bf16.msra.mxu1 %v6581_v41  ;;  %v6598_v41 = vld [vmem:[#allocation4 + $0x1ac] ss:$48 sps:$4 sm:$0xff]  }
 0x33c   :  { %4605 = vmatprep.subr.bf16.mxu1 %v6589_v42  ;;  %v6602_v42 = vld [vmem:[#allocation4 + $0x148] ss:$48 sps:$4 sm:$0xff]  }
 0x33f   :  { %4606 = vmatpush1.bf16.msra.mxu1 %v6587_v57  ;;  %v6604_v57 = vld [vmem:[#allocation4 + $0x14c] ss:$48 sps:$4 sm:$0xff]  }
 0x340   :  { %4607 = vmatprep.subr.bf16.mxu1 %v6595_v44  ;;  %v6608_v44 = vld [vmem:[#allocation4 + $0xe8] ss:$48 sps:$4 sm:$0xff]  }
 0x343   :  { %4608 = vmatpush1.bf16.msra.mxu1 %v6593_v43  ;;  %v6610_v43 = vld [vmem:[#allocation4 + $0xec] ss:$48 sps:$4 sm:$0xff]  }
 0x344   :  { %4609 = vmatprep.subr.bf16.mxu1 %v6601_v46  ;;  %v6614_v46 = vld [vmem:[#allocation4 + $0x88] ss:$48 sps:$4 sm:$0xff]  }
 0x347   :  { %4610 = vmatpush1.bf16.msra.mxu1 %v6599_v45  ;;  %v6616_v45 = vld [vmem:[#allocation4 + $0x8c] ss:$48 sps:$4 sm:$0xff]  }
 0x348   :  { %4611 = vmatprep.subr.bf16.mxu1 %v6607_v53  ;;  %v6620_v53 = vld [vmem:[#allocation4 + $0x28] ss:$48 sps:$4 sm:$0xff]  }
 0x34b   :  { %4612 = vmatpush1.bf16.msra.mxu1 %v6605_v47  ;;  %v6622_v47 = vld [vmem:[#allocation4 + $0x2c] ss:$48 sps:$4 sm:$0xff]  }
 0x34c   :  { %4613 = vmatprep.subr.bf16.mxu1 %v6613_v50  ;;  %v6626_v50 = vld [vmem:[#allocation4 + $0x5c8] ss:$48 sps:$4 sm:$0xff]  }
 0x34f   :  { %4614 = vmatpush1.bf16.msra.mxu1 %v6611_v48  ;;  %v6628_v48 = vld [vmem:[#allocation4 + $0x5cc] ss:$48 sps:$4 sm:$0xff]  }
 0x350   :  { %4615 = vmatprep.subr.bf16.mxu1 %v6619_v55  ;;  %v6632_v55 = vld [vmem:[#allocation4 + $0x568] ss:$48 sps:$4 sm:$0xff]  }
 0x353   :  { %4616 = vmatpush1.bf16.msra.mxu1 %v6617_v54  ;;  %v6634_v54 = vld [vmem:[#allocation4 + $0x56c] ss:$48 sps:$4 sm:$0xff]  }
 0x354   :  { %4617 = vmatprep.subr.bf16.mxu1 %v6625_v58  ;;  %v6638_v58 = vld [vmem:[#allocation4 + $0x508] ss:$48 sps:$4 sm:$0xff]  }
 0x357   :  { %4618 = vmatpush2.bf16.msra.mxu1 %v6623_v11  ;;  %v6640_v11 = vld [vmem:[#allocation4 + $0x50c] ss:$48 sps:$4 sm:$0xff]  }
 0x358   :  { %4619 = vmatprep.subr.bf16.mxu1 %v6631_v4 }
 0x35b   :  { %4620 = vmatpush2.bf16.msra.mxu1 %v6629_v59  ;;  %v6646_v59 = vld [vmem:[#allocation4 + $0x4ac] ss:$48 sps:$4 sm:$0xff]  }
 0x35c   :  { %4621 = vmatprep.subr.bf16.mxu1 %v6637_v60  ;;  %v6652_v60 = vld [vmem:[#allocation4 + $0x44c] ss:$48 sps:$4 sm:$0xff]  }
 0x35f   :  { %4622 = vmatpush2.bf16.msra.mxu1 %v6635_v49  ;;  %v6644_v49 = vld [vmem:[#allocation4 + $0x4a8] ss:$48 sps:$4 sm:$0xff]  }
 0x360   :  { %4623 = vmatprep.subr.bf16.mxu1 %v6643_v62  ;;  %v6650_v62 = vld [vmem:[#allocation4 + $0x448] ss:$48 sps:$4 sm:$0xff]  }
 0x363   :  { %4624 = vmatpush2.bf16.msra.mxu1 %v6641_v61 }
 0x364   :  { %4625 = vmatprep.subr.bf16.mxu1 %v6649_v0 }
 0x367   :  { %4626 = vmatpush2.bf16.msra.mxu1 %v6647_v63  ;;  %v6658_v63 = vld [vmem:[#allocation4 + $0x3ec] ss:$48 sps:$4 sm:$0xff]  }
 0x368   :  { %4627 = vmatprep.subr.bf16.mxu1 %v6655_v35  ;;  %v7007_v35 = vld [vmem:[#allocation7 + $0x18] sm:$0xff] }
 0x36b   :  { %4628 = vmatpush2.bf16.msra.mxu1 %v6653_v1  ;;  %v2949_v1 = vrot.slane %v7007_v35, %v6994_v13 }
 0x36c   :  { %4629 = vmatprep.subr.bf16.mxu1 %v6661_v2  ;;  %v6656_v2 = vld [vmem:[#allocation4 + $0x3e8] ss:$48 sps:$4 sm:$0xff]  }
 0x36f   :  { %4630 = vmatpush2.bf16.msra.mxu1 %v6659_v3  ;;  %v7011_v3 = vld [vmem:[#allocation7 + $0x10] sm:$0xff] }
 0x370   :  { %4631 = vmatprep.subr.bf16.mxu1 %v6667_v6  ;;  %v2945_v6 = vrot.slane %v7011_v3, %v6994_v13  ;;  %v6668_v13 = vld [vmem:[#allocation4 + $0x328] ss:$48 sps:$4 sm:$0xff]  }
 0x373   :  { %4632 = vmatpush2.bf16.msra.mxu1 %v6665_v8 }
 0x374   :  { %4687 = vmatprep.subr.bf16.mxu1 %v6673_v9  ;;  %v6664_v9 = vld [vmem:[#allocation4 + $0x38c] ss:$48 sps:$4 sm:$0xff]  }
 0x376   :  { %v3624_v10 = vpop.f32.mrf.mxu0 }
 0x377   :  { %v3625_v26 = vadd.f32 %v3624_v10, %v2937_v19 }
 0x378   :  { %v3626_v12 = vpop.f32.mrf.mxu0 }
 0x379   :  { %v3627_v23 = vadd.f32 %v3626_v12, %v2941_v17 }
 0x37a   :  { %v3628_v15 = vpop.f32.mrf.mxu0 }
 0x37b   :  { %v3629_v25 = vadd.f32 %v3628_v15, %v2937_v19  ;;  %v6662_v19 = vld [vmem:[#allocation4 + $0x388] ss:$48 sps:$4 sm:$0xff]  }
 0x37c   :  { %v3630_v21 = vpop.f32.mrf.mxu0 }
 0x37d   :  { %v3631_v28 = vadd.f32 %v3630_v21, %v2941_v17 }
 0x3b6   :  { %v3667_v20 = vpop.f32.mrf.mxu1  ;;  %v3710_v4 = vpop.f32.mrf.mxu0 }
 0x3b7   :  { %v3668_v51 = vadd.f32 %v3667_v20, %v3625_v26  ;;  %v3711_v20 = vadd.f32 %v3710_v4, %v2945_v6  ;;  %v6695_v4 = vld [vmem:[#allocation4 + $0xbc8] ss:$48 sps:$4 sm:$0xff]  }
 0x3b8   :  { %v3669_v22 = vpop.f32.mrf.mxu1  ;;  %v3712_v61 = vpop.f32.mrf.mxu0 }
 0x3b9   :  { %v3670_v29 = vadd.f32 %v3669_v22, %v3627_v23  ;;  %v3762_v32 = vmax.f32 %v3668_v51, 0.0  ;;  %v3713_v15 = vadd.f32 %v3712_v61, %v2949_v1  ;;  %v6670_v22 = vld [vmem:[#allocation4 + $0x32c] ss:$48 sps:$4 sm:$0xff]  }
 0x3ba   :  { %v3671_v27 = vpop.f32.mrf.mxu1  ;;  %v3714_v0 = vpop.f32.mrf.mxu0  ;;  %v6703_v61 = vld [vmem:[#allocation4 + $0xb0c] ss:$48 sps:$4 sm:$0xff]  }
 0x3bb   :  { %v3672_v5 = vadd.f32 %v3671_v27, %v3629_v25  ;;  %v3763_v7 = vmax.f32 %v3670_v29, 0.0  ;;  %v3715_v17 = vadd.f32 %v3714_v0, %v2945_v6  ;;  %v6704_v0 = vld [vmem:[#allocation4 + $0xaa8] ss:$48 sps:$4 sm:$0xff]   ;;  %v6712_v6 = vld [vmem:[#allocation4 + $0x9ec] ss:$48 sps:$4 sm:$0xff]  }
 0x3bc   :  { %v3673_v30 = vpop.f32.mrf.mxu1  ;;  %v3716_v10 = vpop.f32.mrf.mxu0 }
 0x3bd   :  { %v3674_v56 = vadd.f32 %v3673_v30, %v3631_v28  ;;  %v3766_v31 = vmax.f32 %v3672_v5, 0.0  ;;  %v3717_v23 = vadd.f32 %v3716_v10, %v2949_v1  ;;  %v6709_v1 = vld [vmem:[#allocation4 + $0xa4c] ss:$48 sps:$4 sm:$0xff]   ;;  %v6713_v10 = vld [vmem:[#allocation4 + $0x988] ss:$48 sps:$4 sm:$0xff]  }
 0x3bf   :  { %v3767_v24 = vmax.f32 %v3674_v56, 0.0  ;;  %v7004_v34 = vpack.c.bf16 %v3766_v31, %v3762_v32  ;;  %v6676_v32 = vld [vmem:[#allocation4 + $0x86c] ss:$48 sps:$4 sm:$0xff]  }
 0x3c1   :  { %v3771_v33 = vpack.c.bf16 %v3767_v24, %v3763_v7  ;;  %v6671_v7 = vld [vmem:[#allocation4 + $0x8c8] ss:$48 sps:$4 sm:$0xff]  }
 0x3c3   :  { %4590 = vmatprep.mubr.bf16.mxu0 %v3771_v33 }
 0x3c4   :  { %4591 = vmatmul.mubr.bf16.vlgmr.msra.gmra.mxu0 %v7004_v34 }
 0x3c5   :  { %4645 = vmatpush1.bf16.msra.mxu0 %v6578_v14  ;;  %4676 = vmatprep.mubr.bf16.mxu0 %v3771_v33  ;;  %v6674_v33 = vld [vmem:[#allocation4 + $0x868] ss:$48 sps:$4 sm:$0xff]   ;;  %v6679_v14 = vld [vmem:[#allocation4 + $0x80c] ss:$48 sps:$4 sm:$0xff]  }
 0x3c6   :  { %4646 = vmatprep.subr.bf16.mxu0 %v6586_v36  ;;  %v6677_v36 = vld [vmem:[#allocation4 + $0x808] ss:$48 sps:$4 sm:$0xff]  }
 0x3c9   :  { %4647 = vmatpush1.bf16.msra.mxu0 %v6584_v38  ;;  %v6682_v38 = vld [vmem:[#allocation4 + $0x7ac] ss:$48 sps:$4 sm:$0xff]  }
 0x3ca   :  { %4648 = vmatprep.subr.bf16.mxu0 %v6592_v39  ;;  %v6719_v39 = vld [vmem:[#allocation6 + $0x78] sm:$0xff]  }
 0x3cd   :  { %4649 = vmatpush1.bf16.msra.mxu0 %v6590_v40  ;;  %v6720_v40 = vld [vmem:[#allocation6 + $0x38] sm:$0xff]  }
 0x3ce   :  { %4650 = vmatprep.subr.bf16.mxu0 %v6598_v41  ;;  %v6721_v41 = vld [vmem:[#allocation6 + $0x70] sm:$0xff]  }
 0x3d1   :  { %4651 = vmatpush1.bf16.msra.mxu0 %v6596_v37  ;;  %v6680_v37 = vld [vmem:[#allocation4 + $0x7a8] ss:$48 sps:$4 sm:$0xff]  }
 0x3d2   :  { %4652 = vmatprep.subr.bf16.mxu0 %v6604_v57  ;;  %v6685_v57 = vld [vmem:[#allocation4 + $0x74c] ss:$48 sps:$4 sm:$0xff]  }
 0x3d5   :  { %4653 = vmatpush1.bf16.msra.mxu0 %v6602_v42  ;;  %v6722_v42 = vld [vmem:[#allocation6 + $0x30] sm:$0xff]  }
 0x3d6   :  { %4654 = vmatprep.subr.bf16.mxu0 %v6610_v43  ;;  %v6683_v43 = vld [vmem:[#allocation4 + $0x748] ss:$48 sps:$4 sm:$0xff]  }
 0x3d9   :  { %4655 = vmatpush1.bf16.msra.mxu0 %v6608_v44  ;;  %v6688_v44 = vld [vmem:[#allocation4 + $0x6ec] ss:$48 sps:$4 sm:$0xff]  }
 0x3da   :  { %4656 = vmatprep.subr.bf16.mxu0 %v6616_v45  ;;  %v6724_v45 = vld [vmem:[#allocation6 + $0x28] sm:$0xff]  }
 0x3dd   :  { %4657 = vmatpush1.bf16.msra.mxu0 %v6614_v46  ;;  %v6725_v46 = vld [vmem:[#allocation6 + $0x60] sm:$0xff]  }
 0x3de   :  { %4658 = vmatprep.subr.bf16.mxu0 %v6622_v47  ;;  %v6686_v47 = vld [vmem:[#allocation4 + $0x6e8] ss:$48 sps:$4 sm:$0xff]  }
 0x3e1   :  { %4659 = vmatpush1.bf16.msra.mxu0 %v6620_v53  ;;  %v6691_v53 = vld [vmem:[#allocation4 + $0x68c] ss:$48 sps:$4 sm:$0xff]  }
 0x3e2   :  { %4660 = vmatprep.subr.bf16.mxu0 %v6628_v48  ;;  %v6726_v48 = vld [vmem:[#allocation6 + $0x20] sm:$0xff]  }
 0x3e5   :  { %4661 = vmatpush2.bf16.msra.mxu0 %v6626_v50  ;;  %v6727_v50 = vld [vmem:[#allocation6 + $0x58] sm:$0xff]  }
 0x3e6   :  { %4662 = vmatprep.subr.bf16.mxu0 %v6634_v54  ;;  %v6689_v54 = vld [vmem:[#allocation4 + $0x688] ss:$48 sps:$4 sm:$0xff]  }
 0x3e9   :  { %4663 = vmatpush2.bf16.msra.mxu0 %v6632_v55  ;;  %v6694_v55 = vld [vmem:[#allocation4 + $0x62c] ss:$48 sps:$4 sm:$0xff]  }
 0x3ea   :  { %4664 = vmatprep.subr.bf16.mxu0 %v6640_v11  ;;  %v6728_v11 = vld [vmem:[#allocation6 + $0x18] sm:$0xff]  }
 0x3ed   :  { %4665 = vmatpush2.bf16.msra.mxu0 %v6638_v58  ;;  %v6692_v58 = vld [vmem:[#allocation4 + $0x628] ss:$48 sps:$4 sm:$0xff]  }
 0x3ee   :  { %4666 = vmatprep.subr.bf16.mxu0 %v6646_v59  ;;  %v6697_v59 = vld [vmem:[#allocation4 + $0xbcc] ss:$48 sps:$4 sm:$0xff]  }
 0x3f1   :  { %4667 = vmatpush2.bf16.msra.mxu0 %v6644_v49  ;;  %v6700_v49 = vld [vmem:[#allocation4 + $0xb6c] ss:$48 sps:$4 sm:$0xff]  }
 0x3f2   :  { %4668 = vmatprep.subr.bf16.mxu0 %v6652_v60  ;;  %v6698_v60 = vld [vmem:[#allocation4 + $0xb68] ss:$48 sps:$4 sm:$0xff]  }
 0x3f5   :  { %4669 = vmatpush2.bf16.msra.mxu0 %v6650_v62  ;;  %v6701_v62 = vld [vmem:[#allocation4 + $0xb08] ss:$48 sps:$4 sm:$0xff]  }
 0x3f6   :  { %v3753_v8 = vpop.f32.mrf.mxu1  ;;  %4670 = vmatprep.subr.bf16.mxu0 %v6658_v63  ;;  %v6706_v63 = vld [vmem:[#allocation4 + $0xaac] ss:$48 sps:$4 sm:$0xff]  }
 0x3f7   :  { %v3754_v27 = vadd.f32 %v3753_v8, %v3711_v20  ;;  %v6710_v8 = vld [vmem:[#allocation4 + $0x9e8] ss:$48 sps:$4 sm:$0xff]  }
 0x3f8   :  { %v3755_v12 = vpop.f32.mrf.mxu1  ;;  %v6731_v20 = vld [vmem:[#allocation6 + $0x48] sm:$0xff]  }
 0x3f9   :  { %4671 = vmatpush2.bf16.msra.mxu0 %v6656_v2  ;;  %v3756_v25 = vadd.f32 %v3755_v12, %v3713_v15  ;;  %v3764_v56 = vmax.f32 %v3754_v27, 0.0  ;;  %v6707_v2 = vld [vmem:[#allocation4 + $0xa48] ss:$48 sps:$4 sm:$0xff]   ;;  %v6718_v12 = vld [vmem:[#allocation4 + $0x92c] ss:$48 sps:$4 sm:$0xff]   ;;  %v6737_v27 = vld [vmem:[#allocation6 + $0xf0] sm:$0xff]  }
 0x3fa   :  { %v3757_v21 = vpop.f32.mrf.mxu1  ;;  %4672 = vmatprep.subr.bf16.mxu0 %v6664_v9  ;;  %v6715_v9 = vld [vmem:[#allocation4 + $0x98c] ss:$48 sps:$4 sm:$0xff]   ;;  %v6716_v15 = vld [vmem:[#allocation4 + $0x928] ss:$48 sps:$4 sm:$0xff]  }
 0x3fb   :  { %v3758_v26 = vadd.f32 %v3757_v21, %v3715_v17  ;;  %v3765_v51 = vmax.f32 %v3756_v25, 0.0  ;;  %v6729_v17 = vld [vmem:[#allocation6 + $0x50] sm:$0xff]   ;;  %v6732_v21 = vld [vmem:[#allocation6 + $0x8] sm:$0xff]   ;;  %v6735_v25 = vld [vmem:[#allocation6 + $0xf8] sm:$0xff]  }
 0x3fc   :  { %v3759_v28 = vpop.f32.mrf.mxu1 }
 0x3fd   :  { %v3760_v29 = vadd.f32 %v3759_v28, %v3717_v23  ;;  %4673 = vmatpush2.bf16.msra.mxu0 %v6662_v19  ;;  %v3768_v5 = vmax.f32 %v3758_v26, 0.0  ;;  %v6730_v19 = vld [vmem:[#allocation6 + $0x10] sm:$0xff]   ;;  %v6734_v23 = vld [vmem:[#allocation6] sm:$0xff]   ;;  %v6736_v26 = vld [vmem:[#allocation6 + $0xb8] sm:$0xff]  }
 0x3fe   :  { %4674 = vmatprep.subr.bf16.mxu0 %v6670_v22  ;;  %v6733_v22 = vld [vmem:[#allocation6 + $0x40] sm:$0xff]   ;;  %v6738_v28 = vld [vmem:[#allocation6 + $0xb0] sm:$0xff]  }
 0x3ff   :  { %v3769_v30 = vmax.f32 %v3760_v29, 0.0  ;;  %v7015_v24 = vpack.c.bf16 %v3768_v5, %v3764_v56  ;;  %v6739_v29 = vld [vmem:[#allocation6 + $0xe8] sm:$0xff]   ;;  %v6741_v5 = vld [vmem:[#allocation6 + $0xe0] sm:$0xff]   ;;  %v6744_v56 = vld [vmem:[#allocation6 + $0x98] sm:$0xff]  }
 0x401   :  { %v3773_v31 = vpack.c.bf16 %v3769_v30, %v3765_v51  ;;  %4675 = vmatpush2.bf16.msra.mxu0 %v6668_v13  ;;  %v6740_v13 = vld [vmem:[#allocation6 + $0xa8] sm:$0xff]   ;;  %v6742_v51 = vld [vmem:[#allocation6 + $0xa0] sm:$0xff]   ;;  %v6743_v30 = vld [vmem:[#allocation6 + $0xd8] sm:$0xff]  }
 0x402   :  { %5742 = vmatprep.subr.bf16.mxu0 %v6719_v39  ;;  %v3904_v39 = vsub.s32 3, %v6945_v52 }
 0x403   :  { %4633 = vmatprep.mubr.bf16.mxu1 %v3773_v31 }
 0x404   :  { %4634 = vmatmul.mubr.bf16.vlgmr.msra.gmra.mxu1 %v7015_v24  ;;  %4677 = vmatmul.mubr.bf16.vlgmr.msra.gmra.mxu0 %v7004_v34  ;;  %v6723_v34 = vld [vmem:[#allocation6 + $0x68] sm:$0xff]  }
 0x405   :  { %4688 = vmatpush1.bf16.msra.mxu1 %v6671_v7  ;;  %4719 = vmatprep.mubr.bf16.mxu1 %v3773_v31  ;;  %v6745_v31 = vld [vmem:[#allocation6 + $0xd0] sm:$0xff]  }
 0x406   :  { %4689 = vmatprep.subr.bf16.mxu1 %v6676_v32  ;;  %5743 = vmatpush3.bf16.msra.mxu0 %v6720_v40  ;;  %v6746_v7 = vld [vmem:[#allocation6 + $0x90] sm:$0xff]   ;;  %v6748_v32 = vld [vmem:[#allocation6 + $0x88] sm:$0xff]  }
 0x407   :  { %5744 = vmatprep.subr.bf16.mxu0 %v6721_v41  ;;  %v3909_v41 = vrot.slane %v6996_v16, %v3904_v39 }
 0x409   :  { %4690 = vmatpush1.bf16.msra.mxu1 %v6674_v33  ;;  %v6749_v33 = vld [vmem:[#allocation6 + $0xc0] sm:$0xff]  }
 0x40a   :  { %4691 = vmatprep.subr.bf16.mxu1 %v6679_v14  ;;  %5745 = vmatpush3.bf16.msra.mxu0 %v6722_v42  ;;  %v6750_v14 = vld [vmem:[#allocation6 + $0x80] sm:$0xff]  }
 0x40b   :  { %5746 = vmatprep.subr.bf16.mxu0 %v6723_v34 }
 0x40d   :  { %4692 = vmatpush1.bf16.msra.mxu1 %v6677_v36 }
 0x40e   :  { %4693 = vmatprep.subr.bf16.mxu1 %v6682_v38  ;;  %5747 = vmatpush3.bf16.msra.mxu0 %v6724_v45 }
 0x40f   :  { %5748 = vmatprep.subr.bf16.mxu0 %v6725_v46 }
 0x411   :  { %4694 = vmatpush1.bf16.msra.mxu1 %v6680_v37  ;;  %v3905_v37 = vrot.slane %v7000_v18, %v3904_v39 }
 0x412   :  { %4695 = vmatprep.subr.bf16.mxu1 %v6685_v57  ;;  %5749 = vmatpush3.bf16.msra.mxu0 %v6726_v48 }
 0x413   :  { %5750 = vmatprep.subr.bf16.mxu0 %v6727_v50 }
 0x415   :  { %4696 = vmatpush1.bf16.msra.mxu1 %v6683_v43 }
 0x416   :  { %4697 = vmatprep.subr.bf16.mxu1 %v6688_v44  ;;  %5751 = vmatpush3.bf16.msra.mxu0 %v6728_v11 }
 0x417   :  { %5752 = vmatprep.subr.bf16.mxu0 %v6729_v17 }
 0x419   :  { %4698 = vmatpush1.bf16.msra.mxu1 %v6686_v47 }
 0x41a   :  { %4699 = vmatprep.subr.bf16.mxu1 %v6691_v53  ;;  %5753 = vmatpush3.bf16.msra.mxu0 %v6730_v19 }
 0x41b   :  { %5754 = vmatprep.subr.bf16.mxu0 %v6731_v20 }
 0x41d   :  { %4700 = vmatpush1.bf16.msra.mxu1 %v6689_v54 }
 0x41e   :  { %4701 = vmatprep.subr.bf16.mxu1 %v6694_v55  ;;  %5755 = vmatpush3.bf16.msra.mxu0 %v6732_v21 }
 0x41f   :  { %5756 = vmatprep.subr.bf16.mxu0 %v6733_v22 }
 0x421   :  { %4702 = vmatpush1.bf16.msra.mxu1 %v6692_v58 }
 0x422   :  { %4703 = vmatprep.subr.bf16.mxu1 %v6697_v59  ;;  %5757 = vmatpush3.bf16.msra.mxu0 %v6734_v23 }
 0x425   :  { %4704 = vmatpush2.bf16.msra.mxu1 %v6695_v4 }
 0x426   :  { %4705 = vmatprep.subr.bf16.mxu1 %v6700_v49 }
 0x429   :  { %4706 = vmatpush2.bf16.msra.mxu1 %v6698_v60 }
 0x42a   :  { %4707 = vmatprep.subr.bf16.mxu1 %v6703_v61 }
 0x42d   :  { %4708 = vmatpush2.bf16.msra.mxu1 %v6701_v62 }
 0x42e   :  { %4709 = vmatprep.subr.bf16.mxu1 %v6706_v63  ;;  %v3917_v63 = vrot.slane %v7007_v35, %v3904_v39 }
 0x431   :  { %4710 = vmatpush2.bf16.msra.mxu1 %v6704_v0  ;;  %v3913_v0 = vrot.slane %v7011_v3, %v3904_v39 }
 0x432   :  { %4711 = vmatprep.subr.bf16.mxu1 %v6709_v1 }
 0x435   :  { %4712 = vmatpush2.bf16.msra.mxu1 %v6707_v2 }
 0x436   :  { %4713 = vmatprep.subr.bf16.mxu1 %v6712_v6 }
 0x439   :  { %4714 = vmatpush2.bf16.msra.mxu1 %v6710_v8 }
 0x43a   :  { %4715 = vmatprep.subr.bf16.mxu1 %v6715_v9 }
 0x43d   :  { %4716 = vmatpush2.bf16.msra.mxu1 %v6713_v10 }
 0x43e   :  { %4717 = vmatprep.subr.bf16.mxu1 %v6718_v12 }
 0x441   :  { %4718 = vmatpush2.bf16.msra.mxu1 %v6716_v15 }
 0x442   :  { %5764 = vmatprep.subr.bf16.mxu1 %v6735_v25 }
 0x444   :  { %4720 = vmatmul.mubr.bf16.vlgmr.msra.gmra.mxu1 %v7015_v24  ;;  %v6747_v24 = vld [vmem:[#allocation6 + $0xc8] sm:$0xff]  }
 0x445   :  { %5765 = vmatpush3.bf16.msra.mxu1 %v6736_v26 }
 0x446   :  { %5766 = vmatprep.subr.bf16.mxu1 %v6737_v27 }
 0x449   :  { %5767 = vmatpush3.bf16.msra.mxu1 %v6738_v28 }
 0x44a   :  { %5768 = vmatprep.subr.bf16.mxu1 %v6739_v29 }
 0x44d   :  { %5769 = vmatpush3.bf16.msra.mxu1 %v6740_v13  ;;  %v4808_v13 = vsub.s32 4, %v6945_v52 }
 0x44e   :  { %5770 = vmatprep.subr.bf16.mxu1 %v6741_v5 }
 0x451   :  { %5771 = vmatpush3.bf16.msra.mxu1 %v6742_v51  ;;  %v4809_v51 = vrot.slane %v7000_v18, %v4808_v13 }
 0x452   :  { %5772 = vmatprep.subr.bf16.mxu1 %v6743_v30 }
 0x455   :  { %5773 = vmatpush3.bf16.msra.mxu1 %v6744_v56 }
 0x456   :  { %5774 = vmatprep.subr.bf16.mxu1 %v6745_v31 }
 0x459   :  { %5775 = vmatpush3.bf16.msra.mxu1 %v6746_v7 }
 0x45a   :  { %5776 = vmatprep.subr.bf16.mxu1 %v6747_v24 }
 0x45d   :  { %5777 = vmatpush3.bf16.msra.mxu1 %v6748_v32 }
 0x45e   :  { %5778 = vmatprep.subr.bf16.mxu1 %v6749_v33 }
 0x461   :  { %5779 = vmatpush3.bf16.msra.mxu1 %v6750_v14 }
 0x484   :  { %v4592_v36 = vpop.f32.mrf.mxu0 }
 0x485   :  { %v4593_v45 = vadd.f32 %v4592_v36, %v3905_v37 }
 0x486   :  { %v4594_v38 = vpop.f32.mrf.mxu0 }
 0x487   :  { %v4595_v43 = vadd.f32 %v4594_v38, %v3909_v41 }
 0x488   :  { %v4596_v40 = vpop.f32.mrf.mxu0 }
 0x489   :  { %v4597_v44 = vadd.f32 %v4596_v40, %v3905_v37 }
 0x48a   :  { %v4598_v42 = vpop.f32.mrf.mxu0 }
 0x48b   :  { %v4599_v47 = vadd.f32 %v4598_v42, %v3909_v41 }
 0x4c4   :  { %v4635_v57 = vpop.f32.mrf.mxu1  ;;  %v4678_v60 = vpop.f32.mrf.mxu0 }
 0x4c5   :  { %v4636_v50 = vadd.f32 %v4635_v57, %v4593_v45  ;;  %v4679_v10 = vadd.f32 %v4678_v60, %v3913_v0 }
 0x4c6   :  { %v4637_v34 = vpop.f32.mrf.mxu1  ;;  %v4680_v61 = vpop.f32.mrf.mxu0 }
 0x4c7   :  { %v4638_v53 = vadd.f32 %v4637_v34, %v4595_v43  ;;  %v4730_v4 = vmax.f32 %v4636_v50, 0.0  ;;  %v4681_v8 = vadd.f32 %v4680_v61, %v3917_v63 }
 0x4c8   :  { %v4639_v46 = vpop.f32.mrf.mxu1  ;;  %v4682_v62 = vpop.f32.mrf.mxu0 }
 0x4c9   :  { %v4640_v48 = vadd.f32 %v4639_v46, %v4597_v44  ;;  %v4731_v58 = vmax.f32 %v4638_v53, 0.0  ;;  %v4683_v9 = vadd.f32 %v4682_v62, %v3913_v0 }
 0x4ca   :  { %v4641_v54 = vpop.f32.mrf.mxu1  ;;  %v4684_v2 = vpop.f32.mrf.mxu0 }
 0x4cb   :  { %v4642_v55 = vadd.f32 %v4641_v54, %v4599_v47  ;;  %v4734_v11 = vmax.f32 %v4640_v48, 0.0  ;;  %v4685_v15 = vadd.f32 %v4684_v2, %v3917_v63 }
 0x4cd   :  { %v4735_v59 = vmax.f32 %v4642_v55, 0.0  ;;  %v4738_v49 = vpack.c.bf16 %v4734_v11, %v4730_v4 }
 0x4cf   :  { %v4739_v16 = vpack.c.bf16 %v4735_v59, %v4731_v58 }
 0x4d1   :  { %5034 = vmatprep.mubr.bf16.mxu0 %v4739_v16 }
 0x4d2   :  { %5035 = vmatmul.mubr.bf16.vlgmr.msra.gmra.mxu0 %v4738_v49 }
 0x504   :  { %v4721_v1 = vpop.f32.mrf.mxu1 }
 0x505   :  { %v4722_v20 = vadd.f32 %v4721_v1, %v4679_v10 }
 0x506   :  { %v4723_v6 = vpop.f32.mrf.mxu1 }
 0x507   :  { %v4724_v17 = vadd.f32 %v4723_v6, %v4681_v8  ;;  %v4732_v27 = vmax.f32 %v4722_v20, 0.0 }
 0x508   :  { %v4725_v12 = vpop.f32.mrf.mxu1 }
 0x509   :  { %v4726_v19 = vadd.f32 %v4725_v12, %v4683_v9  ;;  %v4733_v25 = vmax.f32 %v4724_v17, 0.0 }
 0x50a   :  { %v4727_v21 = vpop.f32.mrf.mxu1 }
 0x50b   :  { %v4728_v22 = vadd.f32 %v4727_v21, %v4685_v15  ;;  %v4736_v23 = vmax.f32 %v4726_v19, 0.0 }
 0x50d   :  { %v4737_v26 = vmax.f32 %v4728_v22, 0.0  ;;  %v4740_v28 = vpack.c.bf16 %v4736_v23, %v4732_v27 }
 0x50f   :  { %v4741_v35 = vpack.c.bf16 %v4737_v26, %v4733_v25 }
 0x511   :  { %5075 = vmatprep.mubr.bf16.mxu1 %v4741_v35 }
 0x512   :  { %5076 = vmatmul.mubr.bf16.vlgmr.msra.gmra.mxu1 %v4740_v28 }
 0x592   :  { %v5758_v3 = vpop.f32.mrf.mxu0 }
 0x594   :  { %v5759_v29 = vpop.f32.mrf.mxu0 }
 0x595   :  { %v5760_v30 = vadd.f32 %v5759_v29, %v5758_v3 }
 0x596   :  { %v5761_v5 = vpop.f32.mrf.mxu0 }
 0x597   :  { %v5037_v24 = vadd.f32 %v5760_v30, %v4809_v51 }
 0x598   :  { %v5762_v56 = vpop.f32.mrf.mxu0 }
 0x599   :  { %v5763_v32 = vadd.f32 %v5762_v56, %v5761_v5 }
 0x59b   :  { %v5040_v39 = vadd.f32 %v5763_v32, %v4809_v51 }
 0x5d2   :  { %v5780_v31 = vpop.f32.mrf.mxu1 }
 0x5d4   :  { %v5781_v7 = vpop.f32.mrf.mxu1 }
 0x5d5   :  { %v5782_v33 = vadd.f32 %v5781_v7, %v5780_v31 }
 0x5d6   :  { %v5783_v14 = vpop.f32.mrf.mxu1 }
 0x5d7   :  { %v5078_v36 = vadd.f32 %v5782_v33, %v5037_v24 }
 0x5d8   :  { %v5784_v38 = vpop.f32.mrf.mxu1 }
 0x5d9   :  { %v5084_v40 = vmax.f32 %v5078_v36, 0.0  ;;  %v5785_v41 = vadd.f32 %v5784_v38, %v5783_v14 }
 0x5db   :  { %5086 = vst [vmem:[%s7038_s5] sm:$0xff] %v5084_v40  ;;  %v5081_v52 = vadd.f32 %v5785_v41, %v5040_v39 }
 0x5dd   :  { %v5085_v37 = vmax.f32 %v5081_v52, 0.0 }
 0x5df   :  { %5087 = vst [vmem:[%s7038_s5 + $0x8] sm:$0xff] %v5085_v37 }
 0x5e0   :  { %5092 = vsyncpa [#allocation3], 1 }
 0x5e1   :  { %5093 = vsyncpa [#allocation5], 1 }
 0x5e2   :  { %5094 = vsyncpa [#allocation8], 1 }

// kernel: _forward_jit.1
= control target key start
LH: loop header
LB: loop body
LE: loop exit
PB: predicated region body
PF: predicated region fallthrough
CT: control target
= control target key end

     0   :  { %10 = vsyncpa [#allocation3], 0  ;;  %s7033_s0 = inlined_call_operand.vmem [shape: bf16[16,896], index: 0, kind: input, shape index: {}]   ;;  %s7034_s1 = inlined_call_operand.hbm [shape: bf16[896,512], index: 1, kind: input, shape index: {}]   ;;  %s7035_s2 = inlined_call_operand.hbm [shape: bf16[512,1536], index: 2, kind: input, shape index: {}]   ;;  %s7036_s3 = inlined_call_operand.hbm [shape: bf16[512,128], index: 3, kind: input, shape index: {}]   ;;  %s7037_s4 = inlined_call_operand.hbm [shape: f32[8,512], index: 4, kind: input, shape index: {}]   ;;  %s7038_s5 = inlined_call_operand.vmem [shape: f32[16,128], index: 5, kind: output, shape index: {}]  }
   0x1   :  { %11 = vsyncpa [#allocation5], 0 }
   0x2   :  { %12 = vsyncpa [#allocation8], 0  ;;  %s6843_s18 = smov [#allocation4]  }
   0x3   :  { %s32_s19 = sshll.u32 %s6843_s18, 4  ;;  %s33_s19 = int_to_ptr.vmem [resolvable:$true] %s32_s19 }
   0x4   :  { %s6765_s20 = scalar_lea.vmem %s33_s19, 49152  ;;  %p6770_p1 = scmp.lt.s32.totalorder %s33_s19, %s33_s19 }
   0x5   :  { %p6766_p0 = scmp.ne.s32.totalorder %s33_s19, %s6765_s20  ;;  %p6771_p2 = scmp.lt.s32.totalorder %s6765_s20, %s6765_s20 }
   0x7   :  { %p6772_p3 = por %p6771_p2, %p6770_p1 }
   0x9   :  { %p6773_p4 = pnand %p6772_p3, %p6766_p0 }
   0xb   :  { %6776 = shalt.err (!%p6773_p4)
}
   0xc   :  { %s6844_s21 = smov 768   ;;  %s6845_s22 = smov 48  }
   0xd   :  { %38 = dma.hbm_to_vmem [thread:$0]  %s7035_s2, 49152, %s33_s19, [#allocation5], %s6844_s21, %s6844_s21, %s6845_s22  }
   0xe   :  { %s6846_s25 = smov [#allocation2]  }
   0xf   :  { %s20_s26 = sshll.u32 %s6846_s25, 4  ;;  %s21_s26 = int_to_ptr.vmem [resolvable:$true] %s20_s26 }
  0x10   :  { %s6785_s27 = scalar_lea.vmem %s21_s26, 28672  ;;  %p6790_p6 = scmp.lt.s32.totalorder %s21_s26, %s21_s26 }
  0x11   :  { %p6786_p5 = scmp.ne.s32.totalorder %s21_s26, %s6785_s27  ;;  %p6791_p7 = scmp.lt.s32.totalorder %s6785_s27, %s6785_s27 }
  0x13   :  { %p6792_p8 = por %p6791_p7, %p6790_p6 }
  0x15   :  { %p6793_p9 = pnand %p6792_p8, %p6786_p5 }
  0x17   :  { %6796 = shalt.err (!%p6793_p9)
}
  0x18   :  { %s6847_s28 = smov 256   ;;  %s6848_s29 = smov 16  }
  0x19   :  { %26 = dma.hbm_to_vmem [thread:$0]  %s7034_s1, 28672, %s21_s26, [#allocation3], %s6847_s28, %s6847_s28, %s6848_s29  }
  0x1a   :  { %s6849_s7 = smov [#allocation6]  }
  0x1b   :  { %s44_s8 = sshll.u32 %s6849_s7, 4  ;;  %s45_s8 = int_to_ptr.vmem [resolvable:$true] %s44_s8 }
  0x1c   :  { %s6805_s2 = scalar_lea.vmem %s45_s8, 4096  ;;  %p6810_p11 = scmp.lt.s32.totalorder %s45_s8, %s45_s8 }
  0x1d   :  { %p6806_p10 = scmp.ne.s32.totalorder %s45_s8, %s6805_s2  ;;  %p6811_p12 = scmp.lt.s32.totalorder %s6805_s2, %s6805_s2 }
  0x1f   :  { %p6812_p13 = por %p6811_p12, %p6810_p11 }
  0x21   :  { %p6813_p0 = pnand %p6812_p13, %p6806_p10 }
  0x23   :  { %6816 = shalt.err (!%p6813_p0)
}
  0x24   :  { %s6850_s9 = smov 64   ;;  %s6851_s10 = smov 4  }
  0x25   :  { %50 = dma.hbm_to_vmem [thread:$0]  %s7036_s3, 4096, %s45_s8, [#allocation5], %s6850_s9, %s6850_s9, %s6851_s10  }
  0x26   :  { %s6852_s13 = smov [#allocation7]  }
  0x27   :  { %s57_s14 = sshll.u32 %s6852_s13, 4  ;;  %s58_s14 = int_to_ptr.vmem [resolvable:$true] %s57_s14 }
  0x28   :  { %s6825_s1 = scalar_lea.vmem %s58_s14, 512  ;;  %p6830_p2 = scmp.lt.s32.totalorder %s58_s14, %s58_s14 }
  0x29   :  { %p6826_p1 = scmp.ne.s32.totalorder %s58_s14, %s6825_s1  ;;  %p6831_p3 = scmp.lt.s32.totalorder %s6825_s1, %s6825_s1 }
  0x2b   :  { %p6832_p4 = por %p6831_p3, %p6830_p2 }
  0x2d   :  { %p6833_p5 = pnand %p6832_p4, %p6826_p1 }
  0x2f   :  { %6836 = shalt.err (!%p6833_p5)
}
  0x30   :  { %60 = dma.hbm_to_vmem [thread:$0]  %s7037_s4, 512, %s58_s14, [#allocation8]  }
  0x31   :  { %6837 = dma.done.wait [#allocation3], 28672  }
  0x32   :  { %6838 = vsyncadd [#allocation3], 4294938624 }
  0x33   :  { %6839 = dma.done.wait [#allocation5], 53248  }
  0x34   :  { %6840 = vsyncadd [#allocation5], 4294914048 }
  0x35   :  { %6841 = dma.done.wait [#allocation8], 512  }
  0x36   :  { %6842 = vsyncadd [#allocation8], 4294966784  ;;  %v5797_v0 = vld [vmem:[#allocation2 + $0xe4] ss:$16 sps:$4 sm:$0xff]   ;;  %v5801_v2 = vld [vmem:[#allocation2 + $0xe0] ss:$16 sps:$4 sm:$0xff]  }
  0x37   :  { %v5799_v1 = vld [vmem:[#allocation2 + $0x2e4] ss:$16 sps:$4 sm:$0xff]   ;;  %1482 = vmatprep.subr.bf16.mxu0 %v5797_v0  ;;  %v5802_v3 = vld [vmem:[#allocation2 + $0x2e0] ss:$16 sps:$4 sm:$0xff]   ;;  %v6904_v51 = vld [vmem:[%s7033_s0 + $0xc] ss:$28 sps:$4 sm:$0xff]  }
  0x38   :  { %1525 = vmatprep.subr.bf16.mxu1 %v5799_v1  ;;  %v5803_v4 = vld [vmem:[#allocation2 + $0xc4] ss:$16 sps:$4 sm:$0xff]   ;;  %1483 = vmatpush1.bf16.msra.mxu0 %v5801_v2  ;;  %v5807_v6 = vld [vmem:[#allocation2 + $0xc0] ss:$16 sps:$4 sm:$0xff]  }
  0x39   :  { %1526 = vmatpush1.bf16.msra.mxu1 %v5802_v3  ;;  %v5805_v5 = vld [vmem:[#allocation2 + $0x2c4] ss:$16 sps:$4 sm:$0xff]   ;;  %1484 = vmatprep.subr.bf16.mxu0 %v5803_v4  ;;  %v5808_v7 = vld [vmem:[#allocation2 + $0x2c0] ss:$16 sps:$4 sm:$0xff]  }
  0x3a   :  { %1527 = vmatprep.subr.bf16.mxu1 %v5805_v5  ;;  %v5809_v8 = vld [vmem:[#allocation2 + $0xa4] ss:$16 sps:$4 sm:$0xff]   ;;  %v5813_v10 = vld [vmem:[#allocation2 + $0xa0] ss:$16 sps:$4 sm:$0xff]   ;;  %1557 = vmatprep.mubr.bf16.mxu1 %v6904_v51 }
  0x3b   :  { %v5811_v9 = vld [vmem:[#allocation2 + $0x2a4] ss:$16 sps:$4 sm:$0xff]   ;;  %v5814_v11 = vld [vmem:[#allocation2 + $0x2a0] ss:$16 sps:$4 sm:$0xff]  }
  0x3c   :  { %1485 = vmatpush1.bf16.msra.mxu0 %v5807_v6  ;;  %v5815_v12 = vld [vmem:[#allocation2 + $0x84] ss:$16 sps:$4 sm:$0xff]   ;;  %v5819_v14 = vld [vmem:[#allocation2 + $0x80] ss:$16 sps:$4 sm:$0xff]  }
  0x3d   :  { %1528 = vmatpush1.bf16.msra.mxu1 %v5808_v7  ;;  %1486 = vmatprep.subr.bf16.mxu0 %v5809_v8  ;;  %v5817_v13 = vld [vmem:[#allocation2 + $0x284] ss:$16 sps:$4 sm:$0xff]   ;;  %v5820_v15 = vld [vmem:[#allocation2 + $0x280] ss:$16 sps:$4 sm:$0xff]  }
  0x3e   :  { %1529 = vmatprep.subr.bf16.mxu1 %v5811_v9  ;;  %v5821_v16 = vld [vmem:[#allocation2 + $0x64] ss:$16 sps:$4 sm:$0xff]   ;;  %v5825_v18 = vld [vmem:[#allocation2 + $0x60] ss:$16 sps:$4 sm:$0xff]  }
  0x3f   :  { %v5823_v17 = vld [vmem:[#allocation2 + $0x264] ss:$16 sps:$4 sm:$0xff]   ;;  %v5826_v19 = vld [vmem:[#allocation2 + $0x260] ss:$16 sps:$4 sm:$0xff]  }
  0x40   :  { %1487 = vmatpush1.bf16.msra.mxu0 %v5813_v10  ;;  %v5827_v20 = vld [vmem:[#allocation2 + $0x44] ss:$16 sps:$4 sm:$0xff]   ;;  %v5831_v22 = vld [vmem:[#allocation2 + $0x40] ss:$16 sps:$4 sm:$0xff]  }
  0x41   :  { %1530 = vmatpush1.bf16.msra.mxu1 %v5814_v11  ;;  %1488 = vmatprep.subr.bf16.mxu0 %v5815_v12  ;;  %v5829_v21 = vld [vmem:[#allocation2 + $0x244] ss:$16 sps:$4 sm:$0xff]   ;;  %v5832_v23 = vld [vmem:[#allocation2 + $0x240] ss:$16 sps:$4 sm:$0xff]  }
  0x42   :  { %1531 = vmatprep.subr.bf16.mxu1 %v5817_v13  ;;  %v5833_v24 = vld [vmem:[#allocation2 + $0x24] ss:$16 sps:$4 sm:$0xff]   ;;  %v5837_v26 = vld [vmem:[#allocation2 + $0x20] ss:$16 sps:$4 sm:$0xff]  }
  0x43   :  { %v5835_v25 = vld [vmem:[#allocation2 + $0x224] ss:$16 sps:$4 sm:$0xff]   ;;  %v5838_v27 = vld [vmem:[#allocation2 + $0x220] ss:$16 sps:$4 sm:$0xff]  }
  0x44   :  { %1489 = vmatpush1.bf16.msra.mxu0 %v5819_v14  ;;  %v5839_v28 = vld [vmem:[#allocation2 + $0x4] ss:$16 sps:$4 sm:$0xff]   ;;  %v5843_v30 = vld [vmem:[#allocation2] ss:$16 sps:$4 sm:$0xff]   ;;  %v6853_v14 = vmov 0  }
  0x45   :  { %1532 = vmatpush1.bf16.msra.mxu1 %v5820_v15  ;;  %1490 = vmatprep.subr.bf16.mxu0 %v5821_v16  ;;  %v5841_v29 = vld [vmem:[#allocation2 + $0x204] ss:$16 sps:$4 sm:$0xff]   ;;  %v5844_v31 = vld [vmem:[#allocation2 + $0x200] ss:$16 sps:$4 sm:$0xff]  }
  0x46   :  { %1533 = vmatprep.subr.bf16.mxu1 %v5823_v17  ;;  %v5845_v32 = vld [vmem:[#allocation2 + $0x1e4] ss:$16 sps:$4 sm:$0xff]   ;;  %v5849_v34 = vld [vmem:[#allocation2 + $0x1e0] ss:$16 sps:$4 sm:$0xff]  }
  0x47   :  { %v5847_v33 = vld [vmem:[#allocation2 + $0x3e4] ss:$16 sps:$4 sm:$0xff]   ;;  %v5850_v35 = vld [vmem:[#allocation2 + $0x3e0] ss:$16 sps:$4 sm:$0xff]  }
  0x48   :  { %1491 = vmatpush1.bf16.msra.mxu0 %v5825_v18  ;;  %v5851_v36 = vld [vmem:[#allocation2 + $0x1c4] ss:$16 sps:$4 sm:$0xff]   ;;  %v5855_v38 = vld [vmem:[#allocation2 + $0x1c0] ss:$16 sps:$4 sm:$0xff]  }
  0x49   :  { %1534 = vmatpush1.bf16.msra.mxu1 %v5826_v19  ;;  %1492 = vmatprep.subr.bf16.mxu0 %v5827_v20  ;;  %v5853_v37 = vld [vmem:[#allocation2 + $0x3c4] ss:$16 sps:$4 sm:$0xff]   ;;  %v5856_v39 = vld [vmem:[#allocation2 + $0x3c0] ss:$16 sps:$4 sm:$0xff]  }
  0x4a   :  { %1535 = vmatprep.subr.bf16.mxu1 %v5829_v21  ;;  %v5857_v40 = vld [vmem:[#allocation2 + $0x1a4] ss:$16 sps:$4 sm:$0xff]   ;;  %v5861_v42 = vld [vmem:[#allocation2 + $0x1a0] ss:$16 sps:$4 sm:$0xff]  }
  0x4b   :  { %v5859_v41 = vld [vmem:[#allocation2 + $0x3a4] ss:$16 sps:$4 sm:$0xff]   ;;  %v5862_v43 = vld [vmem:[#allocation2 + $0x3a0] ss:$16 sps:$4 sm:$0xff]  }
  0x4c   :  { %1493 = vmatpush1.bf16.msra.mxu0 %v5831_v22  ;;  %v5863_v44 = vld [vmem:[#allocation2 + $0x184] ss:$16 sps:$4 sm:$0xff]   ;;  %v5867_v46 = vld [vmem:[#allocation2 + $0x180] ss:$16 sps:$4 sm:$0xff]  }
  0x4d   :  { %1536 = vmatpush1.bf16.msra.mxu1 %v5832_v23  ;;  %1494 = vmatprep.subr.bf16.mxu0 %v5833_v24  ;;  %v5865_v45 = vld [vmem:[#allocation2 + $0x384] ss:$16 sps:$4 sm:$0xff]   ;;  %v5868_v47 = vld [vmem:[#allocation2 + $0x380] ss:$16 sps:$4 sm:$0xff]  }
  0x4e   :  { %1537 = vmatprep.subr.bf16.mxu1 %v5835_v25  ;;  %v5869_v48 = vld [vmem:[#allocation2 + $0x164] ss:$16 sps:$4 sm:$0xff]   ;;  %v5873_v52 = vld [vmem:[#allocation2 + $0x160] ss:$16 sps:$4 sm:$0xff]  }
  0x4f   :  { %v6899_v49 = vld [vmem:[%s7033_s0 + $0x4] ss:$28 sps:$4 sm:$0xff]  }
  0x50   :  { %1495 = vmatpush1.bf16.msra.mxu0 %v5837_v26  ;;  %v5871_v50 = vld [vmem:[#allocation2 + $0x364] ss:$16 sps:$4 sm:$0xff]   ;;  %1514 = vmatprep.mubr.bf16.mxu0 %v6899_v49  ;;  %v5874_v53 = vld [vmem:[#allocation2 + $0x360] ss:$16 sps:$4 sm:$0xff]  }
  0x51   :  { %1538 = vmatpush1.bf16.msra.mxu1 %v5838_v27  ;;  %1496 = vmatprep.subr.bf16.mxu0 %v5839_v28  ;;  %v5875_v54 = vld [vmem:[#allocation2 + $0x144] ss:$16 sps:$4 sm:$0xff]   ;;  %v5879_v56 = vld [vmem:[#allocation2 + $0x140] ss:$16 sps:$4 sm:$0xff]  }
  0x52   :  { %1539 = vmatprep.subr.bf16.mxu1 %v5841_v29  ;;  %v5877_v55 = vld [vmem:[#allocation2 + $0x344] ss:$16 sps:$4 sm:$0xff]   ;;  %v5880_v57 = vld [vmem:[#allocation2 + $0x340] ss:$16 sps:$4 sm:$0xff]  }
  0x53   :  { %v5881_v58 = vld [vmem:[#allocation2 + $0x124] ss:$16 sps:$4 sm:$0xff]   ;;  %v5885_v60 = vld [vmem:[#allocation2 + $0x120] ss:$16 sps:$4 sm:$0xff]  }
  0x54   :  { %1497 = vmatpush1.bf16.msra.mxu0 %v5843_v30  ;;  %v5883_v59 = vld [vmem:[#allocation2 + $0x324] ss:$16 sps:$4 sm:$0xff]   ;;  %v5886_v61 = vld [vmem:[#allocation2 + $0x320] ss:$16 sps:$4 sm:$0xff]  }
  0x55   :  { %1540 = vmatpush1.bf16.msra.mxu1 %v5844_v31  ;;  %1498 = vmatprep.subr.bf16.mxu0 %v5845_v32  ;;  %v5887_v62 = vld [vmem:[#allocation2 + $0x104] ss:$16 sps:$4 sm:$0xff]   ;;  %v5891_v0 = vld [vmem:[#allocation2 + $0x100] ss:$16 sps:$4 sm:$0xff]  }
  0x56   :  { %1541 = vmatprep.subr.bf16.mxu1 %v5847_v33  ;;  %v5889_v63 = vld [vmem:[#allocation2 + $0x304] ss:$16 sps:$4 sm:$0xff]   ;;  %v5892_v1 = vld [vmem:[#allocation2 + $0x300] ss:$16 sps:$4 sm:$0xff]  }
  0x57   :  { %v5901_v2 = vld [vmem:[#allocation2 + $0x4e4] ss:$16 sps:$4 sm:$0xff]   ;;  %v6911_v4 = vld [vmem:[%s7033_s0] ss:$28 sps:$4 sm:$0xff]  }
  0x58   :  { %1499 = vmatpush2.bf16.msra.mxu0 %v5849_v34  ;;  %v5904_v3 = vld [vmem:[#allocation2 + $0x6e4] ss:$16 sps:$4 sm:$0xff]   ;;  %v5899_v6 = vld [vmem:[#allocation2 + $0x4e0] ss:$16 sps:$4 sm:$0xff]  }
  0x59   :  { %1542 = vmatpush2.bf16.msra.mxu1 %v5850_v35  ;;  %1500 = vmatprep.subr.bf16.mxu0 %v5851_v36  ;;  %v5896_v5 = vld [vmem:[%s7033_s0 + $0x8] ss:$28 sps:$4 sm:$0xff]   ;;  %v5902_v7 = vld [vmem:[#allocation2 + $0x6e0] ss:$16 sps:$4 sm:$0xff]  }
  0x5a   :  { %1543 = vmatprep.subr.bf16.mxu1 %v5853_v37  ;;  %v5907_v8 = vld [vmem:[#allocation2 + $0x4c4] ss:$16 sps:$4 sm:$0xff]   ;;  %v5905_v10 = vld [vmem:[#allocation2 + $0x4c0] ss:$16 sps:$4 sm:$0xff]  }
  0x5b   :  { %v5910_v9 = vld [vmem:[#allocation2 + $0x6c4] ss:$16 sps:$4 sm:$0xff]   ;;  %v5908_v11 = vld [vmem:[#allocation2 + $0x6c0] ss:$16 sps:$4 sm:$0xff]  }
  0x5c   :  { %1501 = vmatpush2.bf16.msra.mxu0 %v5855_v38  ;;  %v5913_v12 = vld [vmem:[#allocation2 + $0x4a4] ss:$16 sps:$4 sm:$0xff]   ;;  %v5911_v15 = vld [vmem:[#allocation2 + $0x4a0] ss:$16 sps:$4 sm:$0xff]  }
  0x5d   :  { %1544 = vmatpush2.bf16.msra.mxu1 %v5856_v39  ;;  %1502 = vmatprep.subr.bf16.mxu0 %v5857_v40  ;;  %v5916_v13 = vld [vmem:[#allocation2 + $0x6a4] ss:$16 sps:$4 sm:$0xff]   ;;  %v5914_v16 = vld [vmem:[#allocation2 + $0x6a0] ss:$16 sps:$4 sm:$0xff]   ;;  %v5953_v39 = vld [vmem:[#allocation2 + $0xec] ss:$16 sps:$4 sm:$0xff]  }
  0x5e   :  { %1545 = vmatprep.subr.bf16.mxu1 %v5859_v41  ;;  %v5919_v17 = vld [vmem:[#allocation2 + $0x484] ss:$16 sps:$4 sm:$0xff]   ;;  %v5917_v19 = vld [vmem:[#allocation2 + $0x480] ss:$16 sps:$4 sm:$0xff]  }
  0x5f   :  { %v5922_v18 = vld [vmem:[#allocation2 + $0x684] ss:$16 sps:$4 sm:$0xff]   ;;  %v5920_v20 = vld [vmem:[#allocation2 + $0x680] ss:$16 sps:$4 sm:$0xff]  }
  0x60   :  { %1503 = vmatpush2.bf16.msra.mxu0 %v5861_v42  ;;  %v5925_v21 = vld [vmem:[#allocation2 + $0x464] ss:$16 sps:$4 sm:$0xff]   ;;  %v5923_v23 = vld [vmem:[#allocation2 + $0x460] ss:$16 sps:$4 sm:$0xff]   ;;  %v5951_v42 = vld [vmem:[#allocation2 + $0xe8] ss:$16 sps:$4 sm:$0xff]  }
  0x61   :  { %1546 = vmatpush2.bf16.msra.mxu1 %v5862_v43  ;;  %1504 = vmatprep.subr.bf16.mxu0 %v5863_v44  ;;  %v5928_v22 = vld [vmem:[#allocation2 + $0x664] ss:$16 sps:$4 sm:$0xff]   ;;  %v5926_v24 = vld [vmem:[#allocation2 + $0x660] ss:$16 sps:$4 sm:$0xff]   ;;  %v5959_v44 = vld [vmem:[#allocation2 + $0xcc] ss:$16 sps:$4 sm:$0xff]  }
  0x62   :  { %1547 = vmatprep.subr.bf16.mxu1 %v5865_v45  ;;  %v5931_v25 = vld [vmem:[#allocation2 + $0x444] ss:$16 sps:$4 sm:$0xff]   ;;  %v5929_v27 = vld [vmem:[#allocation2 + $0x440] ss:$16 sps:$4 sm:$0xff]  }
  0x63   :  { %v5934_v26 = vld [vmem:[#allocation2 + $0x644] ss:$16 sps:$4 sm:$0xff]   ;;  %v5932_v28 = vld [vmem:[#allocation2 + $0x640] ss:$16 sps:$4 sm:$0xff]  }
  0x64   :  { %1505 = vmatpush2.bf16.msra.mxu0 %v5867_v46  ;;  %v5937_v29 = vld [vmem:[#allocation2 + $0x424] ss:$16 sps:$4 sm:$0xff]   ;;  %v5935_v31 = vld [vmem:[#allocation2 + $0x420] ss:$16 sps:$4 sm:$0xff]   ;;  %v5957_v46 = vld [vmem:[#allocation2 + $0xc8] ss:$16 sps:$4 sm:$0xff]  }
  0x65   :  { %1548 = vmatpush2.bf16.msra.mxu1 %v5868_v47  ;;  %1506 = vmatprep.subr.bf16.mxu0 %v5869_v48  ;;  %v5940_v30 = vld [vmem:[#allocation2 + $0x624] ss:$16 sps:$4 sm:$0xff]   ;;  %v5938_v32 = vld [vmem:[#allocation2 + $0x620] ss:$16 sps:$4 sm:$0xff]   ;;  %v5965_v48 = vld [vmem:[#allocation2 + $0xac] ss:$16 sps:$4 sm:$0xff]  }
  0x66   :  { %1549 = vmatprep.subr.bf16.mxu1 %v5871_v50  ;;  %v5943_v33 = vld [vmem:[#allocation2 + $0x404] ss:$16 sps:$4 sm:$0xff]   ;;  %v5941_v36 = vld [vmem:[#allocation2 + $0x400] ss:$16 sps:$4 sm:$0xff]  }
  0x67   :  { %v5946_v34 = vld [vmem:[#allocation2 + $0x604] ss:$16 sps:$4 sm:$0xff]   ;;  %v5944_v37 = vld [vmem:[#allocation2 + $0x600] ss:$16 sps:$4 sm:$0xff]  }
  0x68   :  { %1507 = vmatpush2.bf16.msra.mxu0 %v5873_v52  ;;  %v6921_v35 = vld [vmem:[%s7033_s0 + $0x14] ss:$28 sps:$4 sm:$0xff]   ;;  %v5963_v52 = vld [vmem:[#allocation2 + $0xa8] ss:$16 sps:$4 sm:$0xff]  }
  0x69   :  { %1550 = vmatpush2.bf16.msra.mxu1 %v5874_v53  ;;  %1508 = vmatprep.subr.bf16.mxu0 %v5875_v54  ;;  %v5949_v38 = vld [vmem:[#allocation2 + $0x5e4] ss:$16 sps:$4 sm:$0xff]   ;;  %v5947_v40 = vld [vmem:[#allocation2 + $0x5e0] ss:$16 sps:$4 sm:$0xff]   ;;  %v5971_v54 = vld [vmem:[#allocation2 + $0x8c] ss:$16 sps:$4 sm:$0xff]  }
  0x6a   :  { %1551 = vmatprep.subr.bf16.mxu1 %v5877_v55  ;;  %v5950_v41 = vld [vmem:[%s7033_s0 + $0x18] ss:$28 sps:$4 sm:$0xff]   ;;  %v5954_v45 = vld [vmem:[#allocation2 + $0x5c0] ss:$16 sps:$4 sm:$0xff]  }
  0x6b   :  { %v5956_v43 = vld [vmem:[#allocation2 + $0x5c4] ss:$16 sps:$4 sm:$0xff]   ;;  %v5960_v50 = vld [vmem:[#allocation2 + $0x5a0] ss:$16 sps:$4 sm:$0xff]  }
  0x6c   :  { %1509 = vmatpush2.bf16.msra.mxu0 %v5879_v56  ;;  %v5962_v47 = vld [vmem:[#allocation2 + $0x5a4] ss:$16 sps:$4 sm:$0xff]   ;;  %v5966_v55 = vld [vmem:[#allocation2 + $0x580] ss:$16 sps:$4 sm:$0xff]   ;;  %v5969_v56 = vld [vmem:[#allocation2 + $0x88] ss:$16 sps:$4 sm:$0xff]  }
  0x6d   :  { %1552 = vmatpush2.bf16.msra.mxu1 %v5880_v57  ;;  %1510 = vmatprep.subr.bf16.mxu0 %v5881_v58  ;;  %v5968_v53 = vld [vmem:[#allocation2 + $0x584] ss:$16 sps:$4 sm:$0xff]   ;;  %v5977_v58 = vld [vmem:[#allocation2 + $0x6c] ss:$16 sps:$4 sm:$0xff]  }
  0x6e   :  { %1553 = vmatprep.subr.bf16.mxu1 %v5883_v59  ;;  %v5974_v57 = vld [vmem:[#allocation2 + $0x564] ss:$16 sps:$4 sm:$0xff]   ;;  %v5972_v59 = vld [vmem:[#allocation2 + $0x560] ss:$16 sps:$4 sm:$0xff]  }
  0x70   :  { %1511 = vmatpush2.bf16.msra.mxu0 %v5885_v60  ;;  %v5980_v60 = vld [vmem:[#allocation2 + $0x544] ss:$16 sps:$4 sm:$0xff]  }
  0x71   :  { %1554 = vmatpush2.bf16.msra.mxu1 %v5886_v61  ;;  %1512 = vmatprep.subr.bf16.mxu0 %v5887_v62  ;;  %v5983_v61 = vld [vmem:[#allocation2 + $0x4c] ss:$16 sps:$4 sm:$0xff]   ;;  %v5978_v62 = vld [vmem:[#allocation2 + $0x540] ss:$16 sps:$4 sm:$0xff]  }
  0x72   :  { %1555 = vmatprep.subr.bf16.mxu1 %v5889_v63  ;;  %v5981_v63 = vld [vmem:[#allocation2 + $0x48] ss:$16 sps:$4 sm:$0xff]  }
  0x74   :  { %1513 = vmatpush2.bf16.msra.mxu0 %v5891_v0  ;;  %v5986_v0 = vld [vmem:[#allocation2 + $0x524] ss:$16 sps:$4 sm:$0xff]  }
  0x75   :  { %1556 = vmatpush2.bf16.msra.mxu1 %v5892_v1  ;;  %1568 = vmatprep.subr.bf16.mxu0 %v5901_v2  ;;  %v5989_v1 = vld [vmem:[#allocation2 + $0x2c] ss:$16 sps:$4 sm:$0xff]   ;;  %v5984_v2 = vld [vmem:[#allocation2 + $0x520] ss:$16 sps:$4 sm:$0xff]  }
  0x76   :  { %1611 = vmatprep.subr.bf16.mxu1 %v5904_v3  ;;  %v5987_v3 = vld [vmem:[#allocation2 + $0x28] ss:$16 sps:$4 sm:$0xff]  }
  0x77   :  { %1515 = vmatmul.mubr.bf16.vlgmr.msra.gmra.mxu0 %v6911_v4 }
  0x78   :  { %1558 = vmatmul.mubr.bf16.vlgmr.msra.gmra.mxu1 %v5896_v5  ;;  %1569 = vmatpush1.bf16.msra.mxu0 %v5899_v6  ;;  %v5992_v5 = vld [vmem:[#allocation2 + $0x504] ss:$16 sps:$4 sm:$0xff]   ;;  %v5995_v6 = vld [vmem:[#allocation2 + $0xc] ss:$16 sps:$4 sm:$0xff]  }
  0x79   :  { %1612 = vmatpush1.bf16.msra.mxu1 %v5902_v7  ;;  %1570 = vmatprep.subr.bf16.mxu0 %v5907_v8  ;;  %v5990_v7 = vld [vmem:[#allocation2 + $0x500] ss:$16 sps:$4 sm:$0xff]   ;;  %v5993_v8 = vld [vmem:[#allocation2 + $0x8] ss:$16 sps:$4 sm:$0xff]  }
  0x7a   :  { %1613 = vmatprep.subr.bf16.mxu1 %v5910_v9  ;;  %1643 = vmatprep.mubr.bf16.mxu1 %v6853_v14  ;;  %v6001_v9 = vld [vmem:[#allocation2 + $0x1ec] ss:$16 sps:$4 sm:$0xff]  }
  0x7b   :  { %1600 = vmatprep.mubr.bf16.mxu0 %v6921_v35 }
  0x7c   :  { %1571 = vmatpush1.bf16.msra.mxu0 %v5905_v10  ;;  %v6004_v10 = vld [vmem:[#allocation2 + $0x2ec] ss:$16 sps:$4 sm:$0xff]  }
  0x7d   :  { %1614 = vmatpush1.bf16.msra.mxu1 %v5908_v11  ;;  %1572 = vmatprep.subr.bf16.mxu0 %v5913_v12  ;;  %v6931_v11 = vld [vmem:[%s7033_s0 + $0x10] ss:$28 sps:$4 sm:$0xff]   ;;  %v5999_v12 = vld [vmem:[#allocation2 + $0x1e8] ss:$16 sps:$4 sm:$0xff]  }
  0x7e   :  { %1615 = vmatprep.subr.bf16.mxu1 %v5916_v13  ;;  %v6002_v13 = vld [vmem:[#allocation2 + $0x2e8] ss:$16 sps:$4 sm:$0xff]  }
  0x80   :  { %1573 = vmatpush1.bf16.msra.mxu0 %v5911_v15  ;;  %v6007_v15 = vld [vmem:[#allocation2 + $0x1cc] ss:$16 sps:$4 sm:$0xff]  }
  0x81   :  { %1616 = vmatpush1.bf16.msra.mxu1 %v5914_v16  ;;  %1574 = vmatprep.subr.bf16.mxu0 %v5919_v17  ;;  %v6010_v16 = vld [vmem:[#allocation2 + $0x2cc] ss:$16 sps:$4 sm:$0xff]   ;;  %v6005_v17 = vld [vmem:[#allocation2 + $0x1c8] ss:$16 sps:$4 sm:$0xff]  }
  0x82   :  { %1617 = vmatprep.subr.bf16.mxu1 %v5922_v18  ;;  %v6008_v18 = vld [vmem:[#allocation2 + $0x2c8] ss:$16 sps:$4 sm:$0xff]  }
  0x84   :  { %1575 = vmatpush1.bf16.msra.mxu0 %v5917_v19  ;;  %v6013_v19 = vld [vmem:[#allocation2 + $0x1ac] ss:$16 sps:$4 sm:$0xff]  }
  0x85   :  { %1618 = vmatpush1.bf16.msra.mxu1 %v5920_v20  ;;  %1576 = vmatprep.subr.bf16.mxu0 %v5925_v21  ;;  %v6016_v20 = vld [vmem:[#allocation2 + $0x2ac] ss:$16 sps:$4 sm:$0xff]   ;;  %v6011_v21 = vld [vmem:[#allocation2 + $0x1a8] ss:$16 sps:$4 sm:$0xff]  }
  0x86   :  { %1619 = vmatprep.subr.bf16.mxu1 %v5928_v22  ;;  %v6014_v22 = vld [vmem:[#allocation2 + $0x2a8] ss:$16 sps:$4 sm:$0xff]  }
  0x88   :  { %1577 = vmatpush1.bf16.msra.mxu0 %v5923_v23  ;;  %v6019_v23 = vld [vmem:[#allocation2 + $0x18c] ss:$16 sps:$4 sm:$0xff]  }
  0x89   :  { %1620 = vmatpush1.bf16.msra.mxu1 %v5926_v24  ;;  %1578 = vmatprep.subr.bf16.mxu0 %v5931_v25  ;;  %v6022_v24 = vld [vmem:[#allocation2 + $0x28c] ss:$16 sps:$4 sm:$0xff]   ;;  %v6017_v25 = vld [vmem:[#allocation2 + $0x188] ss:$16 sps:$4 sm:$0xff]  }
  0x8a   :  { %1621 = vmatprep.subr.bf16.mxu1 %v5934_v26  ;;  %v6020_v26 = vld [vmem:[#allocation2 + $0x288] ss:$16 sps:$4 sm:$0xff]  }
  0x8c   :  { %1579 = vmatpush1.bf16.msra.mxu0 %v5929_v27  ;;  %v6025_v27 = vld [vmem:[#allocation2 + $0x16c] ss:$16 sps:$4 sm:$0xff]  }
  0x8d   :  { %1622 = vmatpush1.bf16.msra.mxu1 %v5932_v28  ;;  %1580 = vmatprep.subr.bf16.mxu0 %v5937_v29  ;;  %v6028_v28 = vld [vmem:[#allocation2 + $0x26c] ss:$16 sps:$4 sm:$0xff]   ;;  %v6023_v29 = vld [vmem:[#allocation2 + $0x168] ss:$16 sps:$4 sm:$0xff]  }
  0x8e   :  { %1623 = vmatprep.subr.bf16.mxu1 %v5940_v30  ;;  %v6031_v30 = vld [vmem:[#allocation2 + $0x14c] ss:$16 sps:$4 sm:$0xff]  }
  0x90   :  { %1581 = vmatpush1.bf16.msra.mxu0 %v5935_v31  ;;  %v6034_v31 = vld [vmem:[#allocation2 + $0x24c] ss:$16 sps:$4 sm:$0xff]  }
  0x91   :  { %1624 = vmatpush1.bf16.msra.mxu1 %v5938_v32  ;;  %1582 = vmatprep.subr.bf16.mxu0 %v5943_v33  ;;  %v6029_v32 = vld [vmem:[#allocation2 + $0x148] ss:$16 sps:$4 sm:$0xff]  }
  0x92   :  { %1625 = vmatprep.subr.bf16.mxu1 %v5946_v34  ;;  %v6032_v33 = vld [vmem:[#allocation2 + $0x248] ss:$16 sps:$4 sm:$0xff]   ;;  %v6037_v34 = vld [vmem:[#allocation2 + $0x12c] ss:$16 sps:$4 sm:$0xff]  }
  0x94   :  { %1583 = vmatpush1.bf16.msra.mxu0 %v5941_v36  ;;  %v6040_v36 = vld [vmem:[#allocation2 + $0x22c] ss:$16 sps:$4 sm:$0xff]  }
  0x95   :  { %1626 = vmatpush1.bf16.msra.mxu1 %v5944_v37  ;;  %1584 = vmatprep.subr.bf16.mxu0 %v5949_v38  ;;  %v6035_v37 = vld [vmem:[#allocation2 + $0x128] ss:$16 sps:$4 sm:$0xff]  }
  0x96   :  { %1654 = vmatprep.subr.bf16.mxu1 %v5953_v39  ;;  %v6038_v38 = vld [vmem:[#allocation2 + $0x228] ss:$16 sps:$4 sm:$0xff]   ;;  %v6043_v39 = vld [vmem:[#allocation2 + $0x10c] ss:$16 sps:$4 sm:$0xff]  }
  0x98   :  { %1644 = vmatmul.mubr.bf16.vlgmr.msra.gmra.mxu1 %v5950_v41  ;;  %1585 = vmatpush2.bf16.msra.mxu0 %v5947_v40  ;;  %v6046_v40 = vld [vmem:[#allocation2 + $0x20c] ss:$16 sps:$4 sm:$0xff]   ;;  %v6041_v41 = vld [vmem:[#allocation2 + $0x108] ss:$16 sps:$4 sm:$0xff]  }
  0x99   :  { %1655 = vmatpush1.bf16.msra.mxu1 %v5951_v42  ;;  %1586 = vmatprep.subr.bf16.mxu0 %v5956_v43  ;;  %v6044_v42 = vld [vmem:[#allocation2 + $0x208] ss:$16 sps:$4 sm:$0xff]   ;;  %v6049_v43 = vld [vmem:[#allocation2 + $0x3ec] ss:$16 sps:$4 sm:$0xff]  }
  0x9a   :  { %1656 = vmatprep.subr.bf16.mxu1 %v5959_v44  ;;  %1686 = vmatprep.mubr.bf16.mxu1 %v6899_v49  ;;  %v5975_v49 = vld [vmem:[#allocation2 + $0x68] ss:$16 sps:$4 sm:$0xff]   ;;  %v6052_v44 = vld [vmem:[#allocation2 + $0x4ec] ss:$16 sps:$4 sm:$0xff]  }
  0x9c   :  { %1587 = vmatpush2.bf16.msra.mxu0 %v5954_v45  ;;  %v6047_v45 = vld [vmem:[#allocation2 + $0x3e8] ss:$16 sps:$4 sm:$0xff]  }
  0x9d   :  { %1657 = vmatpush1.bf16.msra.mxu1 %v5957_v46  ;;  %1588 = vmatprep.subr.bf16.mxu0 %v5962_v47  ;;  %v6050_v46 = vld [vmem:[#allocation2 + $0x4e8] ss:$16 sps:$4 sm:$0xff]   ;;  %v6055_v47 = vld [vmem:[#allocation2 + $0x3cc] ss:$16 sps:$4 sm:$0xff]  }
  0x9e   :  { %1658 = vmatprep.subr.bf16.mxu1 %v5965_v48  ;;  %v6058_v48 = vld [vmem:[#allocation2 + $0x4cc] ss:$16 sps:$4 sm:$0xff]  }
  0xa0   :  { %1589 = vmatpush2.bf16.msra.mxu0 %v5960_v50  ;;  %v6053_v50 = vld [vmem:[#allocation2 + $0x3c8] ss:$16 sps:$4 sm:$0xff]  }
  0xa1   :  { %1659 = vmatpush1.bf16.msra.mxu1 %v5963_v52  ;;  %1590 = vmatprep.subr.bf16.mxu0 %v5968_v53  ;;  %v6056_v52 = vld [vmem:[#allocation2 + $0x4c8] ss:$16 sps:$4 sm:$0xff]   ;;  %v6061_v53 = vld [vmem:[#allocation2 + $0x3ac] ss:$16 sps:$4 sm:$0xff]  }
  0xa2   :  { %1660 = vmatprep.subr.bf16.mxu1 %v5971_v54  ;;  %v6064_v54 = vld [vmem:[#allocation2 + $0x4ac] ss:$16 sps:$4 sm:$0xff]  }
  0xa4   :  { %1591 = vmatpush2.bf16.msra.mxu0 %v5966_v55  ;;  %v6059_v55 = vld [vmem:[#allocation2 + $0x3a8] ss:$16 sps:$4 sm:$0xff]  }
  0xa5   :  { %1661 = vmatpush1.bf16.msra.mxu1 %v5969_v56  ;;  %1592 = vmatprep.subr.bf16.mxu0 %v5974_v57  ;;  %v6062_v56 = vld [vmem:[#allocation2 + $0x4a8] ss:$16 sps:$4 sm:$0xff]   ;;  %v6067_v57 = vld [vmem:[#allocation2 + $0x38c] ss:$16 sps:$4 sm:$0xff]  }
  0xa6   :  { %1662 = vmatprep.subr.bf16.mxu1 %v5977_v58  ;;  %v6070_v58 = vld [vmem:[#allocation2 + $0x48c] ss:$16 sps:$4 sm:$0xff]  }
  0xa8   :  { %1593 = vmatpush2.bf16.msra.mxu0 %v5972_v59  ;;  %v6065_v59 = vld [vmem:[#allocation2 + $0x388] ss:$16 sps:$4 sm:$0xff]  }
  0xa9   :  { %1663 = vmatpush1.bf16.msra.mxu1 %v5975_v49  ;;  %1594 = vmatprep.subr.bf16.mxu0 %v5980_v60  ;;  %v6073_v49 = vld [vmem:[#allocation2 + $0x36c] ss:$16 sps:$4 sm:$0xff]  }
  0xaa   :  { %1664 = vmatprep.subr.bf16.mxu1 %v5983_v61  ;;  %v6076_v60 = vld [vmem:[#allocation2 + $0x46c] ss:$16 sps:$4 sm:$0xff]   ;;  %v6071_v61 = vld [vmem:[#allocation2 + $0x368] ss:$16 sps:$4 sm:$0xff]  }
  0xac   :  { %1595 = vmatpush2.bf16.msra.mxu0 %v5978_v62  ;;  %v6074_v62 = vld [vmem:[#allocation2 + $0x468] ss:$16 sps:$4 sm:$0xff]  }
  0xad   :  { %1665 = vmatpush1.bf16.msra.mxu1 %v5981_v63  ;;  %1596 = vmatprep.subr.bf16.mxu0 %v5986_v0  ;;  %v6079_v63 = vld [vmem:[#allocation2 + $0x34c] ss:$16 sps:$4 sm:$0xff]  }
  0xae   :  { %1666 = vmatprep.subr.bf16.mxu1 %v5989_v1  ;;  %v6082_v0 = vld [vmem:[#allocation2 + $0x44c] ss:$16 sps:$4 sm:$0xff]   ;;  %v6080_v1 = vld [vmem:[#allocation2 + $0x448] ss:$16 sps:$4 sm:$0xff]  }
  0xb0   :  { %1597 = vmatpush2.bf16.msra.mxu0 %v5984_v2  ;;  %v6085_v2 = vld [vmem:[#allocation2 + $0x32c] ss:$16 sps:$4 sm:$0xff]  }
  0xb1   :  { %1667 = vmatpush1.bf16.msra.mxu1 %v5987_v3  ;;  %1598 = vmatprep.subr.bf16.mxu0 %v5992_v5  ;;  %v6088_v3 = vld [vmem:[#allocation2 + $0x42c] ss:$16 sps:$4 sm:$0xff]   ;;  %v6083_v5 = vld [vmem:[#allocation2 + $0x328] ss:$16 sps:$4 sm:$0xff]  }
  0xb2   :  { %1668 = vmatprep.subr.bf16.mxu1 %v5995_v6  ;;  %v6086_v6 = vld [vmem:[#allocation2 + $0x428] ss:$16 sps:$4 sm:$0xff]  }
  0xb4   :  { %1599 = vmatpush2.bf16.msra.mxu0 %v5990_v7  ;;  %v6091_v7 = vld [vmem:[#allocation2 + $0x30c] ss:$16 sps:$4 sm:$0xff]  }
  0xb5   :  { %1669 = vmatpush1.bf16.msra.mxu1 %v5993_v8  ;;  %1697 = vmatprep.subr.bf16.mxu0 %v6004_v10  ;;  %v6094_v8 = vld [vmem:[#allocation2 + $0x40c] ss:$16 sps:$4 sm:$0xff]   ;;  %v6092_v10 = vld [vmem:[#allocation2 + $0x408] ss:$16 sps:$4 sm:$0xff]  }
  0xb6   :  { %1670 = vmatprep.subr.bf16.mxu1 %v6001_v9  ;;  %v6089_v9 = vld [vmem:[#allocation2 + $0x308] ss:$16 sps:$4 sm:$0xff]  }
  0xb7   :  { %1601 = vmatmul.mubr.bf16.vlgmr.msra.gmra.mxu0 %v6931_v11 }
  0xb8   :  { %1698 = vmatpush1.bf16.msra.mxu0 %v6002_v13  ;;  %1729 = vmatprep.mubr.bf16.mxu0 %v6904_v51  ;;  %v6026_v51 = vld [vmem:[#allocation2 + $0x268] ss:$16 sps:$4 sm:$0xff]   ;;  %v6100_v13 = vld [vmem:[#allocation2 + $0x6ec] ss:$16 sps:$4 sm:$0xff]  }
  0xb9   :  { %1671 = vmatpush2.bf16.msra.mxu1 %v5999_v12  ;;  %1699 = vmatprep.subr.bf16.mxu0 %v6010_v16  ;;  %v6097_v12 = vld [vmem:[#allocation2 + $0x5ec] ss:$16 sps:$4 sm:$0xff]   ;;  %v6098_v16 = vld [vmem:[#allocation2 + $0x6e8] ss:$16 sps:$4 sm:$0xff]  }
  0xba   :  { %1672 = vmatprep.subr.bf16.mxu1 %v6007_v15  ;;  %v6095_v15 = vld [vmem:[#allocation2 + $0x5e8] ss:$16 sps:$4 sm:$0xff]  }
  0xbc   :  { %1700 = vmatpush1.bf16.msra.mxu0 %v6008_v18  ;;  %v6106_v18 = vld [vmem:[#allocation2 + $0x6cc] ss:$16 sps:$4 sm:$0xff]  }
  0xbd   :  { %1673 = vmatpush2.bf16.msra.mxu1 %v6005_v17  ;;  %1701 = vmatprep.subr.bf16.mxu0 %v6016_v20  ;;  %v6103_v17 = vld [vmem:[#allocation2 + $0x5cc] ss:$16 sps:$4 sm:$0xff]   ;;  %v6104_v20 = vld [vmem:[#allocation2 + $0x6c8] ss:$16 sps:$4 sm:$0xff]  }
  0xbe   :  { %1674 = vmatprep.subr.bf16.mxu1 %v6013_v19  ;;  %v6101_v19 = vld [vmem:[#allocation2 + $0x5c8] ss:$16 sps:$4 sm:$0xff]  }
  0xc0   :  { %1702 = vmatpush1.bf16.msra.mxu0 %v6014_v22  ;;  %v6109_v22 = vld [vmem:[#allocation2 + $0x5ac] ss:$16 sps:$4 sm:$0xff]  }
  0xc1   :  { %1675 = vmatpush2.bf16.msra.mxu1 %v6011_v21  ;;  %1703 = vmatprep.subr.bf16.mxu0 %v6022_v24  ;;  %v6751_v21 = vld [vmem:[%s7033_s0 + $0x8] ss:$28 sps:$4 sm:$0xff]  }
  0xc2   :  { %1676 = vmatprep.subr.bf16.mxu1 %v6019_v23  ;;  %v6112_v23 = vld [vmem:[#allocation2 + $0x6ac] ss:$16 sps:$4 sm:$0xff]   ;;  %v6107_v24 = vld [vmem:[#allocation2 + $0x5a8] ss:$16 sps:$4 sm:$0xff]  }
  0xc4   :  { %1704 = vmatpush1.bf16.msra.mxu0 %v6020_v26  ;;  %v6115_v26 = vld [vmem:[#allocation2 + $0x58c] ss:$16 sps:$4 sm:$0xff]  }
  0xc5   :  { %1677 = vmatpush2.bf16.msra.mxu1 %v6017_v25  ;;  %1705 = vmatprep.subr.bf16.mxu0 %v6028_v28  ;;  %v6110_v25 = vld [vmem:[#allocation2 + $0x6a8] ss:$16 sps:$4 sm:$0xff]  }
  0xc6   :  { %1678 = vmatprep.subr.bf16.mxu1 %v6025_v27  ;;  %v6118_v27 = vld [vmem:[#allocation2 + $0x68c] ss:$16 sps:$4 sm:$0xff]   ;;  %v6113_v28 = vld [vmem:[#allocation2 + $0x588] ss:$16 sps:$4 sm:$0xff]  }
  0xc8   :  { %1706 = vmatpush1.bf16.msra.mxu0 %v6026_v51  ;;  %v6121_v51 = vld [vmem:[#allocation2 + $0x56c] ss:$16 sps:$4 sm:$0xff]  }
  0xc9   :  { %1679 = vmatpush2.bf16.msra.mxu1 %v6023_v29  ;;  %1707 = vmatprep.subr.bf16.mxu0 %v6034_v31  ;;  %v6116_v29 = vld [vmem:[#allocation2 + $0x688] ss:$16 sps:$4 sm:$0xff]  }
  0xca   :  { %1680 = vmatprep.subr.bf16.mxu1 %v6031_v30  ;;  %v6124_v30 = vld [vmem:[#allocation2 + $0x66c] ss:$16 sps:$4 sm:$0xff]   ;;  %v6119_v31 = vld [vmem:[#allocation2 + $0x568] ss:$16 sps:$4 sm:$0xff]  }
  0xcc   :  { %1708 = vmatpush1.bf16.msra.mxu0 %v6032_v33  ;;  %v6127_v33 = vld [vmem:[#allocation2 + $0x54c] ss:$16 sps:$4 sm:$0xff]  }
  0xcd   :  { %1681 = vmatpush2.bf16.msra.mxu1 %v6029_v32  ;;  %1709 = vmatprep.subr.bf16.mxu0 %v6040_v36  ;;  %v6122_v32 = vld [vmem:[#allocation2 + $0x668] ss:$16 sps:$4 sm:$0xff]  }
  0xce   :  { %1682 = vmatprep.subr.bf16.mxu1 %v6037_v34  ;;  %v6125_v34 = vld [vmem:[#allocation2 + $0x548] ss:$16 sps:$4 sm:$0xff]  }
  0xcf   :  { %v6128_v36 = vld [vmem:[#allocation2 + $0x648] ss:$16 sps:$4 sm:$0xff]  }
  0xd0   :  { %1710 = vmatpush1.bf16.msra.mxu0 %v6038_v38  ;;  %v6136_v38 = vld [vmem:[#allocation2 + $0x62c] ss:$16 sps:$4 sm:$0xff]  }
  0xd1   :  { %1683 = vmatpush2.bf16.msra.mxu1 %v6035_v37  ;;  %1711 = vmatprep.subr.bf16.mxu0 %v6046_v40  ;;  %v6133_v37 = vld [vmem:[#allocation2 + $0x52c] ss:$16 sps:$4 sm:$0xff]   ;;  %v6134_v40 = vld [vmem:[#allocation2 + $0x628] ss:$16 sps:$4 sm:$0xff]  }
  0xd2   :  { %1684 = vmatprep.subr.bf16.mxu1 %v6043_v39  ;;  %v6131_v39 = vld [vmem:[#allocation2 + $0x528] ss:$16 sps:$4 sm:$0xff]  }
  0xd4   :  { %1712 = vmatpush1.bf16.msra.mxu0 %v6044_v42  ;;  %v6142_v42 = vld [vmem:[#allocation2 + $0x60c] ss:$16 sps:$4 sm:$0xff]  }
  0xd5   :  { %1685 = vmatpush2.bf16.msra.mxu1 %v6041_v41  ;;  %1713 = vmatprep.subr.bf16.mxu0 %v6049_v43  ;;  %v6139_v41 = vld [vmem:[#allocation2 + $0x50c] ss:$16 sps:$4 sm:$0xff]   ;;  %v6137_v43 = vld [vmem:[#allocation2 + $0x508] ss:$16 sps:$4 sm:$0xff]  }
  0xd6   :  { %1740 = vmatprep.subr.bf16.mxu1 %v6052_v44  ;;  %v6140_v44 = vld [vmem:[#allocation2 + $0x608] ss:$16 sps:$4 sm:$0xff]  }
  0xd8   :  { %1687 = vmatmul.mubr.bf16.vlgmr.msra.gmra.mxu1 %v6911_v4  ;;  %1714 = vmatpush2.bf16.msra.mxu0 %v6047_v45  ;;  %v6068_v4 = vld [vmem:[#allocation2 + $0x488] ss:$16 sps:$4 sm:$0xff]   ;;  %v6145_v45 = vld [vmem:[#allocation4 + $0x2a4] ss:$48 sps:$4 sm:$0xff]  }
  0xd9   :  { %1741 = vmatpush1.bf16.msra.mxu1 %v6050_v46  ;;  %1715 = vmatprep.subr.bf16.mxu0 %v6055_v47  ;;  %v6143_v46 = vld [vmem:[#allocation4 + $0x2a0] ss:$48 sps:$4 sm:$0xff]   ;;  %v6148_v47 = vld [vmem:[#allocation4 + $0x244] ss:$48 sps:$4 sm:$0xff]  }
  0xda   :  { %1742 = vmatprep.subr.bf16.mxu1 %v6058_v48  ;;  %1772 = vmatprep.mubr.bf16.mxu1 %v6921_v35  ;;  %v6077_v35 = vld [vmem:[#allocation2 + $0x348] ss:$16 sps:$4 sm:$0xff]  }
  0xdb   :  { %v6752_v48 = vld [vmem:[%s7033_s0 + $0x18] ss:$28 sps:$4 sm:$0xff]  }
  0xdc   :  { %1716 = vmatpush2.bf16.msra.mxu0 %v6053_v50  ;;  %v6146_v50 = vld [vmem:[#allocation4 + $0x240] ss:$48 sps:$4 sm:$0xff]  }
  0xdd   :  { %1743 = vmatpush1.bf16.msra.mxu1 %v6056_v52  ;;  %1717 = vmatprep.subr.bf16.mxu0 %v6061_v53  ;;  %v6151_v52 = vld [vmem:[#allocation4 + $0x1e4] ss:$48 sps:$4 sm:$0xff]   ;;  %v6149_v53 = vld [vmem:[#allocation4 + $0x1e0] ss:$48 sps:$4 sm:$0xff]  }
  0xde   :  { %1744 = vmatprep.subr.bf16.mxu1 %v6064_v54  ;;  %v6154_v54 = vld [vmem:[#allocation4 + $0x184] ss:$48 sps:$4 sm:$0xff]  }
  0xe0   :  { %1718 = vmatpush2.bf16.msra.mxu0 %v6059_v55  ;;  %v6152_v55 = vld [vmem:[#allocation4 + $0x180] ss:$48 sps:$4 sm:$0xff]  }
  0xe1   :  { %1745 = vmatpush1.bf16.msra.mxu1 %v6062_v56  ;;  %1719 = vmatprep.subr.bf16.mxu0 %v6067_v57  ;;  %v6157_v56 = vld [vmem:[#allocation4 + $0x124] ss:$48 sps:$4 sm:$0xff]   ;;  %v6155_v57 = vld [vmem:[#allocation4 + $0x120] ss:$48 sps:$4 sm:$0xff]  }
  0xe2   :  { %1746 = vmatprep.subr.bf16.mxu1 %v6070_v58  ;;  %v6217_v58 = vld [vmem:[#allocation4 + $0x8a4] ss:$48 sps:$4 sm:$0xff]  }
  0xe4   :  { %1720 = vmatpush2.bf16.msra.mxu0 %v6065_v59  ;;  %v6160_v59 = vld [vmem:[#allocation4 + $0xc4] ss:$48 sps:$4 sm:$0xff]  }
  0xe5   :  { %1747 = vmatpush1.bf16.msra.mxu1 %v6068_v4  ;;  %1721 = vmatprep.subr.bf16.mxu0 %v6073_v49  ;;  %v6158_v4 = vld [vmem:[#allocation4 + $0xc0] ss:$48 sps:$4 sm:$0xff]  }
  0xe6   :  { %1748 = vmatprep.subr.bf16.mxu1 %v6076_v60  ;;  %v6221_v49 = vld [vmem:[#allocation4 + $0x840] ss:$48 sps:$4 sm:$0xff]   ;;  %v6223_v60 = vld [vmem:[#allocation4 + $0x844] ss:$48 sps:$4 sm:$0xff]  }
  0xe8   :  { %1722 = vmatpush2.bf16.msra.mxu0 %v6071_v61  ;;  %v6163_v61 = vld [vmem:[#allocation4 + $0x64] ss:$48 sps:$4 sm:$0xff]  }
  0xe9   :  { %1749 = vmatpush1.bf16.msra.mxu1 %v6074_v62  ;;  %1723 = vmatprep.subr.bf16.mxu0 %v6079_v63  ;;  %v6161_v62 = vld [vmem:[#allocation4 + $0x60] ss:$48 sps:$4 sm:$0xff]  }
  0xea   :  { %1750 = vmatprep.subr.bf16.mxu1 %v6082_v0  ;;  %v6227_v63 = vld [vmem:[#allocation4 + $0x7e0] ss:$48 sps:$4 sm:$0xff]   ;;  %v6229_v0 = vld [vmem:[#allocation4 + $0x7e4] ss:$48 sps:$4 sm:$0xff]  }
  0xec   :  { %1724 = vmatpush2.bf16.msra.mxu0 %v6077_v35  ;;  %v6166_v35 = vld [vmem:[#allocation4 + $0x4] ss:$48 sps:$4 sm:$0xff]  }
  0xed   :  { %1751 = vmatpush1.bf16.msra.mxu1 %v6080_v1  ;;  %1725 = vmatprep.subr.bf16.mxu0 %v6085_v2  ;;  %v6164_v1 = vld [vmem:[#allocation4] ss:$48 sps:$4 sm:$0xff]  }
  0xee   :  { %1752 = vmatprep.subr.bf16.mxu1 %v6088_v3  ;;  %v6233_v2 = vld [vmem:[#allocation4 + $0x780] ss:$48 sps:$4 sm:$0xff]   ;;  %v6235_v3 = vld [vmem:[#allocation4 + $0x784] ss:$48 sps:$4 sm:$0xff]  }
  0xf0   :  { %1726 = vmatpush2.bf16.msra.mxu0 %v6083_v5  ;;  %v6169_v5 = vld [vmem:[#allocation4 + $0x5a4] ss:$48 sps:$4 sm:$0xff]  }
  0xf1   :  { %1753 = vmatpush1.bf16.msra.mxu1 %v6086_v6  ;;  %1727 = vmatprep.subr.bf16.mxu0 %v6091_v7  ;;  %v6167_v6 = vld [vmem:[#allocation4 + $0x5a0] ss:$48 sps:$4 sm:$0xff]  }
  0xf2   :  { %1754 = vmatprep.subr.bf16.mxu1 %v6094_v8  ;;  %v6239_v7 = vld [vmem:[#allocation4 + $0x720] ss:$48 sps:$4 sm:$0xff]   ;;  %v6241_v8 = vld [vmem:[#allocation4 + $0x724] ss:$48 sps:$4 sm:$0xff]  }
  0xf4   :  { %1728 = vmatpush2.bf16.msra.mxu0 %v6089_v9  ;;  %v6172_v9 = vld [vmem:[#allocation4 + $0x544] ss:$48 sps:$4 sm:$0xff]  }
  0xf5   :  { %1755 = vmatpush1.bf16.msra.mxu1 %v6092_v10  ;;  %1783 = vmatprep.subr.bf16.mxu0 %v6100_v13  ;;  %v6170_v10 = vld [vmem:[#allocation4 + $0x540] ss:$48 sps:$4 sm:$0xff]   ;;  %v6247_v13 = vld [vmem:[#allocation4 + $0x6c4] ss:$48 sps:$4 sm:$0xff]  }
  0xf6   :  { %1756 = vmatprep.subr.bf16.mxu1 %v6097_v12  ;;  %v6175_v12 = vld [vmem:[#allocation4 + $0x4e4] ss:$48 sps:$4 sm:$0xff]  }
  0xf7   :  { %1730 = vmatmul.mubr.bf16.vlgmr.msra.gmra.mxu0 %v6751_v21  ;;  %v6257_v21 = vld [vmem:[#allocation4 + $0x600] ss:$48 sps:$4 sm:$0xff]  }
  0xf8   :  { %1784 = vmatpush1.bf16.msra.mxu0 %v6098_v16  ;;  %1815 = vmatprep.mubr.bf16.mxu0 %v6853_v14  ;;  %v6130_v14 = vld [vmem:[#allocation2 + $0x64c] ss:$16 sps:$4 sm:$0xff]   ;;  %v6245_v16 = vld [vmem:[#allocation4 + $0x6c0] ss:$48 sps:$4 sm:$0xff]  }
  0xf9   :  { %1757 = vmatpush2.bf16.msra.mxu1 %v6095_v15  ;;  %1785 = vmatprep.subr.bf16.mxu0 %v6106_v18  ;;  %v6173_v15 = vld [vmem:[#allocation4 + $0x4e0] ss:$48 sps:$4 sm:$0xff]   ;;  %v6253_v18 = vld [vmem:[#allocation4 + $0x664] ss:$48 sps:$4 sm:$0xff]  }
  0xfa   :  { %1758 = vmatprep.subr.bf16.mxu1 %v6103_v17  ;;  %v6178_v17 = vld [vmem:[#allocation4 + $0x484] ss:$48 sps:$4 sm:$0xff]  }
  0xfc   :  { %1786 = vmatpush1.bf16.msra.mxu0 %v6104_v20  ;;  %v6176_v20 = vld [vmem:[#allocation4 + $0x480] ss:$48 sps:$4 sm:$0xff]  }
  0xfd   :  { %1759 = vmatpush2.bf16.msra.mxu1 %v6101_v19  ;;  %1787 = vmatprep.subr.bf16.mxu0 %v6112_v23  ;;  %v6251_v19 = vld [vmem:[#allocation4 + $0x660] ss:$48 sps:$4 sm:$0xff]   ;;  %v6181_v23 = vld [vmem:[#allocation4 + $0x424] ss:$48 sps:$4 sm:$0xff]  }
  0xfe   :  { %1760 = vmatprep.subr.bf16.mxu1 %v6109_v22  ;;  %v6259_v22 = vld [vmem:[#allocation4 + $0x604] ss:$48 sps:$4 sm:$0xff]  }
 0x100   :  { %1788 = vmatpush1.bf16.msra.mxu0 %v6110_v25  ;;  %v6184_v25 = vld [vmem:[#allocation4 + $0x3c4] ss:$48 sps:$4 sm:$0xff]  }
 0x101   :  { %1761 = vmatpush2.bf16.msra.mxu1 %v6107_v24  ;;  %1789 = vmatprep.subr.bf16.mxu0 %v6118_v27  ;;  %v6179_v24 = vld [vmem:[#allocation4 + $0x420] ss:$48 sps:$4 sm:$0xff]   ;;  %v6265_v27 = vld [vmem:[#allocation4 + $0xba4] ss:$48 sps:$4 sm:$0xff]  }
 0x102   :  { %1762 = vmatprep.subr.bf16.mxu1 %v6115_v26  ;;  %v6263_v26 = vld [vmem:[#allocation4 + $0xba0] ss:$48 sps:$4 sm:$0xff]  }
 0x104   :  { %1790 = vmatpush1.bf16.msra.mxu0 %v6116_v29  ;;  %v6182_v29 = vld [vmem:[#allocation4 + $0x3c0] ss:$48 sps:$4 sm:$0xff]  }
 0x105   :  { %1763 = vmatpush2.bf16.msra.mxu1 %v6113_v28  ;;  %1791 = vmatprep.subr.bf16.mxu0 %v6124_v30  ;;  %v6268_v28 = vld [vmem:[#allocation4 + $0xb44] ss:$48 sps:$4 sm:$0xff]  }
 0x106   :  { %1764 = vmatprep.subr.bf16.mxu1 %v6121_v51  ;;  %v6266_v51 = vld [vmem:[#allocation4 + $0xb40] ss:$48 sps:$4 sm:$0xff]   ;;  %v6187_v30 = vld [vmem:[#allocation4 + $0x364] ss:$48 sps:$4 sm:$0xff]  }
 0x108   :  { %1792 = vmatpush1.bf16.msra.mxu0 %v6122_v32  ;;  %v6185_v32 = vld [vmem:[#allocation4 + $0x360] ss:$48 sps:$4 sm:$0xff]  }
 0x109   :  { %1765 = vmatpush2.bf16.msra.mxu1 %v6119_v31  ;;  %1793 = vmatprep.subr.bf16.mxu0 %v6130_v14  ;;  %v6271_v31 = vld [vmem:[#allocation4 + $0xae4] ss:$48 sps:$4 sm:$0xff]  }
 0x10a   :  { %1766 = vmatprep.subr.bf16.mxu1 %v6127_v33  ;;  %v6269_v33 = vld [vmem:[#allocation4 + $0xae0] ss:$48 sps:$4 sm:$0xff]   ;;  %v6190_v14 = vld [vmem:[#allocation4 + $0x304] ss:$48 sps:$4 sm:$0xff]  }
 0x10c   :  { %1794 = vmatpush1.bf16.msra.mxu0 %v6128_v36  ;;  %v6188_v36 = vld [vmem:[#allocation4 + $0x300] ss:$48 sps:$4 sm:$0xff]  }
 0x10d   :  { %1767 = vmatpush2.bf16.msra.mxu1 %v6125_v34  ;;  %1795 = vmatprep.subr.bf16.mxu0 %v6136_v38  ;;  %v6274_v34 = vld [vmem:[#allocation4 + $0xa84] ss:$48 sps:$4 sm:$0xff]   ;;  %v6193_v38 = vld [vmem:[#allocation4 + $0x2ac] ss:$48 sps:$4 sm:$0xff]  }
 0x10e   :  { %1768 = vmatprep.subr.bf16.mxu1 %v6133_v37  ;;  %v6272_v37 = vld [vmem:[#allocation4 + $0xa80] ss:$48 sps:$4 sm:$0xff]  }
 0x110   :  { %1796 = vmatpush1.bf16.msra.mxu0 %v6134_v40  ;;  %v6275_v40 = vld [vmem:[#allocation4 + $0xa20] ss:$48 sps:$4 sm:$0xff]  }
 0x111   :  { %1769 = vmatpush2.bf16.msra.mxu1 %v6131_v39  ;;  %1797 = vmatprep.subr.bf16.mxu0 %v6142_v42  ;;  %v6277_v39 = vld [vmem:[#allocation4 + $0xa24] ss:$48 sps:$4 sm:$0xff]   ;;  %v6278_v42 = vld [vmem:[#allocation4 + $0x9c0] ss:$48 sps:$4 sm:$0xff]  }
 0x112   :  { %1770 = vmatprep.subr.bf16.mxu1 %v6139_v41  ;;  %v6280_v41 = vld [vmem:[#allocation4 + $0x9c4] ss:$48 sps:$4 sm:$0xff]  }
 0x114   :  { %1798 = vmatpush1.bf16.msra.mxu0 %v6140_v44  ;;  %v6281_v44 = vld [vmem:[#allocation4 + $0x960] ss:$48 sps:$4 sm:$0xff]  }
 0x115   :  { %1771 = vmatpush2.bf16.msra.mxu1 %v6137_v43  ;;  %2622 = vmatprep.subr.bf16.mxu0 %v6145_v45  ;;  %v6283_v43 = vld [vmem:[#allocation4 + $0x964] ss:$48 sps:$4 sm:$0xff]  }
 0x116   :  { %2665 = vmatprep.subr.bf16.mxu1 %v6217_v58  ;;  %v6286_v45 = vld [vmem:[#allocation4 + $0x904] ss:$48 sps:$4 sm:$0xff]  }
 0x117   :  { %1816 = vmatmul.mubr.bf16.vlgmr.msra.gmra.mxu0 %v6752_v48 }
 0x118   :  { %1773 = vmatmul.mubr.bf16.vlgmr.msra.gmra.mxu1 %v6931_v11  ;;  %2623 = vmatpush1.bf16.msra.mxu0 %v6143_v46  ;;  %v6215_v11 = vld [vmem:[#allocation4 + $0x8a0] ss:$48 sps:$4 sm:$0xff]   ;;  %v310_v46 = vlaneseq }
 0x119   :  { %2624 = vmatprep.subr.bf16.mxu0 %v6148_v47  ;;  %2666 = vmatpush1.bf16.msra.mxu1 %v6215_v11  ;;  %v6284_v47 = vld [vmem:[#allocation4 + $0x900] ss:$48 sps:$4 sm:$0xff]  }
 0x11a   :  { %2667 = vmatprep.subr.bf16.mxu1 %v6223_v60 }
 0x11c   :  { %2625 = vmatpush1.bf16.msra.mxu0 %v6146_v50  ;;  %v6289_v50 = vld [vmem:[#allocation4 + $0x8ac] ss:$48 sps:$4 sm:$0xff]  }
 0x11d   :  { %2626 = vmatprep.subr.bf16.mxu0 %v6151_v52  ;;  %2668 = vmatpush1.bf16.msra.mxu1 %v6221_v49  ;;  %v6945_v52 = vshrl.u32 %v310_v46, 7  ;;  %v6226_v46 = vld [vmem:[#allocation4 + $0x54c] ss:$48 sps:$4 sm:$0xff]  }
 0x11e   :  { %2669 = vmatprep.subr.bf16.mxu1 %v6229_v0 }
 0x120   :  { %2627 = vmatpush1.bf16.msra.mxu0 %v6149_v53  ;;  %v6947_v53 = vld [vmem:[#allocation7] sm:$0xff] }
 0x121   :  { %2628 = vmatprep.subr.bf16.mxu0 %v6154_v54  ;;  %2670 = vmatpush1.bf16.msra.mxu1 %v6227_v63 }
 0x122   :  { %2671 = vmatprep.subr.bf16.mxu1 %v6235_v3 }
 0x124   :  { %2629 = vmatpush1.bf16.msra.mxu0 %v6152_v55 }
 0x125   :  { %2630 = vmatprep.subr.bf16.mxu0 %v6157_v56  ;;  %2672 = vmatpush1.bf16.msra.mxu1 %v6233_v2  ;;  %v6950_v56 = vsub.s32 0, %v6945_v52 }
 0x126   :  { %2673 = vmatprep.subr.bf16.mxu1 %v6241_v8 }
 0x128   :  { %2631 = vmatpush1.bf16.msra.mxu0 %v6155_v57  ;;  %v6952_v57 = vld [vmem:[#allocation7 + $0x8] sm:$0xff] }
 0x129   :  { %2632 = vmatprep.subr.bf16.mxu0 %v6160_v59  ;;  %2674 = vmatpush1.bf16.msra.mxu1 %v6239_v7  ;;  %v313_v59 = vrot.slane %v6947_v53, %v6950_v56 }
 0x12a   :  { %2675 = vmatprep.subr.bf16.mxu1 %v6247_v13 }
 0x12c   :  { %2633 = vmatpush1.bf16.msra.mxu0 %v6158_v4  ;;  %v317_v4 = vrot.slane %v6952_v57, %v6950_v56 }
 0x12d   :  { %2634 = vmatprep.subr.bf16.mxu0 %v6163_v61  ;;  %2676 = vmatpush1.bf16.msra.mxu1 %v6245_v16 }
 0x12e   :  { %2677 = vmatprep.subr.bf16.mxu1 %v6253_v18 }
 0x130   :  { %2635 = vmatpush1.bf16.msra.mxu0 %v6161_v62 }
 0x131   :  { %2636 = vmatprep.subr.bf16.mxu0 %v6166_v35  ;;  %2678 = vmatpush1.bf16.msra.mxu1 %v6251_v19 }
 0x132   :  { %2679 = vmatprep.subr.bf16.mxu1 %v6259_v22 }
 0x134   :  { %2637 = vmatpush1.bf16.msra.mxu0 %v6164_v1 }
 0x135   :  { %2638 = vmatprep.subr.bf16.mxu0 %v6169_v5  ;;  %2680 = vmatpush1.bf16.msra.mxu1 %v6257_v21 }
 0x136   :  { %2681 = vmatprep.subr.bf16.mxu1 %v6265_v27 }
 0x137   :  { %v1516_v54 = vpop.f32.mrf.mxu0 }
 0x138   :  { %2639 = vmatpush2.bf16.msra.mxu0 %v6167_v6  ;;  %v1559_v48 = vpop.f32.mrf.mxu1  ;;  %v1517_v61 = vadd.f32 %v1516_v54, %v313_v59  ;;  %v6238_v54 = vld [vmem:[#allocation4 + $0x48c] ss:$48 sps:$4 sm:$0xff]  }
 0x139   :  { %2640 = vmatprep.subr.bf16.mxu0 %v6172_v9  ;;  %2682 = vmatpush2.bf16.msra.mxu1 %v6263_v26  ;;  %v1518_v11 = vpop.f32.mrf.mxu0 }
 0x13a   :  { %2683 = vmatprep.subr.bf16.mxu1 %v6268_v28  ;;  %v1561_v55 = vpop.f32.mrf.mxu1  ;;  %v1519_v63 = vadd.f32 %v1518_v11, %v317_v4  ;;  %v1560_v35 = vadd.f32 %v1559_v48, %v1517_v61  ;;  %v6232_v48 = vld [vmem:[#allocation4 + $0x4ec] ss:$48 sps:$4 sm:$0xff]  }
 0x13b   :  { %v1520_v49 = vpop.f32.mrf.mxu0  ;;  %v6244_v11 = vld [vmem:[#allocation4 + $0x42c] ss:$48 sps:$4 sm:$0xff]  }
 0x13c   :  { %2641 = vmatpush2.bf16.msra.mxu0 %v6170_v10  ;;  %v1563_v58 = vpop.f32.mrf.mxu1  ;;  %v1521_v1 = vadd.f32 %v1520_v49, %v313_v59  ;;  %v1562_v5 = vadd.f32 %v1561_v55, %v1519_v63  ;;  %v6236_v55 = vld [vmem:[#allocation4 + $0x488] ss:$48 sps:$4 sm:$0xff]   ;;  %v6250_v59 = vld [vmem:[#allocation4 + $0x3cc] ss:$48 sps:$4 sm:$0xff]  }
 0x13d   :  { %2642 = vmatprep.subr.bf16.mxu0 %v6175_v12  ;;  %2684 = vmatpush2.bf16.msra.mxu1 %v6266_v51  ;;  %v1522_v0 = vpop.f32.mrf.mxu0  ;;  %v6196_v51 = vld [vmem:[#allocation4 + $0x24c] ss:$48 sps:$4 sm:$0xff]  }
 0x13e   :  { %2685 = vmatprep.subr.bf16.mxu1 %v6271_v31  ;;  %v1565_v60 = vpop.f32.mrf.mxu1  ;;  %v1523_v6 = vadd.f32 %v1522_v0, %v317_v4  ;;  %v1564_v9 = vadd.f32 %v1563_v58, %v1521_v1  ;;  %v6194_v31 = vld [vmem:[#allocation4 + $0x248] ss:$48 sps:$4 sm:$0xff]   ;;  %v6256_v49 = vld [vmem:[#allocation4 + $0x36c] ss:$48 sps:$4 sm:$0xff]  }
 0x13f   :  { %v6242_v58 = vld [vmem:[#allocation4 + $0x428] ss:$48 sps:$4 sm:$0xff]   ;;  %v6262_v61 = vld [vmem:[#allocation4 + $0x30c] ss:$48 sps:$4 sm:$0xff]  }
 0x140   :  { %2643 = vmatpush2.bf16.msra.mxu0 %v6173_v15  ;;  %v1566_v15 = vadd.f32 %v1565_v60, %v1523_v6  ;;  %v6248_v4 = vld [vmem:[#allocation4 + $0x3c8] ss:$48 sps:$4 sm:$0xff]   ;;  %v6340_v6 = vld [vmem:[#allocation4 + $0x254] ss:$48 sps:$4 sm:$0xff]  }
 0x141   :  { %2644 = vmatprep.subr.bf16.mxu0 %v6178_v17  ;;  %2686 = vmatpush2.bf16.msra.mxu1 %v6269_v33  ;;  %v6197_v33 = vld [vmem:[#allocation4 + $0x1e8] ss:$48 sps:$4 sm:$0xff]  }
 0x142   :  { %2687 = vmatprep.subr.bf16.mxu1 %v6274_v34  ;;  %v6200_v34 = vld [vmem:[#allocation4 + $0x188] ss:$48 sps:$4 sm:$0xff]  }
 0x143   :  { %v6254_v60 = vld [vmem:[#allocation4 + $0x368] ss:$48 sps:$4 sm:$0xff]  }
 0x144   :  { %2645 = vmatpush2.bf16.msra.mxu0 %v6176_v20 }
 0x145   :  { %2646 = vmatprep.subr.bf16.mxu0 %v6181_v23  ;;  %2688 = vmatpush2.bf16.msra.mxu1 %v6272_v37  ;;  %v6203_v37 = vld [vmem:[#allocation4 + $0x128] ss:$48 sps:$4 sm:$0xff]  }
 0x146   :  { %2689 = vmatprep.subr.bf16.mxu1 %v6277_v39  ;;  %v6206_v39 = vld [vmem:[#allocation4 + $0xc8] ss:$48 sps:$4 sm:$0xff]  }
 0x148   :  { %2647 = vmatpush2.bf16.msra.mxu0 %v6179_v24 }
 0x149   :  { %2648 = vmatprep.subr.bf16.mxu0 %v6184_v25  ;;  %2690 = vmatpush2.bf16.msra.mxu1 %v6275_v40  ;;  %v6211_v40 = vld [vmem:[#allocation4 + $0x6c] ss:$48 sps:$4 sm:$0xff]  }
 0x14a   :  { %2691 = vmatprep.subr.bf16.mxu1 %v6280_v41  ;;  %v6209_v41 = vld [vmem:[#allocation4 + $0x68] ss:$48 sps:$4 sm:$0xff]  }
 0x14c   :  { %2649 = vmatpush2.bf16.msra.mxu0 %v6182_v29  ;;  %v6191_v29 = vld [vmem:[#allocation4 + $0x2a8] ss:$48 sps:$4 sm:$0xff]  }
 0x14d   :  { %2650 = vmatprep.subr.bf16.mxu0 %v6187_v30  ;;  %2692 = vmatpush2.bf16.msra.mxu1 %v6278_v42  ;;  %v6214_v42 = vld [vmem:[#allocation4 + $0xc] ss:$48 sps:$4 sm:$0xff]  }
 0x14e   :  { %2693 = vmatprep.subr.bf16.mxu1 %v6283_v43  ;;  %v6212_v43 = vld [vmem:[#allocation4 + $0x8] ss:$48 sps:$4 sm:$0xff]  }
 0x150   :  { %2651 = vmatpush2.bf16.msra.mxu0 %v6185_v32  ;;  %v6199_v32 = vld [vmem:[#allocation4 + $0x1ec] ss:$48 sps:$4 sm:$0xff]  }
 0x151   :  { %2652 = vmatprep.subr.bf16.mxu0 %v6190_v14  ;;  %2694 = vmatpush2.bf16.msra.mxu1 %v6281_v44  ;;  %v6202_v14 = vld [vmem:[#allocation4 + $0x18c] ss:$48 sps:$4 sm:$0xff]  }
 0x152   :  { %2695 = vmatprep.subr.bf16.mxu1 %v6286_v45  ;;  %v6220_v44 = vld [vmem:[#allocation4 + $0x5ac] ss:$48 sps:$4 sm:$0xff]   ;;  %v6218_v45 = vld [vmem:[#allocation4 + $0x5a8] ss:$48 sps:$4 sm:$0xff]  }
 0x154   :  { %2653 = vmatpush2.bf16.msra.mxu0 %v6188_v36  ;;  %v6205_v36 = vld [vmem:[#allocation4 + $0x12c] ss:$48 sps:$4 sm:$0xff]  }
 0x155   :  { %2708 = vmatprep.subr.bf16.mxu0 %v6193_v38  ;;  %2696 = vmatpush2.bf16.msra.mxu1 %v6284_v47  ;;  %v6208_v38 = vld [vmem:[#allocation4 + $0xcc] ss:$48 sps:$4 sm:$0xff]   ;;  %v6224_v47 = vld [vmem:[#allocation4 + $0x548] ss:$48 sps:$4 sm:$0xff]  }
 0x156   :  { %2751 = vmatprep.subr.bf16.mxu1 %v6289_v50  ;;  %v6230_v50 = vld [vmem:[#allocation4 + $0x4e8] ss:$48 sps:$4 sm:$0xff]  }
 0x158   :  { %v1645_v62 = vpop.f32.mrf.mxu1 }
 0x15a   :  { %v1647_v2 = vpop.f32.mrf.mxu1 }
 0x15c   :  { %v1649_v12 = vpop.f32.mrf.mxu1 }
 0x15e   :  { %v1651_v22 = vpop.f32.mrf.mxu1 }
 0x177   :  { %v1602_v3 = vpop.f32.mrf.mxu0 }
 0x178   :  { %v1603_v7 = vadd.f32 %v1602_v3, %v1560_v35  ;;  %v6337_v3 = vld [vmem:[#allocation4 + $0x2b4] ss:$48 sps:$4 sm:$0xff]  }
 0x179   :  { %v1604_v8 = vpop.f32.mrf.mxu0 }
 0x17a   :  { %v1605_v10 = vadd.f32 %v1604_v8, %v1562_v5  ;;  %v1646_v16 = vadd.f32 %v1645_v62, %v1603_v7  ;;  %v6260_v62 = vld [vmem:[#allocation4 + $0x308] ss:$48 sps:$4 sm:$0xff]   ;;  %v6964_v7 = vld [vmem:[#allocation7 + $0x10] sm:$0xff] }
 0x17b   :  { %v1606_v13 = vpop.f32.mrf.mxu0  ;;  %v6962_v5 = vld [vmem:[#allocation7 + $0x18] sm:$0xff] }
 0x17c   :  { %v1607_v17 = vadd.f32 %v1606_v13, %v1564_v9  ;;  %v1648_v19 = vadd.f32 %v1647_v2, %v1605_v10  ;;  %v1826_v23 = vmax.f32 %v1646_v16, 0.0  ;;  %v6335_v2 = vld [vmem:[#allocation4 + $0x2b0] ss:$48 sps:$4 sm:$0xff]   ;;  %v6343_v13 = vld [vmem:[#allocation4 + $0x1f4] ss:$48 sps:$4 sm:$0xff]  }
 0x17d   :  { %v1608_v18 = vpop.f32.mrf.mxu0  ;;  %v6338_v10 = vld [vmem:[#allocation4 + $0x250] ss:$48 sps:$4 sm:$0xff]  }
 0x17e   :  { %v1650_v20 = vadd.f32 %v1649_v12, %v1607_v17  ;;  %v1609_v21 = vadd.f32 %v1608_v18, %v1566_v15  ;;  %v1827_v26 = vmax.f32 %v1648_v19, 0.0  ;;  %v325_v12 = vrot.slane %v6962_v5, %v6950_v56  ;;  %v6341_v18 = vld [vmem:[#allocation4 + $0x1f0] ss:$48 sps:$4 sm:$0xff]  }
 0x17f   :  { %v321_v15 = vrot.slane %v6964_v7, %v6950_v56 }
 0x180   :  { %v1830_v24 = vmax.f32 %v1650_v20, 0.0  ;;  %v1652_v25 = vadd.f32 %v1651_v22, %v1609_v21  ;;  %v6346_v20 = vld [vmem:[#allocation4 + $0x194] ss:$48 sps:$4 sm:$0xff]  }
 0x182   :  { %v1831_v27 = vmax.f32 %v1652_v25, 0.0  ;;  %v6958_v30 = vpack.c.bf16 %v1830_v24, %v1826_v23 }
 0x184   :  { %v1835_v28 = vpack.c.bf16 %v1831_v27, %v1827_v26 }
 0x186   :  { %2654 = vmatprep.mubr.bf16.mxu0 %v1835_v28 }
 0x187   :  { %2655 = vmatmul.mubr.bf16.vlgmr.msra.gmra.mxu0 %v6958_v30 }
 0x188   :  { %2709 = vmatpush1.bf16.msra.mxu0 %v6191_v29  ;;  %2740 = vmatprep.mubr.bf16.mxu0 %v1835_v28  ;;  %v6344_v29 = vld [vmem:[#allocation4 + $0x190] ss:$48 sps:$4 sm:$0xff]  }
 0x189   :  { %2710 = vmatprep.subr.bf16.mxu0 %v6196_v51 }
 0x18c   :  { %2711 = vmatpush1.bf16.msra.mxu0 %v6194_v31  ;;  %v6349_v31 = vld [vmem:[#allocation4 + $0x134] ss:$48 sps:$4 sm:$0xff]  }
 0x18d   :  { %2712 = vmatprep.subr.bf16.mxu0 %v6199_v32 }
 0x190   :  { %2713 = vmatpush1.bf16.msra.mxu0 %v6197_v33 }
 0x191   :  { %2714 = vmatprep.subr.bf16.mxu0 %v6202_v14 }
 0x194   :  { %2715 = vmatpush1.bf16.msra.mxu0 %v6200_v34 }
 0x195   :  { %2716 = vmatprep.subr.bf16.mxu0 %v6205_v36 }
 0x198   :  { %2717 = vmatpush1.bf16.msra.mxu0 %v6203_v37  ;;  %v1688_v63 = vpop.f32.mrf.mxu1 }
 0x199   :  { %2718 = vmatprep.subr.bf16.mxu0 %v6208_v38  ;;  %v1689_v21 = vadd.f32 %v1688_v63, %v321_v15  ;;  %v6347_v38 = vld [vmem:[#allocation4 + $0x130] ss:$48 sps:$4 sm:$0xff]   ;;  %v6304_v63 = vld [vmem:[#allocation4 + $0x6cc] ss:$48 sps:$4 sm:$0xff]  }
 0x19a   :  { %v1690_v35 = vpop.f32.mrf.mxu1 }
 0x19b   :  { %v1691_v19 = vadd.f32 %v1690_v35, %v325_v12  ;;  %v6307_v35 = vld [vmem:[#allocation4 + $0x66c] ss:$48 sps:$4 sm:$0xff]  }
 0x19c   :  { %2719 = vmatpush1.bf16.msra.mxu0 %v6206_v39  ;;  %v1692_v8 = vpop.f32.mrf.mxu1 }
 0x19d   :  { %2720 = vmatprep.subr.bf16.mxu0 %v6211_v40  ;;  %v1693_v24 = vadd.f32 %v1692_v8, %v321_v15  ;;  %v6311_v8 = vld [vmem:[#allocation4 + $0xba8] ss:$48 sps:$4 sm:$0xff]   ;;  %v6319_v15 = vld [vmem:[#allocation4 + $0xaec] ss:$48 sps:$4 sm:$0xff]  }
 0x19e   :  { %v1694_v16 = vpop.f32.mrf.mxu1 }
 0x19f   :  { %v1695_v51 = vadd.f32 %v1694_v16, %v325_v12  ;;  %v6314_v12 = vld [vmem:[#allocation4 + $0xb48] ss:$48 sps:$4 sm:$0xff]   ;;  %v6355_v16 = vld [vmem:[#allocation4 + $0x74] ss:$48 sps:$4 sm:$0xff]  }
 0x1a0   :  { %2721 = vmatpush1.bf16.msra.mxu0 %v6209_v41 }
 0x1a1   :  { %2722 = vmatprep.subr.bf16.mxu0 %v6214_v42 }
 0x1a4   :  { %2723 = vmatpush1.bf16.msra.mxu0 %v6212_v43 }
 0x1a5   :  { %2724 = vmatprep.subr.bf16.mxu0 %v6220_v44 }
 0x1a8   :  { %2725 = vmatpush2.bf16.msra.mxu0 %v6218_v45 }
 0x1a9   :  { %2726 = vmatprep.subr.bf16.mxu0 %v6226_v46 }
 0x1ac   :  { %2727 = vmatpush2.bf16.msra.mxu0 %v6224_v47 }
 0x1ad   :  { %2728 = vmatprep.subr.bf16.mxu0 %v6232_v48 }
 0x1b0   :  { %2729 = vmatpush2.bf16.msra.mxu0 %v6230_v50 }
 0x1b1   :  { %2730 = vmatprep.subr.bf16.mxu0 %v6238_v54  ;;  %v6287_v54 = vld [vmem:[#allocation4 + $0x8a8] ss:$48 sps:$4 sm:$0xff]  }
 0x1b4   :  { %2731 = vmatpush2.bf16.msra.mxu0 %v6236_v55 }
 0x1b5   :  { %2732 = vmatprep.subr.bf16.mxu0 %v6244_v11  ;;  %v6292_v11 = vld [vmem:[#allocation4 + $0x84c] ss:$48 sps:$4 sm:$0xff]  }
 0x1b7   :  { %v1731_v0 = vpop.f32.mrf.mxu0 }
 0x1b8   :  { %2733 = vmatpush2.bf16.msra.mxu0 %v6242_v58  ;;  %v1732_v26 = vadd.f32 %v1731_v0, %v1689_v21  ;;  %v6290_v58 = vld [vmem:[#allocation4 + $0x848] ss:$48 sps:$4 sm:$0xff]   ;;  %v6358_v21 = vld [vmem:[#allocation4 + $0x14] ss:$48 sps:$4 sm:$0xff]  }
 0x1b9   :  { %2734 = vmatprep.subr.bf16.mxu0 %v6250_v59  ;;  %v1733_v1 = vpop.f32.mrf.mxu0  ;;  %v6295_v59 = vld [vmem:[#allocation4 + $0x7ec] ss:$48 sps:$4 sm:$0xff]   ;;  %v6302_v0 = vld [vmem:[#allocation4 + $0x6c8] ss:$48 sps:$4 sm:$0xff]  }
 0x1ba   :  { %v1734_v25 = vadd.f32 %v1733_v1, %v1691_v19  ;;  %v6305_v1 = vld [vmem:[#allocation4 + $0x668] ss:$48 sps:$4 sm:$0xff]   ;;  %v6322_v19 = vld [vmem:[#allocation4 + $0xa8c] ss:$48 sps:$4 sm:$0xff]  }
 0x1bb   :  { %v1735_v9 = vpop.f32.mrf.mxu0 }
 0x1bc   :  { %2735 = vmatpush2.bf16.msra.mxu0 %v6248_v4  ;;  %v6293_v4 = vld [vmem:[#allocation4 + $0x7e8] ss:$48 sps:$4 sm:$0xff]  }
 0x1bd   :  { %2736 = vmatprep.subr.bf16.mxu0 %v6256_v49  ;;  %v1737_v17 = vpop.f32.mrf.mxu0  ;;  %v6298_v49 = vld [vmem:[#allocation4 + $0x78c] ss:$48 sps:$4 sm:$0xff]  }
 0x1be   :  { %v1738_v34 = vadd.f32 %v1737_v17, %v1695_v51  ;;  %v6317_v17 = vld [vmem:[#allocation4 + $0xae8] ss:$48 sps:$4 sm:$0xff]   ;;  %v6367_v51 = vld [vmem:[#allocation4 + $0x4f4] ss:$48 sps:$4 sm:$0xff]  }
 0x1c0   :  { %2737 = vmatpush2.bf16.msra.mxu0 %v6254_v60  ;;  %v6296_v60 = vld [vmem:[#allocation4 + $0x788] ss:$48 sps:$4 sm:$0xff]  }
 0x1c1   :  { %2738 = vmatprep.subr.bf16.mxu0 %v6262_v61  ;;  %v6301_v61 = vld [vmem:[#allocation4 + $0x72c] ss:$48 sps:$4 sm:$0xff]  }
 0x1c4   :  { %2739 = vmatpush2.bf16.msra.mxu0 %v6260_v62  ;;  %v6299_v62 = vld [vmem:[#allocation4 + $0x728] ss:$48 sps:$4 sm:$0xff]  }
 0x1c5   :  { %3590 = vmatprep.subr.bf16.mxu0 %v6337_v3  ;;  %v6308_v3 = vld [vmem:[#allocation4 + $0x608] ss:$48 sps:$4 sm:$0xff]  }
 0x1c7   :  { %2741 = vmatmul.mubr.bf16.vlgmr.msra.gmra.mxu0 %v6958_v30  ;;  %v1736_v30 = vadd.f32 %v1735_v9, %v1693_v24  ;;  %v6316_v9 = vld [vmem:[#allocation4 + $0xb4c] ss:$48 sps:$4 sm:$0xff]  }
 0x1c8   :  { %3591 = vmatpush1.bf16.msra.mxu0 %v6335_v2  ;;  %v6310_v2 = vld [vmem:[#allocation4 + $0x60c] ss:$48 sps:$4 sm:$0xff]  }
 0x1c9   :  { %3592 = vmatprep.subr.bf16.mxu0 %v6340_v6  ;;  %v6313_v6 = vld [vmem:[#allocation4 + $0xbac] ss:$48 sps:$4 sm:$0xff]  }
 0x1ca   :  { %v6325_v24 = vld [vmem:[#allocation4 + $0xa2c] ss:$48 sps:$4 sm:$0xff]  }
 0x1cc   :  { %3593 = vmatpush1.bf16.msra.mxu0 %v6338_v10  ;;  %v6352_v10 = vld [vmem:[#allocation4 + $0xd4] ss:$48 sps:$4 sm:$0xff]  }
 0x1cd   :  { %3594 = vmatprep.subr.bf16.mxu0 %v6343_v13  ;;  %v6350_v13 = vld [vmem:[#allocation4 + $0xd0] ss:$48 sps:$4 sm:$0xff]  }
 0x1d0   :  { %3595 = vmatpush1.bf16.msra.mxu0 %v6341_v18  ;;  %v6353_v18 = vld [vmem:[#allocation4 + $0x70] ss:$48 sps:$4 sm:$0xff]  }
 0x1d1   :  { %3596 = vmatprep.subr.bf16.mxu0 %v6346_v20  ;;  %v6356_v20 = vld [vmem:[#allocation4 + $0x10] ss:$48 sps:$4 sm:$0xff]  }
 0x1d4   :  { %3597 = vmatpush1.bf16.msra.mxu0 %v6344_v29  ;;  %v6362_v29 = vld [vmem:[#allocation4 + $0x550] ss:$48 sps:$4 sm:$0xff]  }
 0x1d5   :  { %3598 = vmatprep.subr.bf16.mxu0 %v6349_v31  ;;  %v6365_v31 = vld [vmem:[#allocation4 + $0x4f0] ss:$48 sps:$4 sm:$0xff]  }
 0x1d7   :  { %v1817_v23 = vpop.f32.mrf.mxu0 }
 0x1d8   :  { %v1774_v22 = vpop.f32.mrf.mxu1  ;;  %3599 = vmatpush1.bf16.msra.mxu0 %v6347_v38  ;;  %v6371_v38 = vld [vmem:[#allocation4 + $0x430] ss:$48 sps:$4 sm:$0xff]  }
 0x1d9   :  { %v1819_v28 = vpop.f32.mrf.mxu0  ;;  %v1775_v32 = vadd.f32 %v1774_v22, %v1732_v26  ;;  %3600 = vmatprep.subr.bf16.mxu0 %v6352_v10  ;;  %v6361_v22 = vld [vmem:[#allocation4 + $0x5b4] ss:$48 sps:$4 sm:$0xff]  }
 0x1da   :  { %v1776_v27 = vpop.f32.mrf.mxu1  ;;  %v6364_v26 = vld [vmem:[#allocation4 + $0x554] ss:$48 sps:$4 sm:$0xff]  }
 0x1db   :  { %v1777_v56 = vadd.f32 %v1776_v27, %v1734_v25  ;;  %v1821_v14 = vpop.f32.mrf.mxu0  ;;  %v1818_v42 = vadd.f32 %v1817_v23, %v1775_v32  ;;  %v6320_v23 = vld [vmem:[#allocation4 + $0xa88] ss:$48 sps:$4 sm:$0xff]   ;;  %v6359_v25 = vld [vmem:[#allocation4 + $0x5b0] ss:$48 sps:$4 sm:$0xff]   ;;  %v6370_v32 = vld [vmem:[#allocation4 + $0x494] ss:$48 sps:$4 sm:$0xff]  }
 0x1dc   :  { %v1778_v33 = vpop.f32.mrf.mxu1  ;;  %3601 = vmatpush1.bf16.msra.mxu0 %v6350_v13  ;;  %v6323_v27 = vld [vmem:[#allocation4 + $0xa28] ss:$48 sps:$4 sm:$0xff]   ;;  %v6451_v10 = vld [vmem:[#allocation4 + $0xa94] ss:$48 sps:$4 sm:$0xff]  }
 0x1dd   :  { %v1779_v36 = vadd.f32 %v1778_v33, %v1736_v30  ;;  %v1820_v39 = vadd.f32 %v1819_v28, %v1777_v56  ;;  %v1823_v43 = vpop.f32.mrf.mxu0  ;;  %v1828_v48 = vmax.f32 %v1818_v42, 0.0  ;;  %3602 = vmatprep.subr.bf16.mxu0 %v6355_v16  ;;  %v6328_v28 = vld [vmem:[#allocation4 + $0x9cc] ss:$48 sps:$4 sm:$0xff]   ;;  %v6326_v30 = vld [vmem:[#allocation4 + $0x9c8] ss:$48 sps:$4 sm:$0xff]  }
 0x1de   :  { %v1780_v37 = vpop.f32.mrf.mxu1  ;;  %v6331_v56 = vld [vmem:[#allocation4 + $0x96c] ss:$48 sps:$4 sm:$0xff]   ;;  %v6329_v33 = vld [vmem:[#allocation4 + $0x968] ss:$48 sps:$4 sm:$0xff]   ;;  %v6377_v42 = vld [vmem:[#allocation4 + $0x370] ss:$48 sps:$4 sm:$0xff]  }
 0x1df   :  { %v1822_v40 = vadd.f32 %v1821_v14, %v1779_v36  ;;  %v1781_v41 = vadd.f32 %v1780_v37, %v1738_v34  ;;  %v1829_v46 = vmax.f32 %v1820_v39, 0.0  ;;  %v6334_v14 = vld [vmem:[#allocation4 + $0x90c] ss:$48 sps:$4 sm:$0xff]   ;;  %v6368_v34 = vld [vmem:[#allocation4 + $0x490] ss:$48 sps:$4 sm:$0xff]  }
 0x1e0   :  { %3603 = vmatpush1.bf16.msra.mxu0 %v6353_v18  ;;  %v6373_v36 = vld [vmem:[#allocation4 + $0x434] ss:$48 sps:$4 sm:$0xff]   ;;  %v6332_v37 = vld [vmem:[#allocation4 + $0x908] ss:$48 sps:$4 sm:$0xff]   ;;  %v6461_v16 = vld [vmem:[#allocation4 + $0x9d0] ss:$48 sps:$4 sm:$0xff]  }
 0x1e1   :  { %v1824_v44 = vadd.f32 %v1823_v43, %v1781_v41  ;;  %v1832_v45 = vmax.f32 %v1822_v40, 0.0  ;;  %3604 = vmatprep.subr.bf16.mxu0 %v6358_v21  ;;  %v6376_v39 = vld [vmem:[#allocation4 + $0x3d4] ss:$48 sps:$4 sm:$0xff]   ;;  %v6374_v40 = vld [vmem:[#allocation4 + $0x3d0] ss:$48 sps:$4 sm:$0xff]  }
 0x1e2   :  { %v6379_v41 = vld [vmem:[#allocation4 + $0x374] ss:$48 sps:$4 sm:$0xff]   ;;  %v6467_v18 = vld [vmem:[#allocation4 + $0x970] ss:$48 sps:$4 sm:$0xff]   ;;  %v6481_v21 = vld [vmem:[#allocation4 + $0x8bc] ss:$48 sps:$4 sm:$0xff]  }
 0x1e3   :  { %v1833_v47 = vmax.f32 %v1824_v44, 0.0  ;;  %v6970_v55 = vpack.c.bf16 %v1832_v45, %v1828_v48  ;;  %v6382_v43 = vld [vmem:[#allocation4 + $0x314] ss:$48 sps:$4 sm:$0xff]   ;;  %v6380_v44 = vld [vmem:[#allocation4 + $0x310] ss:$48 sps:$4 sm:$0xff]  }
 0x1e4   :  { %3605 = vmatpush1.bf16.msra.mxu0 %v6356_v20  ;;  %v6383_v45 = vld [vmem:[#allocation4 + $0x8b0] ss:$48 sps:$4 sm:$0xff]   ;;  %v6457_v13 = vld [vmem:[#allocation4 + $0xa34] ss:$48 sps:$4 sm:$0xff]  }
 0x1e5   :  { %v1837_v50 = vpack.c.bf16 %v1833_v47, %v1829_v46  ;;  %3606 = vmatprep.subr.bf16.mxu0 %v6361_v22  ;;  %v6385_v46 = vld [vmem:[#allocation4 + $0x8b4] ss:$48 sps:$4 sm:$0xff]   ;;  %v6388_v47 = vld [vmem:[#allocation4 + $0x2bc] ss:$48 sps:$4 sm:$0xff]   ;;  %v6389_v48 = vld [vmem:[#allocation4 + $0x850] ss:$48 sps:$4 sm:$0xff]  }
 0x1e6   :  { %v6473_v20 = vld [vmem:[#allocation4 + $0x910] ss:$48 sps:$4 sm:$0xff]  }
 0x1e7   :  { %2697 = vmatprep.mubr.bf16.mxu1 %v1837_v50 }
 0x1e8   :  { %2698 = vmatmul.mubr.bf16.vlgmr.msra.gmra.mxu1 %v6970_v55  ;;  %3607 = vmatpush2.bf16.msra.mxu0 %v6359_v25 }
 0x1e9   :  { %2752 = vmatpush1.bf16.msra.mxu1 %v6287_v54  ;;  %2783 = vmatprep.mubr.bf16.mxu1 %v1837_v50  ;;  %v6391_v50 = vld [vmem:[#allocation4 + $0x854] ss:$48 sps:$4 sm:$0xff]   ;;  %v6395_v54 = vld [vmem:[#allocation4 + $0x7f0] ss:$48 sps:$4 sm:$0xff]  }
 0x1ea   :  { %2753 = vmatprep.subr.bf16.mxu1 %v6292_v11  ;;  %3608 = vmatprep.subr.bf16.mxu0 %v6364_v26  ;;  %v6401_v11 = vld [vmem:[#allocation4 + $0x790] ss:$48 sps:$4 sm:$0xff]  }
 0x1ec   :  { %3609 = vmatpush2.bf16.msra.mxu0 %v6362_v29 }
 0x1ed   :  { %2754 = vmatpush1.bf16.msra.mxu1 %v6290_v58  ;;  %3610 = vmatprep.subr.bf16.mxu0 %v6367_v51  ;;  %v6403_v58 = vld [vmem:[#allocation4 + $0x794] ss:$48 sps:$4 sm:$0xff]  }
 0x1ee   :  { %2755 = vmatprep.subr.bf16.mxu1 %v6295_v59  ;;  %v6407_v59 = vld [vmem:[#allocation4 + $0x730] ss:$48 sps:$4 sm:$0xff]  }
 0x1f0   :  { %3611 = vmatpush2.bf16.msra.mxu0 %v6365_v31 }
 0x1f1   :  { %2756 = vmatpush1.bf16.msra.mxu1 %v6293_v4  ;;  %3612 = vmatprep.subr.bf16.mxu0 %v6370_v32  ;;  %v6409_v4 = vld [vmem:[#allocation4 + $0x734] ss:$48 sps:$4 sm:$0xff]  }
 0x1f2   :  { %2757 = vmatprep.subr.bf16.mxu1 %v6298_v49  ;;  %v6413_v49 = vld [vmem:[#allocation4 + $0x6d0] ss:$48 sps:$4 sm:$0xff]  }
 0x1f4   :  { %3613 = vmatpush2.bf16.msra.mxu0 %v6368_v34 }
 0x1f5   :  { %2758 = vmatpush1.bf16.msra.mxu1 %v6296_v60  ;;  %3614 = vmatprep.subr.bf16.mxu0 %v6373_v36  ;;  %v6415_v60 = vld [vmem:[#allocation4 + $0x6d4] ss:$48 sps:$4 sm:$0xff]  }
 0x1f6   :  { %2759 = vmatprep.subr.bf16.mxu1 %v6301_v61  ;;  %v6419_v61 = vld [vmem:[#allocation4 + $0x670] ss:$48 sps:$4 sm:$0xff]  }
 0x1f8   :  { %3615 = vmatpush2.bf16.msra.mxu0 %v6371_v38 }
 0x1f9   :  { %2760 = vmatpush1.bf16.msra.mxu1 %v6299_v62  ;;  %3616 = vmatprep.subr.bf16.mxu0 %v6376_v39  ;;  %v6421_v62 = vld [vmem:[#allocation4 + $0x674] ss:$48 sps:$4 sm:$0xff]  }
 0x1fa   :  { %2761 = vmatprep.subr.bf16.mxu1 %v6304_v63  ;;  %v6425_v63 = vld [vmem:[#allocation4 + $0x610] ss:$48 sps:$4 sm:$0xff]  }
 0x1fc   :  { %3617 = vmatpush2.bf16.msra.mxu0 %v6374_v40 }
 0x1fd   :  { %2762 = vmatpush1.bf16.msra.mxu1 %v6302_v0  ;;  %3618 = vmatprep.subr.bf16.mxu0 %v6379_v41  ;;  %v6427_v0 = vld [vmem:[#allocation4 + $0x614] ss:$48 sps:$4 sm:$0xff]  }
 0x1fe   :  { %2763 = vmatprep.subr.bf16.mxu1 %v6307_v35  ;;  %v6431_v35 = vld [vmem:[#allocation4 + $0xbb0] ss:$48 sps:$4 sm:$0xff]  }
 0x200   :  { %3619 = vmatpush2.bf16.msra.mxu0 %v6377_v42 }
 0x201   :  { %2764 = vmatpush1.bf16.msra.mxu1 %v6305_v1  ;;  %3620 = vmatprep.subr.bf16.mxu0 %v6382_v43  ;;  %v6433_v1 = vld [vmem:[#allocation4 + $0xbb4] ss:$48 sps:$4 sm:$0xff]   ;;  %v6386_v43 = vld [vmem:[#allocation4 + $0x2b8] ss:$48 sps:$4 sm:$0xff]  }
 0x202   :  { %2765 = vmatprep.subr.bf16.mxu1 %v6310_v2  ;;  %v6437_v2 = vld [vmem:[#allocation4 + $0xb50] ss:$48 sps:$4 sm:$0xff]  }
 0x204   :  { %3621 = vmatpush2.bf16.msra.mxu0 %v6380_v44  ;;  %v6394_v44 = vld [vmem:[#allocation4 + $0x25c] ss:$48 sps:$4 sm:$0xff]  }
 0x205   :  { %2766 = vmatpush1.bf16.msra.mxu1 %v6308_v3  ;;  %3676 = vmatprep.subr.bf16.mxu0 %v6388_v47  ;;  %v6439_v3 = vld [vmem:[#allocation4 + $0xb54] ss:$48 sps:$4 sm:$0xff]   ;;  %v6398_v47 = vld [vmem:[#allocation4 + $0x1f8] ss:$48 sps:$4 sm:$0xff]  }
 0x206   :  { %2767 = vmatprep.subr.bf16.mxu1 %v6313_v6  ;;  %v6443_v6 = vld [vmem:[#allocation4 + $0xaf0] ss:$48 sps:$4 sm:$0xff]  }
 0x209   :  { %2768 = vmatpush2.bf16.msra.mxu1 %v6311_v8  ;;  %v6445_v8 = vld [vmem:[#allocation4 + $0xaf4] ss:$48 sps:$4 sm:$0xff]  }
 0x20a   :  { %2769 = vmatprep.subr.bf16.mxu1 %v6316_v9  ;;  %v6449_v9 = vld [vmem:[#allocation4 + $0xa90] ss:$48 sps:$4 sm:$0xff]  }
 0x20d   :  { %2770 = vmatpush2.bf16.msra.mxu1 %v6314_v12  ;;  %v6455_v12 = vld [vmem:[#allocation4 + $0xa30] ss:$48 sps:$4 sm:$0xff]  }
 0x20e   :  { %2771 = vmatprep.subr.bf16.mxu1 %v6319_v15  ;;  %v6463_v15 = vld [vmem:[#allocation4 + $0x9d4] ss:$48 sps:$4 sm:$0xff]  }
 0x211   :  { %2772 = vmatpush2.bf16.msra.mxu1 %v6317_v17  ;;  %v6469_v17 = vld [vmem:[#allocation4 + $0x974] ss:$48 sps:$4 sm:$0xff]  }
 0x212   :  { %2773 = vmatprep.subr.bf16.mxu1 %v6322_v19  ;;  %v6475_v19 = vld [vmem:[#allocation4 + $0x914] ss:$48 sps:$4 sm:$0xff]  }
 0x215   :  { %2774 = vmatpush2.bf16.msra.mxu1 %v6320_v23 }
 0x216   :  { %2775 = vmatprep.subr.bf16.mxu1 %v6325_v24  ;;  %v6975_v24 = vsub.s32 1, %v6945_v52 }
 0x218   :  { %v1973_v26 = vrot.slane %v6952_v57, %v6975_v24 }
 0x219   :  { %2776 = vmatpush2.bf16.msra.mxu1 %v6323_v27  ;;  %v1969_v27 = vrot.slane %v6947_v53, %v6975_v24 }
 0x21a   :  { %2777 = vmatprep.subr.bf16.mxu1 %v6328_v28 }
 0x21d   :  { %2778 = vmatpush2.bf16.msra.mxu1 %v6326_v30 }
 0x21e   :  { %2779 = vmatprep.subr.bf16.mxu1 %v6331_v56 }
 0x221   :  { %2780 = vmatpush2.bf16.msra.mxu1 %v6329_v33 }
 0x222   :  { %2781 = vmatprep.subr.bf16.mxu1 %v6334_v14 }
 0x225   :  { %2782 = vmatpush2.bf16.msra.mxu1 %v6332_v37 }
 0x226   :  { %3633 = vmatprep.subr.bf16.mxu1 %v6385_v46  ;;  %v6400_v46 = vld [vmem:[#allocation4 + $0x1fc] ss:$48 sps:$4 sm:$0xff]  }
 0x228   :  { %2784 = vmatmul.mubr.bf16.vlgmr.msra.gmra.mxu1 %v6970_v55  ;;  %v6397_v55 = vld [vmem:[#allocation4 + $0x7f4] ss:$48 sps:$4 sm:$0xff]  }
 0x229   :  { %3634 = vmatpush1.bf16.msra.mxu1 %v6383_v45  ;;  %v6392_v45 = vld [vmem:[#allocation4 + $0x258] ss:$48 sps:$4 sm:$0xff]  }
 0x22a   :  { %3635 = vmatprep.subr.bf16.mxu1 %v6391_v50  ;;  %v6404_v50 = vld [vmem:[#allocation4 + $0x198] ss:$48 sps:$4 sm:$0xff]  }
 0x22d   :  { %3636 = vmatpush1.bf16.msra.mxu1 %v6389_v48  ;;  %v6406_v48 = vld [vmem:[#allocation4 + $0x19c] ss:$48 sps:$4 sm:$0xff]  }
 0x22e   :  { %3637 = vmatprep.subr.bf16.mxu1 %v6397_v55  ;;  %v6410_v55 = vld [vmem:[#allocation4 + $0x138] ss:$48 sps:$4 sm:$0xff]  }
 0x231   :  { %3638 = vmatpush1.bf16.msra.mxu1 %v6395_v54  ;;  %v6412_v54 = vld [vmem:[#allocation4 + $0x13c] ss:$48 sps:$4 sm:$0xff]  }
 0x232   :  { %3639 = vmatprep.subr.bf16.mxu1 %v6403_v58  ;;  %v6416_v58 = vld [vmem:[#allocation4 + $0xd8] ss:$48 sps:$4 sm:$0xff]  }
 0x235   :  { %3640 = vmatpush1.bf16.msra.mxu1 %v6401_v11  ;;  %v6418_v11 = vld [vmem:[#allocation4 + $0xdc] ss:$48 sps:$4 sm:$0xff]  }
 0x236   :  { %3641 = vmatprep.subr.bf16.mxu1 %v6409_v4  ;;  %v6422_v4 = vld [vmem:[#allocation4 + $0x78] ss:$48 sps:$4 sm:$0xff]  }
 0x239   :  { %3642 = vmatpush1.bf16.msra.mxu1 %v6407_v59  ;;  %v6424_v59 = vld [vmem:[#allocation4 + $0x7c] ss:$48 sps:$4 sm:$0xff]  }
 0x23a   :  { %3643 = vmatprep.subr.bf16.mxu1 %v6415_v60  ;;  %v6428_v60 = vld [vmem:[#allocation4 + $0x18] ss:$48 sps:$4 sm:$0xff]  }
 0x23d   :  { %3644 = vmatpush1.bf16.msra.mxu1 %v6413_v49  ;;  %v6430_v49 = vld [vmem:[#allocation4 + $0x1c] ss:$48 sps:$4 sm:$0xff]  }
 0x23e   :  { %3645 = vmatprep.subr.bf16.mxu1 %v6421_v62  ;;  %v6434_v62 = vld [vmem:[#allocation4 + $0x5b8] ss:$48 sps:$4 sm:$0xff]  }
 0x241   :  { %3646 = vmatpush1.bf16.msra.mxu1 %v6419_v61  ;;  %v6436_v61 = vld [vmem:[#allocation4 + $0x5bc] ss:$48 sps:$4 sm:$0xff]  }
 0x242   :  { %3647 = vmatprep.subr.bf16.mxu1 %v6427_v0  ;;  %v6440_v0 = vld [vmem:[#allocation4 + $0x558] ss:$48 sps:$4 sm:$0xff]  }
 0x245   :  { %3648 = vmatpush1.bf16.msra.mxu1 %v6425_v63  ;;  %v6442_v63 = vld [vmem:[#allocation4 + $0x55c] ss:$48 sps:$4 sm:$0xff]  }
 0x246   :  { %3649 = vmatprep.subr.bf16.mxu1 %v6433_v1  ;;  %v6446_v1 = vld [vmem:[#allocation4 + $0x4f8] ss:$48 sps:$4 sm:$0xff]  }
 0x247   :  { %v2656_v22 = vpop.f32.mrf.mxu0 }
 0x248   :  { %v2657_v31 = vadd.f32 %v2656_v22, %v1969_v27 }
 0x249   :  { %3650 = vmatpush2.bf16.msra.mxu1 %v6431_v35  ;;  %v2658_v23 = vpop.f32.mrf.mxu0  ;;  %v6448_v35 = vld [vmem:[#allocation4 + $0x4fc] ss:$48 sps:$4 sm:$0xff]  }
 0x24a   :  { %3651 = vmatprep.subr.bf16.mxu1 %v6439_v3  ;;  %v2659_v30 = vadd.f32 %v2658_v23, %v1973_v26 }
 0x24b   :  { %v2660_v25 = vpop.f32.mrf.mxu0 }
 0x24c   :  { %v2661_v56 = vadd.f32 %v2660_v25, %v1969_v27  ;;  %v6470_v25 = vld [vmem:[#allocation4 + $0x378] ss:$48 sps:$4 sm:$0xff]  }
 0x24d   :  { %3652 = vmatpush2.bf16.msra.mxu1 %v6437_v2  ;;  %v2662_v29 = vpop.f32.mrf.mxu0  ;;  %v6454_v2 = vld [vmem:[#allocation4 + $0x49c] ss:$48 sps:$4 sm:$0xff]  }
 0x24e   :  { %3653 = vmatprep.subr.bf16.mxu1 %v6445_v8  ;;  %v2663_v33 = vadd.f32 %v2662_v29, %v1973_v26  ;;  %v6460_v8 = vld [vmem:[#allocation4 + $0x43c] ss:$48 sps:$4 sm:$0xff]  }
 0x251   :  { %3654 = vmatpush2.bf16.msra.mxu1 %v6443_v6  ;;  %v6452_v6 = vld [vmem:[#allocation4 + $0x498] ss:$48 sps:$4 sm:$0xff]  }
 0x252   :  { %3655 = vmatprep.subr.bf16.mxu1 %v6451_v10  ;;  %v6458_v10 = vld [vmem:[#allocation4 + $0x438] ss:$48 sps:$4 sm:$0xff]  }
 0x255   :  { %3656 = vmatpush2.bf16.msra.mxu1 %v6449_v9 }
 0x256   :  { %3657 = vmatprep.subr.bf16.mxu1 %v6457_v13 }
 0x259   :  { %3658 = vmatpush2.bf16.msra.mxu1 %v6455_v12  ;;  %v6466_v12 = vld [vmem:[#allocation4 + $0x3dc] ss:$48 sps:$4 sm:$0xff]  }
 0x25a   :  { %3659 = vmatprep.subr.bf16.mxu1 %v6463_v15  ;;  %v1981_v15 = vrot.slane %v6962_v5, %v6975_v24 }
 0x25d   :  { %3660 = vmatpush2.bf16.msra.mxu1 %v6461_v16  ;;  %v6464_v16 = vld [vmem:[#allocation4 + $0x3d8] ss:$48 sps:$4 sm:$0xff]  }
 0x25e   :  { %3661 = vmatprep.subr.bf16.mxu1 %v6469_v17  ;;  %v1977_v17 = vrot.slane %v6964_v7, %v6975_v24  ;;  %v6476_v7 = vld [vmem:[#allocation4 + $0x318] ss:$48 sps:$4 sm:$0xff]  }
 0x261   :  { %3662 = vmatpush2.bf16.msra.mxu1 %v6467_v18 }
 0x262   :  { %3663 = vmatprep.subr.bf16.mxu1 %v6475_v19  ;;  %v6472_v19 = vld [vmem:[#allocation4 + $0x37c] ss:$48 sps:$4 sm:$0xff]  }
 0x265   :  { %3664 = vmatpush2.bf16.msra.mxu1 %v6473_v20 }
 0x266   :  { %3719 = vmatprep.subr.bf16.mxu1 %v6481_v21 }
 0x287   :  { %v2742_v3 = vpop.f32.mrf.mxu0 }
 0x288   :  { %v2743_v26 = vadd.f32 %v2742_v3, %v1977_v17  ;;  %v6508_v3 = vld [vmem:[#allocation4 + $0xb5c] ss:$48 sps:$4 sm:$0xff]  }
 0x289   :  { %v2744_v9 = vpop.f32.mrf.mxu0 }
 0x28a   :  { %v2745_v22 = vadd.f32 %v2744_v9, %v1981_v15  ;;  %v6506_v9 = vld [vmem:[#allocation4 + $0xb58] ss:$48 sps:$4 sm:$0xff]  }
 0x28b   :  { %v2746_v13 = vpop.f32.mrf.mxu0 }
 0x28c   :  { %v2747_v23 = vadd.f32 %v2746_v13, %v1977_v17  ;;  %v6553_v13 = vld [vmem:[#allocation4 + $0x5c4] ss:$48 sps:$4 sm:$0xff]   ;;  %v6551_v17 = vld [vmem:[#allocation4 + $0x5c0] ss:$48 sps:$4 sm:$0xff]  }
 0x28d   :  { %v2748_v20 = vpop.f32.mrf.mxu0 }
 0x28e   :  { %v2749_v29 = vadd.f32 %v2748_v20, %v1981_v15  ;;  %v6509_v15 = vld [vmem:[#allocation4 + $0xaf8] ss:$48 sps:$4 sm:$0xff]   ;;  %v6517_v20 = vld [vmem:[#allocation4 + $0xa3c] ss:$48 sps:$4 sm:$0xff]  }
 0x2a8   :  { %v2699_v28 = vpop.f32.mrf.mxu1 }
 0x2a9   :  { %v2700_v36 = vadd.f32 %v2699_v28, %v2657_v31  ;;  %v6478_v28 = vld [vmem:[#allocation4 + $0x31c] ss:$48 sps:$4 sm:$0xff]  }
 0x2aa   :  { %v2701_v51 = vpop.f32.mrf.mxu1 }
 0x2ab   :  { %v2702_v14 = vadd.f32 %v2701_v51, %v2659_v30  ;;  %v2794_v57 = vmax.f32 %v2700_v36, 0.0  ;;  %v6479_v36 = vld [vmem:[#allocation4 + $0x8b8] ss:$48 sps:$4 sm:$0xff]  }
 0x2ac   :  { %v2703_v32 = vpop.f32.mrf.mxu1 }
 0x2ad   :  { %v2704_v34 = vadd.f32 %v2703_v32, %v2661_v56  ;;  %v2795_v40 = vmax.f32 %v2702_v14, 0.0 }
 0x2ae   :  { %v2705_v37 = vpop.f32.mrf.mxu1 }
 0x2af   :  { %v2706_v38 = vadd.f32 %v2705_v37, %v2663_v33  ;;  %v2798_v39 = vmax.f32 %v2704_v34, 0.0 }
 0x2b1   :  { %v2799_v41 = vmax.f32 %v2706_v38, 0.0  ;;  %v6981_v53 = vpack.c.bf16 %v2798_v39, %v2794_v57  ;;  %v6484_v38 = vld [vmem:[#allocation4 + $0x85c] ss:$48 sps:$4 sm:$0xff]   ;;  %v6482_v39 = vld [vmem:[#allocation4 + $0x858] ss:$48 sps:$4 sm:$0xff]  }
 0x2b2   :  { %v6490_v57 = vld [vmem:[#allocation4 + $0x79c] ss:$48 sps:$4 sm:$0xff]  }
 0x2b3   :  { %v2803_v42 = vpack.c.bf16 %v2799_v41, %v2795_v40  ;;  %v6487_v40 = vld [vmem:[#allocation4 + $0x7fc] ss:$48 sps:$4 sm:$0xff]   ;;  %v6485_v41 = vld [vmem:[#allocation4 + $0x7f8] ss:$48 sps:$4 sm:$0xff]  }
 0x2b5   :  { %3622 = vmatprep.mubr.bf16.mxu0 %v2803_v42 }
 0x2b6   :  { %3623 = vmatmul.mubr.bf16.vlgmr.msra.gmra.mxu0 %v6981_v53 }
 0x2b7   :  { %3677 = vmatpush1.bf16.msra.mxu0 %v6386_v43  ;;  %3708 = vmatprep.mubr.bf16.mxu0 %v2803_v42  ;;  %v6527_v42 = vld [vmem:[#allocation4 + $0x2c0] ss:$48 sps:$4 sm:$0xff]   ;;  %v6529_v43 = vld [vmem:[#allocation4 + $0x2c4] ss:$48 sps:$4 sm:$0xff]  }
 0x2b8   :  { %3678 = vmatprep.subr.bf16.mxu0 %v6394_v44  ;;  %v6532_v44 = vld [vmem:[#allocation4 + $0x264] ss:$48 sps:$4 sm:$0xff]  }
 0x2bb   :  { %3679 = vmatpush1.bf16.msra.mxu0 %v6392_v45  ;;  %v6488_v45 = vld [vmem:[#allocation4 + $0x798] ss:$48 sps:$4 sm:$0xff]  }
 0x2bc   :  { %3680 = vmatprep.subr.bf16.mxu0 %v6400_v46  ;;  %v6493_v46 = vld [vmem:[#allocation4 + $0x73c] ss:$48 sps:$4 sm:$0xff]  }
 0x2bf   :  { %3681 = vmatpush1.bf16.msra.mxu0 %v6398_v47  ;;  %v6530_v47 = vld [vmem:[#allocation4 + $0x260] ss:$48 sps:$4 sm:$0xff]  }
 0x2c0   :  { %3682 = vmatprep.subr.bf16.mxu0 %v6406_v48  ;;  %v6491_v48 = vld [vmem:[#allocation4 + $0x738] ss:$48 sps:$4 sm:$0xff]  }
 0x2c3   :  { %3683 = vmatpush1.bf16.msra.mxu0 %v6404_v50  ;;  %v6496_v50 = vld [vmem:[#allocation4 + $0x6dc] ss:$48 sps:$4 sm:$0xff]  }
 0x2c4   :  { %3684 = vmatprep.subr.bf16.mxu0 %v6412_v54  ;;  %v6533_v54 = vld [vmem:[#allocation4 + $0x200] ss:$48 sps:$4 sm:$0xff]  }
 0x2c7   :  { %3685 = vmatpush1.bf16.msra.mxu0 %v6410_v55  ;;  %v6538_v55 = vld [vmem:[#allocation4 + $0x1a4] ss:$48 sps:$4 sm:$0xff]  }
 0x2c8   :  { %3686 = vmatprep.subr.bf16.mxu0 %v6418_v11  ;;  %v6494_v11 = vld [vmem:[#allocation4 + $0x6d8] ss:$48 sps:$4 sm:$0xff]  }
 0x2cb   :  { %3687 = vmatpush1.bf16.msra.mxu0 %v6416_v58  ;;  %v6499_v58 = vld [vmem:[#allocation4 + $0x67c] ss:$48 sps:$4 sm:$0xff]  }
 0x2cc   :  { %3688 = vmatprep.subr.bf16.mxu0 %v6424_v59  ;;  %v6536_v59 = vld [vmem:[#allocation4 + $0x1a0] ss:$48 sps:$4 sm:$0xff]  }
 0x2cf   :  { %3689 = vmatpush1.bf16.msra.mxu0 %v6422_v4  ;;  %v6541_v4 = vld [vmem:[#allocation4 + $0x144] ss:$48 sps:$4 sm:$0xff]  }
 0x2d0   :  { %3690 = vmatprep.subr.bf16.mxu0 %v6430_v49  ;;  %v6497_v49 = vld [vmem:[#allocation4 + $0x678] ss:$48 sps:$4 sm:$0xff]  }
 0x2d3   :  { %3691 = vmatpush1.bf16.msra.mxu0 %v6428_v60  ;;  %v6502_v60 = vld [vmem:[#allocation4 + $0x61c] ss:$48 sps:$4 sm:$0xff]  }
 0x2d4   :  { %3692 = vmatprep.subr.bf16.mxu0 %v6436_v61  ;;  %v6539_v61 = vld [vmem:[#allocation4 + $0x140] ss:$48 sps:$4 sm:$0xff]  }
 0x2d7   :  { %3693 = vmatpush2.bf16.msra.mxu0 %v6434_v62  ;;  %v6544_v62 = vld [vmem:[#allocation4 + $0xe4] ss:$48 sps:$4 sm:$0xff]  }
 0x2d8   :  { %3694 = vmatprep.subr.bf16.mxu0 %v6442_v63  ;;  %v6500_v63 = vld [vmem:[#allocation4 + $0x618] ss:$48 sps:$4 sm:$0xff]  }
 0x2db   :  { %3695 = vmatpush2.bf16.msra.mxu0 %v6440_v0  ;;  %v6505_v0 = vld [vmem:[#allocation4 + $0xbbc] ss:$48 sps:$4 sm:$0xff]  }
 0x2dc   :  { %3696 = vmatprep.subr.bf16.mxu0 %v6448_v35  ;;  %v6542_v35 = vld [vmem:[#allocation4 + $0xe0] ss:$48 sps:$4 sm:$0xff]  }
 0x2df   :  { %3697 = vmatpush2.bf16.msra.mxu0 %v6446_v1  ;;  %v6547_v1 = vld [vmem:[#allocation4 + $0x84] ss:$48 sps:$4 sm:$0xff]  }
 0x2e0   :  { %3698 = vmatprep.subr.bf16.mxu0 %v6454_v2  ;;  %v6503_v2 = vld [vmem:[#allocation4 + $0xbb8] ss:$48 sps:$4 sm:$0xff]  }
 0x2e3   :  { %3699 = vmatpush2.bf16.msra.mxu0 %v6452_v6  ;;  %v6545_v6 = vld [vmem:[#allocation4 + $0x80] ss:$48 sps:$4 sm:$0xff]  }
 0x2e4   :  { %3700 = vmatprep.subr.bf16.mxu0 %v6460_v8  ;;  %v6550_v8 = vld [vmem:[#allocation4 + $0x24] ss:$48 sps:$4 sm:$0xff]  }
 0x2e7   :  { %3701 = vmatpush2.bf16.msra.mxu0 %v6458_v10  ;;  %v6511_v10 = vld [vmem:[#allocation4 + $0xafc] ss:$48 sps:$4 sm:$0xff]  }
 0x2e8   :  { %v2785_v18 = vpop.f32.mrf.mxu1  ;;  %3702 = vmatprep.subr.bf16.mxu0 %v6466_v12  ;;  %v6548_v12 = vld [vmem:[#allocation4 + $0x20] ss:$48 sps:$4 sm:$0xff]  }
 0x2e9   :  { %v2786_v30 = vadd.f32 %v2785_v18, %v2743_v26  ;;  %v6556_v18 = vld [vmem:[#allocation4 + $0x564] ss:$48 sps:$4 sm:$0xff]   ;;  %v6557_v26 = vld [vmem:[#allocation4 + $0x500] ss:$48 sps:$4 sm:$0xff]  }
 0x2ea   :  { %v2787_v21 = vpop.f32.mrf.mxu1 }
 0x2eb   :  { %3703 = vmatpush2.bf16.msra.mxu0 %v6464_v16  ;;  %v2788_v5 = vadd.f32 %v2787_v21, %v2745_v22  ;;  %v2796_v14 = vmax.f32 %v2786_v30, 0.0  ;;  %v6514_v16 = vld [vmem:[#allocation4 + $0xa9c] ss:$48 sps:$4 sm:$0xff]   ;;  %v6554_v21 = vld [vmem:[#allocation4 + $0x560] ss:$48 sps:$4 sm:$0xff]  }
 0x2ec   :  { %v2789_v27 = vpop.f32.mrf.mxu1  ;;  %3704 = vmatprep.subr.bf16.mxu0 %v6472_v19  ;;  %v6512_v19 = vld [vmem:[#allocation4 + $0xa98] ss:$48 sps:$4 sm:$0xff]   ;;  %v6559_v22 = vld [vmem:[#allocation4 + $0x504] ss:$48 sps:$4 sm:$0xff]  }
 0x2ed   :  { %v2790_v51 = vadd.f32 %v2789_v27, %v2747_v23  ;;  %v2797_v32 = vmax.f32 %v2788_v5, 0.0  ;;  %v6515_v23 = vld [vmem:[#allocation4 + $0xa38] ss:$48 sps:$4 sm:$0xff]   ;;  %v6562_v27 = vld [vmem:[#allocation4 + $0x4a4] ss:$48 sps:$4 sm:$0xff]  }
 0x2ee   :  { %v2791_v56 = vpop.f32.mrf.mxu1  ;;  %v6560_v5 = vld [vmem:[#allocation4 + $0x4a0] ss:$48 sps:$4 sm:$0xff]   ;;  %v6521_v30 = vld [vmem:[#allocation4 + $0x978] ss:$48 sps:$4 sm:$0xff]  }
 0x2ef   :  { %v2792_v31 = vadd.f32 %v2791_v56, %v2749_v29  ;;  %3705 = vmatpush2.bf16.msra.mxu0 %v6470_v25  ;;  %v2800_v24 = vmax.f32 %v2790_v51, 0.0  ;;  %v6520_v25 = vld [vmem:[#allocation4 + $0x9dc] ss:$48 sps:$4 sm:$0xff]   ;;  %v6565_v51 = vld [vmem:[#allocation4 + $0x444] ss:$48 sps:$4 sm:$0xff]  }
 0x2f0   :  { %3706 = vmatprep.subr.bf16.mxu0 %v6478_v28  ;;  %v6518_v28 = vld [vmem:[#allocation4 + $0x9d8] ss:$48 sps:$4 sm:$0xff]   ;;  %v6523_v29 = vld [vmem:[#allocation4 + $0x97c] ss:$48 sps:$4 sm:$0xff]  }
 0x2f1   :  { %v2801_v33 = vmax.f32 %v2792_v31, 0.0  ;;  %v6988_v37 = vpack.c.bf16 %v2800_v24, %v2796_v14  ;;  %v6526_v56 = vld [vmem:[#allocation4 + $0x91c] ss:$48 sps:$4 sm:$0xff]   ;;  %v6563_v31 = vld [vmem:[#allocation4 + $0x440] ss:$48 sps:$4 sm:$0xff]  }
 0x2f2   :  { %v6568_v24 = vld [vmem:[#allocation4 + $0x3e4] ss:$48 sps:$4 sm:$0xff]   ;;  %v6569_v14 = vld [vmem:[#allocation4 + $0x380] ss:$48 sps:$4 sm:$0xff]  }
 0x2f3   :  { %v2805_v34 = vpack.c.bf16 %v2801_v33, %v2797_v32  ;;  %3707 = vmatpush2.bf16.msra.mxu0 %v6476_v7  ;;  %v6524_v7 = vld [vmem:[#allocation4 + $0x918] ss:$48 sps:$4 sm:$0xff]   ;;  %v6566_v32 = vld [vmem:[#allocation4 + $0x3e0] ss:$48 sps:$4 sm:$0xff]   ;;  %v6571_v33 = vld [vmem:[#allocation4 + $0x384] ss:$48 sps:$4 sm:$0xff]  }
 0x2f4   :  { %4558 = vmatprep.subr.bf16.mxu0 %v6529_v43  ;;  %v6593_v43 = vld [vmem:[#allocation4 + $0x7a0] ss:$48 sps:$4 sm:$0xff]  }
 0x2f5   :  { %3665 = vmatprep.mubr.bf16.mxu1 %v2805_v34 }
 0x2f6   :  { %3666 = vmatmul.mubr.bf16.vlgmr.msra.gmra.mxu1 %v6988_v37  ;;  %3709 = vmatmul.mubr.bf16.vlgmr.msra.gmra.mxu0 %v6981_v53  ;;  %v6535_v53 = vld [vmem:[#allocation4 + $0x204] ss:$48 sps:$4 sm:$0xff]  }
 0x2f7   :  { %3720 = vmatpush1.bf16.msra.mxu1 %v6479_v36  ;;  %3751 = vmatprep.mubr.bf16.mxu1 %v2805_v34  ;;  %v6574_v34 = vld [vmem:[#allocation4 + $0x324] ss:$48 sps:$4 sm:$0xff]   ;;  %v6572_v36 = vld [vmem:[#allocation4 + $0x320] ss:$48 sps:$4 sm:$0xff]  }
 0x2f8   :  { %3721 = vmatprep.subr.bf16.mxu1 %v6484_v38  ;;  %4559 = vmatpush1.bf16.msra.mxu0 %v6527_v42  ;;  %v6575_v38 = vld [vmem:[#allocation4 + $0x8c0] ss:$48 sps:$4 sm:$0xff]   ;;  %v6589_v42 = vld [vmem:[#allocation4 + $0x804] ss:$48 sps:$4 sm:$0xff]  }
 0x2f9   :  { %4560 = vmatprep.subr.bf16.mxu0 %v6532_v44  ;;  %v6595_v44 = vld [vmem:[#allocation4 + $0x7a4] ss:$48 sps:$4 sm:$0xff]  }
 0x2fb   :  { %3722 = vmatpush1.bf16.msra.mxu1 %v6482_v39  ;;  %v6577_v39 = vld [vmem:[#allocation4 + $0x8c4] ss:$48 sps:$4 sm:$0xff]  }
 0x2fc   :  { %3723 = vmatprep.subr.bf16.mxu1 %v6487_v40  ;;  %4561 = vmatpush1.bf16.msra.mxu0 %v6530_v47  ;;  %v6580_v40 = vld [vmem:[#allocation4 + $0x2cc] ss:$48 sps:$4 sm:$0xff]   ;;  %v6605_v47 = vld [vmem:[#allocation4 + $0x6e0] ss:$48 sps:$4 sm:$0xff]  }
 0x2fd   :  { %4562 = vmatprep.subr.bf16.mxu0 %v6535_v53  ;;  %v6607_v53 = vld [vmem:[#allocation4 + $0x6e4] ss:$48 sps:$4 sm:$0xff]  }
 0x2ff   :  { %3724 = vmatpush1.bf16.msra.mxu1 %v6485_v41  ;;  %v6581_v41 = vld [vmem:[#allocation4 + $0x860] ss:$48 sps:$4 sm:$0xff]  }
 0x300   :  { %3725 = vmatprep.subr.bf16.mxu1 %v6490_v57  ;;  %4563 = vmatpush1.bf16.msra.mxu0 %v6533_v54  ;;  %v6587_v57 = vld [vmem:[#allocation4 + $0x800] ss:$48 sps:$4 sm:$0xff]  }
 0x301   :  { %4564 = vmatprep.subr.bf16.mxu0 %v6538_v55  ;;  %v6617_v54 = vld [vmem:[#allocation4 + $0x620] ss:$48 sps:$4 sm:$0xff]   ;;  %v6619_v55 = vld [vmem:[#allocation4 + $0x624] ss:$48 sps:$4 sm:$0xff]  }
 0x303   :  { %3726 = vmatpush1.bf16.msra.mxu1 %v6488_v45  ;;  %v6599_v45 = vld [vmem:[#allocation4 + $0x740] ss:$48 sps:$4 sm:$0xff]  }
 0x304   :  { %3727 = vmatprep.subr.bf16.mxu1 %v6493_v46  ;;  %4565 = vmatpush1.bf16.msra.mxu0 %v6536_v59  ;;  %v6601_v46 = vld [vmem:[#allocation4 + $0x744] ss:$48 sps:$4 sm:$0xff]   ;;  %v6629_v59 = vld [vmem:[#allocation4 + $0xb60] ss:$48 sps:$4 sm:$0xff]  }
 0x305   :  { %4566 = vmatprep.subr.bf16.mxu0 %v6541_v4  ;;  %v6631_v4 = vld [vmem:[#allocation4 + $0xb64] ss:$48 sps:$4 sm:$0xff]  }
 0x307   :  { %3728 = vmatpush1.bf16.msra.mxu1 %v6491_v48  ;;  %v6611_v48 = vld [vmem:[#allocation4 + $0x680] ss:$48 sps:$4 sm:$0xff]  }
 0x308   :  { %3729 = vmatprep.subr.bf16.mxu1 %v6496_v50  ;;  %4567 = vmatpush1.bf16.msra.mxu0 %v6539_v61  ;;  %v6613_v50 = vld [vmem:[#allocation4 + $0x684] ss:$48 sps:$4 sm:$0xff]   ;;  %v6641_v61 = vld [vmem:[#allocation4 + $0xaa0] ss:$48 sps:$4 sm:$0xff]  }
 0x309   :  { %4568 = vmatprep.subr.bf16.mxu0 %v6544_v62  ;;  %v6643_v62 = vld [vmem:[#allocation4 + $0xaa4] ss:$48 sps:$4 sm:$0xff]  }
 0x30b   :  { %3730 = vmatpush1.bf16.msra.mxu1 %v6494_v11  ;;  %v6623_v11 = vld [vmem:[#allocation4 + $0xbc0] ss:$48 sps:$4 sm:$0xff]  }
 0x30c   :  { %3731 = vmatprep.subr.bf16.mxu1 %v6499_v58  ;;  %4569 = vmatpush1.bf16.msra.mxu0 %v6542_v35  ;;  %v6625_v58 = vld [vmem:[#allocation4 + $0xbc4] ss:$48 sps:$4 sm:$0xff]  }
 0x30d   :  { %4570 = vmatprep.subr.bf16.mxu0 %v6547_v1  ;;  %v6655_v35 = vld [vmem:[#allocation4 + $0x9e4] ss:$48 sps:$4 sm:$0xff]   ;;  %v6653_v1 = vld [vmem:[#allocation4 + $0x9e0] ss:$48 sps:$4 sm:$0xff]  }
 0x30f   :  { %3732 = vmatpush1.bf16.msra.mxu1 %v6497_v49  ;;  %v6635_v49 = vld [vmem:[#allocation4 + $0xb00] ss:$48 sps:$4 sm:$0xff]  }
 0x310   :  { %3733 = vmatprep.subr.bf16.mxu1 %v6502_v60  ;;  %4571 = vmatpush1.bf16.msra.mxu0 %v6545_v6  ;;  %v6637_v60 = vld [vmem:[#allocation4 + $0xb04] ss:$48 sps:$4 sm:$0xff]  }
 0x311   :  { %4572 = vmatprep.subr.bf16.mxu0 %v6550_v8  ;;  %v6667_v6 = vld [vmem:[#allocation4 + $0x924] ss:$48 sps:$4 sm:$0xff]   ;;  %v6665_v8 = vld [vmem:[#allocation4 + $0x920] ss:$48 sps:$4 sm:$0xff]  }
 0x313   :  { %3734 = vmatpush1.bf16.msra.mxu1 %v6500_v63  ;;  %v6647_v63 = vld [vmem:[#allocation4 + $0xa40] ss:$48 sps:$4 sm:$0xff]  }
 0x314   :  { %3735 = vmatprep.subr.bf16.mxu1 %v6505_v0  ;;  %4573 = vmatpush1.bf16.msra.mxu0 %v6548_v12  ;;  %v6649_v0 = vld [vmem:[#allocation4 + $0xa44] ss:$48 sps:$4 sm:$0xff]  }
 0x315   :  { %4574 = vmatprep.subr.bf16.mxu0 %v6553_v13  ;;  %v6994_v13 = vsub.s32 2, %v6945_v52 }
 0x317   :  { %3736 = vmatpush2.bf16.msra.mxu1 %v6503_v2  ;;  %v6661_v2 = vld [vmem:[#allocation4 + $0x984] ss:$48 sps:$4 sm:$0xff]  }
 0x318   :  { %3737 = vmatprep.subr.bf16.mxu1 %v6508_v3  ;;  %4575 = vmatpush2.bf16.msra.mxu0 %v6551_v17  ;;  %v6659_v3 = vld [vmem:[#allocation4 + $0x980] ss:$48 sps:$4 sm:$0xff]  }
 0x319   :  { %4576 = vmatprep.subr.bf16.mxu0 %v6556_v18  ;;  %v7000_v18 = vld [vmem:[#allocation7] sm:$0xff] }
 0x31b   :  { %3738 = vmatpush2.bf16.msra.mxu1 %v6506_v9  ;;  %v6673_v9 = vld [vmem:[#allocation4 + $0x8cc] ss:$48 sps:$4 sm:$0xff]  }
 0x31c   :  { %3739 = vmatprep.subr.bf16.mxu1 %v6511_v10  ;;  %4577 = vmatpush2.bf16.msra.mxu0 %v6554_v21 }
 0x31d   :  { %4578 = vmatprep.subr.bf16.mxu0 %v6559_v22 }
 0x31f   :  { %3740 = vmatpush2.bf16.msra.mxu1 %v6509_v15 }
 0x320   :  { %3741 = vmatprep.subr.bf16.mxu1 %v6514_v16  ;;  %4579 = vmatpush2.bf16.msra.mxu0 %v6557_v26  ;;  %v6996_v16 = vld [vmem:[#allocation7 + $0x8] sm:$0xff] }
 0x321   :  { %4580 = vmatprep.subr.bf16.mxu0 %v6562_v27  ;;  %v2941_v17 = vrot.slane %v6996_v16, %v6994_v13 }
 0x323   :  { %3742 = vmatpush2.bf16.msra.mxu1 %v6512_v19  ;;  %v2937_v19 = vrot.slane %v7000_v18, %v6994_v13 }
 0x324   :  { %3743 = vmatprep.subr.bf16.mxu1 %v6517_v20  ;;  %4581 = vmatpush2.bf16.msra.mxu0 %v6560_v5 }
 0x325   :  { %4582 = vmatprep.subr.bf16.mxu0 %v6565_v51 }
 0x327   :  { %3744 = vmatpush2.bf16.msra.mxu1 %v6515_v23 }
 0x328   :  { %3745 = vmatprep.subr.bf16.mxu1 %v6520_v25  ;;  %4583 = vmatpush2.bf16.msra.mxu0 %v6563_v31 }
 0x329   :  { %4584 = vmatprep.subr.bf16.mxu0 %v6568_v24 }
 0x32b   :  { %3746 = vmatpush2.bf16.msra.mxu1 %v6518_v28 }
 0x32c   :  { %3747 = vmatprep.subr.bf16.mxu1 %v6523_v29  ;;  %4585 = vmatpush2.bf16.msra.mxu0 %v6566_v32 }
 0x32d   :  { %4586 = vmatprep.subr.bf16.mxu0 %v6571_v33 }
 0x32f   :  { %3748 = vmatpush2.bf16.msra.mxu1 %v6521_v30 }
 0x330   :  { %3749 = vmatprep.subr.bf16.mxu1 %v6526_v56  ;;  %4587 = vmatpush2.bf16.msra.mxu0 %v6569_v14  ;;  %v6578_v14 = vld [vmem:[#allocation4 + $0x2c8] ss:$48 sps:$4 sm:$0xff]  }
 0x331   :  { %4588 = vmatprep.subr.bf16.mxu0 %v6574_v34 }
 0x333   :  { %3750 = vmatpush2.bf16.msra.mxu1 %v6524_v7 }
 0x334   :  { %4589 = vmatpush2.bf16.msra.mxu0 %v6572_v36  ;;  %4601 = vmatprep.subr.bf16.mxu1 %v6577_v39  ;;  %v6586_v36 = vld [vmem:[#allocation4 + $0x26c] ss:$48 sps:$4 sm:$0xff]  }
 0x335   :  { %4644 = vmatprep.subr.bf16.mxu0 %v6580_v40  ;;  %v6592_v39 = vld [vmem:[#allocation4 + $0x20c] ss:$48 sps:$4 sm:$0xff]   ;;  %v6590_v40 = vld [vmem:[#allocation4 + $0x208] ss:$48 sps:$4 sm:$0xff]  }
 0x336   :  { %3752 = vmatmul.mubr.bf16.vlgmr.msra.gmra.mxu1 %v6988_v37  ;;  %v6583_v37 = vld [vmem:[#allocation4 + $0x864] ss:$48 sps:$4 sm:$0xff]  }
 0x337   :  { %4602 = vmatpush1.bf16.msra.mxu1 %v6575_v38  ;;  %v6584_v38 = vld [vmem:[#allocation4 + $0x268] ss:$48 sps:$4 sm:$0xff]  }
 0x338   :  { %4603 = vmatprep.subr.bf16.mxu1 %v6583_v37  ;;  %v6596_v37 = vld [vmem:[#allocation4 + $0x1a8] ss:$48 sps:$4 sm:$0xff]  }
 0x33b   :  { %4604 = vmatpush1.bf16.msra.mxu1 %v6581_v41  ;;  %v6598_v41 = vld [vmem:[#allocation4 + $0x1ac] ss:$48 sps:$4 sm:$0xff]  }
 0x33c   :  { %4605 = vmatprep.subr.bf16.mxu1 %v6589_v42  ;;  %v6602_v42 = vld [vmem:[#allocation4 + $0x148] ss:$48 sps:$4 sm:$0xff]  }
 0x33f   :  { %4606 = vmatpush1.bf16.msra.mxu1 %v6587_v57  ;;  %v6604_v57 = vld [vmem:[#allocation4 + $0x14c] ss:$48 sps:$4 sm:$0xff]  }
 0x340   :  { %4607 = vmatprep.subr.bf16.mxu1 %v6595_v44  ;;  %v6608_v44 = vld [vmem:[#allocation4 + $0xe8] ss:$48 sps:$4 sm:$0xff]  }
 0x343   :  { %4608 = vmatpush1.bf16.msra.mxu1 %v6593_v43  ;;  %v6610_v43 = vld [vmem:[#allocation4 + $0xec] ss:$48 sps:$4 sm:$0xff]  }
 0x344   :  { %4609 = vmatprep.subr.bf16.mxu1 %v6601_v46  ;;  %v6614_v46 = vld [vmem:[#allocation4 + $0x88] ss:$48 sps:$4 sm:$0xff]  }
 0x347   :  { %4610 = vmatpush1.bf16.msra.mxu1 %v6599_v45  ;;  %v6616_v45 = vld [vmem:[#allocation4 + $0x8c] ss:$48 sps:$4 sm:$0xff]  }
 0x348   :  { %4611 = vmatprep.subr.bf16.mxu1 %v6607_v53  ;;  %v6620_v53 = vld [vmem:[#allocation4 + $0x28] ss:$48 sps:$4 sm:$0xff]  }
 0x34b   :  { %4612 = vmatpush1.bf16.msra.mxu1 %v6605_v47  ;;  %v6622_v47 = vld [vmem:[#allocation4 + $0x2c] ss:$48 sps:$4 sm:$0xff]  }
 0x34c   :  { %4613 = vmatprep.subr.bf16.mxu1 %v6613_v50  ;;  %v6626_v50 = vld [vmem:[#allocation4 + $0x5c8] ss:$48 sps:$4 sm:$0xff]  }
 0x34f   :  { %4614 = vmatpush1.bf16.msra.mxu1 %v6611_v48  ;;  %v6628_v48 = vld [vmem:[#allocation4 + $0x5cc] ss:$48 sps:$4 sm:$0xff]  }
 0x350   :  { %4615 = vmatprep.subr.bf16.mxu1 %v6619_v55  ;;  %v6632_v55 = vld [vmem:[#allocation4 + $0x568] ss:$48 sps:$4 sm:$0xff]  }
 0x353   :  { %4616 = vmatpush1.bf16.msra.mxu1 %v6617_v54  ;;  %v6634_v54 = vld [vmem:[#allocation4 + $0x56c] ss:$48 sps:$4 sm:$0xff]  }
 0x354   :  { %4617 = vmatprep.subr.bf16.mxu1 %v6625_v58  ;;  %v6638_v58 = vld [vmem:[#allocation4 + $0x508] ss:$48 sps:$4 sm:$0xff]  }
 0x357   :  { %4618 = vmatpush2.bf16.msra.mxu1 %v6623_v11  ;;  %v6640_v11 = vld [vmem:[#allocation4 + $0x50c] ss:$48 sps:$4 sm:$0xff]  }
 0x358   :  { %4619 = vmatprep.subr.bf16.mxu1 %v6631_v4 }
 0x35b   :  { %4620 = vmatpush2.bf16.msra.mxu1 %v6629_v59  ;;  %v6646_v59 = vld [vmem:[#allocation4 + $0x4ac] ss:$48 sps:$4 sm:$0xff]  }
 0x35c   :  { %4621 = vmatprep.subr.bf16.mxu1 %v6637_v60  ;;  %v6652_v60 = vld [vmem:[#allocation4 + $0x44c] ss:$48 sps:$4 sm:$0xff]  }
 0x35f   :  { %4622 = vmatpush2.bf16.msra.mxu1 %v6635_v49  ;;  %v6644_v49 = vld [vmem:[#allocation4 + $0x4a8] ss:$48 sps:$4 sm:$0xff]  }
 0x360   :  { %4623 = vmatprep.subr.bf16.mxu1 %v6643_v62  ;;  %v6650_v62 = vld [vmem:[#allocation4 + $0x448] ss:$48 sps:$4 sm:$0xff]  }
 0x363   :  { %4624 = vmatpush2.bf16.msra.mxu1 %v6641_v61 }
 0x364   :  { %4625 = vmatprep.subr.bf16.mxu1 %v6649_v0 }
 0x367   :  { %4626 = vmatpush2.bf16.msra.mxu1 %v6647_v63  ;;  %v6658_v63 = vld [vmem:[#allocation4 + $0x3ec] ss:$48 sps:$4 sm:$0xff]  }
 0x368   :  { %4627 = vmatprep.subr.bf16.mxu1 %v6655_v35  ;;  %v7007_v35 = vld [vmem:[#allocation7 + $0x18] sm:$0xff] }
 0x36b   :  { %4628 = vmatpush2.bf16.msra.mxu1 %v6653_v1  ;;  %v2949_v1 = vrot.slane %v7007_v35, %v6994_v13 }
 0x36c   :  { %4629 = vmatprep.subr.bf16.mxu1 %v6661_v2  ;;  %v6656_v2 = vld [vmem:[#allocation4 + $0x3e8] ss:$48 sps:$4 sm:$0xff]  }
 0x36f   :  { %4630 = vmatpush2.bf16.msra.mxu1 %v6659_v3  ;;  %v7011_v3 = vld [vmem:[#allocation7 + $0x10] sm:$0xff] }
 0x370   :  { %4631 = vmatprep.subr.bf16.mxu1 %v6667_v6  ;;  %v2945_v6 = vrot.slane %v7011_v3, %v6994_v13  ;;  %v6668_v13 = vld [vmem:[#allocation4 + $0x328] ss:$48 sps:$4 sm:$0xff]  }
 0x373   :  { %4632 = vmatpush2.bf16.msra.mxu1 %v6665_v8 }
 0x374   :  { %4687 = vmatprep.subr.bf16.mxu1 %v6673_v9  ;;  %v6664_v9 = vld [vmem:[#allocation4 + $0x38c] ss:$48 sps:$4 sm:$0xff]  }
 0x376   :  { %v3624_v10 = vpop.f32.mrf.mxu0 }
 0x377   :  { %v3625_v26 = vadd.f32 %v3624_v10, %v2937_v19 }
 0x378   :  { %v3626_v12 = vpop.f32.mrf.mxu0 }
 0x379   :  { %v3627_v23 = vadd.f32 %v3626_v12, %v2941_v17 }
 0x37a   :  { %v3628_v15 = vpop.f32.mrf.mxu0 }
 0x37b   :  { %v3629_v25 = vadd.f32 %v3628_v15, %v2937_v19  ;;  %v6662_v19 = vld [vmem:[#allocation4 + $0x388] ss:$48 sps:$4 sm:$0xff]  }
 0x37c   :  { %v3630_v21 = vpop.f32.mrf.mxu0 }
 0x37d   :  { %v3631_v28 = vadd.f32 %v3630_v21, %v2941_v17 }
 0x3b6   :  { %v3667_v20 = vpop.f32.mrf.mxu1  ;;  %v3710_v4 = vpop.f32.mrf.mxu0 }
 0x3b7   :  { %v3668_v51 = vadd.f32 %v3667_v20, %v3625_v26  ;;  %v3711_v20 = vadd.f32 %v3710_v4, %v2945_v6  ;;  %v6695_v4 = vld [vmem:[#allocation4 + $0xbc8] ss:$48 sps:$4 sm:$0xff]  }
 0x3b8   :  { %v3669_v22 = vpop.f32.mrf.mxu1  ;;  %v3712_v61 = vpop.f32.mrf.mxu0 }
 0x3b9   :  { %v3670_v29 = vadd.f32 %v3669_v22, %v3627_v23  ;;  %v3762_v32 = vmax.f32 %v3668_v51, 0.0  ;;  %v3713_v15 = vadd.f32 %v3712_v61, %v2949_v1  ;;  %v6670_v22 = vld [vmem:[#allocation4 + $0x32c] ss:$48 sps:$4 sm:$0xff]  }
 0x3ba   :  { %v3671_v27 = vpop.f32.mrf.mxu1  ;;  %v3714_v0 = vpop.f32.mrf.mxu0  ;;  %v6703_v61 = vld [vmem:[#allocation4 + $0xb0c] ss:$48 sps:$4 sm:$0xff]  }
 0x3bb   :  { %v3672_v5 = vadd.f32 %v3671_v27, %v3629_v25  ;;  %v3763_v7 = vmax.f32 %v3670_v29, 0.0  ;;  %v3715_v17 = vadd.f32 %v3714_v0, %v2945_v6  ;;  %v6704_v0 = vld [vmem:[#allocation4 + $0xaa8] ss:$48 sps:$4 sm:$0xff]   ;;  %v6712_v6 = vld [vmem:[#allocation4 + $0x9ec] ss:$48 sps:$4 sm:$0xff]  }
 0x3bc   :  { %v3673_v30 = vpop.f32.mrf.mxu1  ;;  %v3716_v10 = vpop.f32.mrf.mxu0 }
 0x3bd   :  { %v3674_v56 = vadd.f32 %v3673_v30, %v3631_v28  ;;  %v3766_v31 = vmax.f32 %v3672_v5, 0.0  ;;  %v3717_v23 = vadd.f32 %v3716_v10, %v2949_v1  ;;  %v6709_v1 = vld [vmem:[#allocation4 + $0xa4c] ss:$48 sps:$4 sm:$0xff]   ;;  %v6713_v10 = vld [vmem:[#allocation4 + $0x988] ss:$48 sps:$4 sm:$0xff]  }
 0x3bf   :  { %v3767_v24 = vmax.f32 %v3674_v56, 0.0  ;;  %v7004_v34 = vpack.c.bf16 %v3766_v31, %v3762_v32  ;;  %v6676_v32 = vld [vmem:[#allocation4 + $0x86c] ss:$48 sps:$4 sm:$0xff]  }
 0x3c1   :  { %v3771_v33 = vpack.c.bf16 %v3767_v24, %v3763_v7  ;;  %v6671_v7 = vld [vmem:[#allocation4 + $0x8c8] ss:$48 sps:$4 sm:$0xff]  }
 0x3c3   :  { %4590 = vmatprep.mubr.bf16.mxu0 %v3771_v33 }
 0x3c4   :  { %4591 = vmatmul.mubr.bf16.vlgmr.msra.gmra.mxu0 %v7004_v34 }
 0x3c5   :  { %4645 = vmatpush1.bf16.msra.mxu0 %v6578_v14  ;;  %4676 = vmatprep.mubr.bf16.mxu0 %v3771_v33  ;;  %v6674_v33 = vld [vmem:[#allocation4 + $0x868] ss:$48 sps:$4 sm:$0xff]   ;;  %v6679_v14 = vld [vmem:[#allocation4 + $0x80c] ss:$48 sps:$4 sm:$0xff]  }
 0x3c6   :  { %4646 = vmatprep.subr.bf16.mxu0 %v6586_v36  ;;  %v6677_v36 = vld [vmem:[#allocation4 + $0x808] ss:$48 sps:$4 sm:$0xff]  }
 0x3c9   :  { %4647 = vmatpush1.bf16.msra.mxu0 %v6584_v38  ;;  %v6682_v38 = vld [vmem:[#allocation4 + $0x7ac] ss:$48 sps:$4 sm:$0xff]  }
 0x3ca   :  { %4648 = vmatprep.subr.bf16.mxu0 %v6592_v39  ;;  %v6719_v39 = vld [vmem:[#allocation6 + $0x78] sm:$0xff]  }
 0x3cd   :  { %4649 = vmatpush1.bf16.msra.mxu0 %v6590_v40  ;;  %v6720_v40 = vld [vmem:[#allocation6 + $0x38] sm:$0xff]  }
 0x3ce   :  { %4650 = vmatprep.subr.bf16.mxu0 %v6598_v41  ;;  %v6721_v41 = vld [vmem:[#allocation6 + $0x70] sm:$0xff]  }
 0x3d1   :  { %4651 = vmatpush1.bf16.msra.mxu0 %v6596_v37  ;;  %v6680_v37 = vld [vmem:[#allocation4 + $0x7a8] ss:$48 sps:$4 sm:$0xff]  }
 0x3d2   :  { %4652 = vmatprep.subr.bf16.mxu0 %v6604_v57  ;;  %v6685_v57 = vld [vmem:[#allocation4 + $0x74c] ss:$48 sps:$4 sm:$0xff]  }
 0x3d5   :  { %4653 = vmatpush1.bf16.msra.mxu0 %v6602_v42  ;;  %v6722_v42 = vld [vmem:[#allocation6 + $0x30] sm:$0xff]  }
 0x3d6   :  { %4654 = vmatprep.subr.bf16.mxu0 %v6610_v43  ;;  %v6683_v43 = vld [vmem:[#allocation4 + $0x748] ss:$48 sps:$4 sm:$0xff]  }
 0x3d9   :  { %4655 = vmatpush1.bf16.msra.mxu0 %v6608_v44  ;;  %v6688_v44 = vld [vmem:[#allocation4 + $0x6ec] ss:$48 sps:$4 sm:$0xff]  }
 0x3da   :  { %4656 = vmatprep.subr.bf16.mxu0 %v6616_v45  ;;  %v6724_v45 = vld [vmem:[#allocation6 + $0x28] sm:$0xff]  }
 0x3dd   :  { %4657 = vmatpush1.bf16.msra.mxu0 %v6614_v46  ;;  %v6725_v46 = vld [vmem:[#allocation6 + $0x60] sm:$0xff]  }
 0x3de   :  { %4658 = vmatprep.subr.bf16.mxu0 %v6622_v47  ;;  %v6686_v47 = vld [vmem:[#allocation4 + $0x6e8] ss:$48 sps:$4 sm:$0xff]  }
 0x3e1   :  { %4659 = vmatpush1.bf16.msra.mxu0 %v6620_v53  ;;  %v6691_v53 = vld [vmem:[#allocation4 + $0x68c] ss:$48 sps:$4 sm:$0xff]  }
 0x3e2   :  { %4660 = vmatprep.subr.bf16.mxu0 %v6628_v48  ;;  %v6726_v48 = vld [vmem:[#allocation6 + $0x20] sm:$0xff]  }
 0x3e5   :  { %4661 = vmatpush2.bf16.msra.mxu0 %v6626_v50  ;;  %v6727_v50 = vld [vmem:[#allocation6 + $0x58] sm:$0xff]  }
 0x3e6   :  { %4662 = vmatprep.subr.bf16.mxu0 %v6634_v54  ;;  %v6689_v54 = vld [vmem:[#allocation4 + $0x688] ss:$48 sps:$4 sm:$0xff]  }
 0x3e9   :  { %4663 = vmatpush2.bf16.msra.mxu0 %v6632_v55  ;;  %v6694_v55 = vld [vmem:[#allocation4 + $0x62c] ss:$48 sps:$4 sm:$0xff]  }
 0x3ea   :  { %4664 = vmatprep.subr.bf16.mxu0 %v6640_v11  ;;  %v6728_v11 = vld [vmem:[#allocation6 + $0x18] sm:$0xff]  }
 0x3ed   :  { %4665 = vmatpush2.bf16.msra.mxu0 %v6638_v58  ;;  %v6692_v58 = vld [vmem:[#allocation4 + $0x628] ss:$48 sps:$4 sm:$0xff]  }
 0x3ee   :  { %4666 = vmatprep.subr.bf16.mxu0 %v6646_v59  ;;  %v6697_v59 = vld [vmem:[#allocation4 + $0xbcc] ss:$48 sps:$4 sm:$0xff]  }
 0x3f1   :  { %4667 = vmatpush2.bf16.msra.mxu0 %v6644_v49  ;;  %v6700_v49 = vld [vmem:[#allocation4 + $0xb6c] ss:$48 sps:$4 sm:$0xff]  }
 0x3f2   :  { %4668 = vmatprep.subr.bf16.mxu0 %v6652_v60  ;;  %v6698_v60 = vld [vmem:[#allocation4 + $0xb68] ss:$48 sps:$4 sm:$0xff]  }
 0x3f5   :  { %4669 = vmatpush2.bf16.msra.mxu0 %v6650_v62  ;;  %v6701_v62 = vld [vmem:[#allocation4 + $0xb08] ss:$48 sps:$4 sm:$0xff]  }
 0x3f6   :  { %v3753_v8 = vpop.f32.mrf.mxu1  ;;  %4670 = vmatprep.subr.bf16.mxu0 %v6658_v63  ;;  %v6706_v63 = vld [vmem:[#allocation4 + $0xaac] ss:$48 sps:$4 sm:$0xff]  }
 0x3f7   :  { %v3754_v27 = vadd.f32 %v3753_v8, %v3711_v20  ;;  %v6710_v8 = vld [vmem:[#allocation4 + $0x9e8] ss:$48 sps:$4 sm:$0xff]  }
 0x3f8   :  { %v3755_v12 = vpop.f32.mrf.mxu1  ;;  %v6731_v20 = vld [vmem:[#allocation6 + $0x48] sm:$0xff]  }
 0x3f9   :  { %4671 = vmatpush2.bf16.msra.mxu0 %v6656_v2  ;;  %v3756_v25 = vadd.f32 %v3755_v12, %v3713_v15  ;;  %v3764_v56 = vmax.f32 %v3754_v27, 0.0  ;;  %v6707_v2 = vld [vmem:[#allocation4 + $0xa48] ss:$48 sps:$4 sm:$0xff]   ;;  %v6718_v12 = vld [vmem:[#allocation4 + $0x92c] ss:$48 sps:$4 sm:$0xff]   ;;  %v6737_v27 = vld [vmem:[#allocation6 + $0xf0] sm:$0xff]  }
 0x3fa   :  { %v3757_v21 = vpop.f32.mrf.mxu1  ;;  %4672 = vmatprep.subr.bf16.mxu0 %v6664_v9  ;;  %v6715_v9 = vld [vmem:[#allocation4 + $0x98c] ss:$48 sps:$4 sm:$0xff]   ;;  %v6716_v15 = vld [vmem:[#allocation4 + $0x928] ss:$48 sps:$4 sm:$0xff]  }
 0x3fb   :  { %v3758_v26 = vadd.f32 %v3757_v21, %v3715_v17  ;;  %v3765_v51 = vmax.f32 %v3756_v25, 0.0  ;;  %v6729_v17 = vld [vmem:[#allocation6 + $0x50] sm:$0xff]   ;;  %v6732_v21 = vld [vmem:[#allocation6 + $0x8] sm:$0xff]   ;;  %v6735_v25 = vld [vmem:[#allocation6 + $0xf8] sm:$0xff]  }
 0x3fc   :  { %v3759_v28 = vpop.f32.mrf.mxu1 }
 0x3fd   :  { %v3760_v29 = vadd.f32 %v3759_v28, %v3717_v23  ;;  %4673 = vmatpush2.bf16.msra.mxu0 %v6662_v19  ;;  %v3768_v5 = vmax.f32 %v3758_v26, 0.0  ;;  %v6730_v19 = vld [vmem:[#allocation6 + $0x10] sm:$0xff]   ;;  %v6734_v23 = vld [vmem:[#allocation6] sm:$0xff]   ;;  %v6736_v26 = vld [vmem:[#allocation6 + $0xb8] sm:$0xff]  }
 0x3fe   :  { %4674 = vmatprep.subr.bf16.mxu0 %v6670_v22  ;;  %v6733_v22 = vld [vmem:[#allocation6 + $0x40] sm:$0xff]   ;;  %v6738_v28 = vld [vmem:[#allocation6 + $0xb0] sm:$0xff]  }
 0x3ff   :  { %v3769_v30 = vmax.f32 %v3760_v29, 0.0  ;;  %v7015_v24 = vpack.c.bf16 %v3768_v5, %v3764_v56  ;;  %v6739_v29 = vld [vmem:[#allocation6 + $0xe8] sm:$0xff]   ;;  %v6741_v5 = vld [vmem:[#allocation6 + $0xe0] sm:$0xff]   ;;  %v6744_v56 = vld [vmem:[#allocation6 + $0x98] sm:$0xff]  }
 0x401   :  { %v3773_v31 = vpack.c.bf16 %v3769_v30, %v3765_v51  ;;  %4675 = vmatpush2.bf16.msra.mxu0 %v6668_v13  ;;  %v6740_v13 = vld [vmem:[#allocation6 + $0xa8] sm:$0xff]   ;;  %v6742_v51 = vld [vmem:[#allocation6 + $0xa0] sm:$0xff]   ;;  %v6743_v30 = vld [vmem:[#allocation6 + $0xd8] sm:$0xff]  }
 0x402   :  { %5742 = vmatprep.subr.bf16.mxu0 %v6719_v39  ;;  %v3904_v39 = vsub.s32 3, %v6945_v52 }
 0x403   :  { %4633 = vmatprep.mubr.bf16.mxu1 %v3773_v31 }
 0x404   :  { %4634 = vmatmul.mubr.bf16.vlgmr.msra.gmra.mxu1 %v7015_v24  ;;  %4677 = vmatmul.mubr.bf16.vlgmr.msra.gmra.mxu0 %v7004_v34  ;;  %v6723_v34 = vld [vmem:[#allocation6 + $0x68] sm:$0xff]  }
 0x405   :  { %4688 = vmatpush1.bf16.msra.mxu1 %v6671_v7  ;;  %4719 = vmatprep.mubr.bf16.mxu1 %v3773_v31  ;;  %v6745_v31 = vld [vmem:[#allocation6 + $0xd0] sm:$0xff]  }
 0x406   :  { %4689 = vmatprep.subr.bf16.mxu1 %v6676_v32  ;;  %5743 = vmatpush3.bf16.msra.mxu0 %v6720_v40  ;;  %v6746_v7 = vld [vmem:[#allocation6 + $0x90] sm:$0xff]   ;;  %v6748_v32 = vld [vmem:[#allocation6 + $0x88] sm:$0xff]  }
 0x407   :  { %5744 = vmatprep.subr.bf16.mxu0 %v6721_v41  ;;  %v3909_v41 = vrot.slane %v6996_v16, %v3904_v39 }
 0x409   :  { %4690 = vmatpush1.bf16.msra.mxu1 %v6674_v33  ;;  %v6749_v33 = vld [vmem:[#allocation6 + $0xc0] sm:$0xff]  }
 0x40a   :  { %4691 = vmatprep.subr.bf16.mxu1 %v6679_v14  ;;  %5745 = vmatpush3.bf16.msra.mxu0 %v6722_v42  ;;  %v6750_v14 = vld [vmem:[#allocation6 + $0x80] sm:$0xff]  }
 0x40b   :  { %5746 = vmatprep.subr.bf16.mxu0 %v6723_v34 }
 0x40d   :  { %4692 = vmatpush1.bf16.msra.mxu1 %v6677_v36 }
 0x40e   :  { %4693 = vmatprep.subr.bf16.mxu1 %v6682_v38  ;;  %5747 = vmatpush3.bf16.msra.mxu0 %v6724_v45 }
 0x40f   :  { %5748 = vmatprep.subr.bf16.mxu0 %v6725_v46 }
 0x411   :  { %4694 = vmatpush1.bf16.msra.mxu1 %v6680_v37  ;;  %v3905_v37 = vrot.slane %v7000_v18, %v3904_v39 }
 0x412   :  { %4695 = vmatprep.subr.bf16.mxu1 %v6685_v57  ;;  %5749 = vmatpush3.bf16.msra.mxu0 %v6726_v48 }
 0x413   :  { %5750 = vmatprep.subr.bf16.mxu0 %v6727_v50 }
 0x415   :  { %4696 = vmatpush1.bf16.msra.mxu1 %v6683_v43 }
 0x416   :  { %4697 = vmatprep.subr.bf16.mxu1 %v6688_v44  ;;  %5751 = vmatpush3.bf16.msra.mxu0 %v6728_v11 }
 0x417   :  { %5752 = vmatprep.subr.bf16.mxu0 %v6729_v17 }
 0x419   :  { %4698 = vmatpush1.bf16.msra.mxu1 %v6686_v47 }
 0x41a   :  { %4699 = vmatprep.subr.bf16.mxu1 %v6691_v53  ;;  %5753 = vmatpush3.bf16.msra.mxu0 %v6730_v19 }
 0x41b   :  { %5754 = vmatprep.subr.bf16.mxu0 %v6731_v20 }
 0x41d   :  { %4700 = vmatpush1.bf16.msra.mxu1 %v6689_v54 }
 0x41e   :  { %4701 = vmatprep.subr.bf16.mxu1 %v6694_v55  ;;  %5755 = vmatpush3.bf16.msra.mxu0 %v6732_v21 }
 0x41f   :  { %5756 = vmatprep.subr.bf16.mxu0 %v6733_v22 }
 0x421   :  { %4702 = vmatpush1.bf16.msra.mxu1 %v6692_v58 }
 0x422   :  { %4703 = vmatprep.subr.bf16.mxu1 %v6697_v59  ;;  %5757 = vmatpush3.bf16.msra.mxu0 %v6734_v23 }
 0x425   :  { %4704 = vmatpush2.bf16.msra.mxu1 %v6695_v4 }
 0x426   :  { %4705 = vmatprep.subr.bf16.mxu1 %v6700_v49 }
 0x429   :  { %4706 = vmatpush2.bf16.msra.mxu1 %v6698_v60 }
 0x42a   :  { %4707 = vmatprep.subr.bf16.mxu1 %v6703_v61 }
 0x42d   :  { %4708 = vmatpush2.bf16.msra.mxu1 %v6701_v62 }
 0x42e   :  { %4709 = vmatprep.subr.bf16.mxu1 %v6706_v63  ;;  %v3917_v63 = vrot.slane %v7007_v35, %v3904_v39 }
 0x431   :  { %4710 = vmatpush2.bf16.msra.mxu1 %v6704_v0  ;;  %v3913_v0 = vrot.slane %v7011_v3, %v3904_v39 }
 0x432   :  { %4711 = vmatprep.subr.bf16.mxu1 %v6709_v1 }
 0x435   :  { %4712 = vmatpush2.bf16.msra.mxu1 %v6707_v2 }
 0x436   :  { %4713 = vmatprep.subr.bf16.mxu1 %v6712_v6 }
 0x439   :  { %4714 = vmatpush2.bf16.msra.mxu1 %v6710_v8 }
 0x43a   :  { %4715 = vmatprep.subr.bf16.mxu1 %v6715_v9 }
 0x43d   :  { %4716 = vmatpush2.bf16.msra.mxu1 %v6713_v10 }
 0x43e   :  { %4717 = vmatprep.subr.bf16.mxu1 %v6718_v12 }
 0x441   :  { %4718 = vmatpush2.bf16.msra.mxu1 %v6716_v15 }
 0x442   :  { %5764 = vmatprep.subr.bf16.mxu1 %v6735_v25 }
 0x444   :  { %4720 = vmatmul.mubr.bf16.vlgmr.msra.gmra.mxu1 %v7015_v24  ;;  %v6747_v24 = vld [vmem:[#allocation6 + $0xc8] sm:$0xff]  }
 0x445   :  { %5765 = vmatpush3.bf16.msra.mxu1 %v6736_v26 }
 0x446   :  { %5766 = vmatprep.subr.bf16.mxu1 %v6737_v27 }
 0x449   :  { %5767 = vmatpush3.bf16.msra.mxu1 %v6738_v28 }
 0x44a   :  { %5768 = vmatprep.subr.bf16.mxu1 %v6739_v29 }
 0x44d   :  { %5769 = vmatpush3.bf16.msra.mxu1 %v6740_v13  ;;  %v4808_v13 = vsub.s32 4, %v6945_v52 }
 0x44e   :  { %5770 = vmatprep.subr.bf16.mxu1 %v6741_v5 }
 0x451   :  { %5771 = vmatpush3.bf16.msra.mxu1 %v6742_v51  ;;  %v4809_v51 = vrot.slane %v7000_v18, %v4808_v13 }
 0x452   :  { %5772 = vmatprep.subr.bf16.mxu1 %v6743_v30 }
 0x455   :  { %5773 = vmatpush3.bf16.msra.mxu1 %v6744_v56 }
 0x456   :  { %5774 = vmatprep.subr.bf16.mxu1 %v6745_v31 }
 0x459   :  { %5775 = vmatpush3.bf16.msra.mxu1 %v6746_v7 }
 0x45a   :  { %5776 = vmatprep.subr.bf16.mxu1 %v6747_v24 }
 0x45d   :  { %5777 = vmatpush3.bf16.msra.mxu1 %v6748_v32 }
 0x45e   :  { %5778 = vmatprep.subr.bf16.mxu1 %v6749_v33 }
 0x461   :  { %5779 = vmatpush3.bf16.msra.mxu1 %v6750_v14 }
 0x484   :  { %v4592_v36 = vpop.f32.mrf.mxu0 }
 0x485   :  { %v4593_v45 = vadd.f32 %v4592_v36, %v3905_v37 }
 0x486   :  { %v4594_v38 = vpop.f32.mrf.mxu0 }
 0x487   :  { %v4595_v43 = vadd.f32 %v4594_v38, %v3909_v41 }
 0x488   :  { %v4596_v40 = vpop.f32.mrf.mxu0 }
 0x489   :  { %v4597_v44 = vadd.f32 %v4596_v40, %v3905_v37 }
 0x48a   :  { %v4598_v42 = vpop.f32.mrf.mxu0 }
 0x48b   :  { %v4599_v47 = vadd.f32 %v4598_v42, %v3909_v41 }
 0x4c4   :  { %v4635_v57 = vpop.f32.mrf.mxu1  ;;  %v4678_v60 = vpop.f32.mrf.mxu0 }
 0x4c5   :  { %v4636_v50 = vadd.f32 %v4635_v57, %v4593_v45  ;;  %v4679_v10 = vadd.f32 %v4678_v60, %v3913_v0 }
 0x4c6   :  { %v4637_v34 = vpop.f32.mrf.mxu1  ;;  %v4680_v61 = vpop.f32.mrf.mxu0 }
 0x4c7   :  { %v4638_v53 = vadd.f32 %v4637_v34, %v4595_v43  ;;  %v4730_v4 = vmax.f32 %v4636_v50, 0.0  ;;  %v4681_v8 = vadd.f32 %v4680_v61, %v3917_v63 }
 0x4c8   :  { %v4639_v46 = vpop.f32.mrf.mxu1  ;;  %v4682_v62 = vpop.f32.mrf.mxu0 }
 0x4c9   :  { %v4640_v48 = vadd.f32 %v4639_v46, %v4597_v44  ;;  %v4731_v58 = vmax.f32 %v4638_v53, 0.0  ;;  %v4683_v9 = vadd.f32 %v4682_v62, %v3913_v0 }
 0x4ca   :  { %v4641_v54 = vpop.f32.mrf.mxu1  ;;  %v4684_v2 = vpop.f32.mrf.mxu0 }
 0x4cb   :  { %v4642_v55 = vadd.f32 %v4641_v54, %v4599_v47  ;;  %v4734_v11 = vmax.f32 %v4640_v48, 0.0  ;;  %v4685_v15 = vadd.f32 %v4684_v2, %v3917_v63 }
 0x4cd   :  { %v4735_v59 = vmax.f32 %v4642_v55, 0.0  ;;  %v4738_v49 = vpack.c.bf16 %v4734_v11, %v4730_v4 }
 0x4cf   :  { %v4739_v16 = vpack.c.bf16 %v4735_v59, %v4731_v58 }
 0x4d1   :  { %5034 = vmatprep.mubr.bf16.mxu0 %v4739_v16 }
 0x4d2   :  { %5035 = vmatmul.mubr.bf16.vlgmr.msra.gmra.mxu0 %v4738_v49 }
 0x504   :  { %v4721_v1 = vpop.f32.mrf.mxu1 }
 0x505   :  { %v4722_v20 = vadd.f32 %v4721_v1, %v4679_v10 }
 0x506   :  { %v4723_v6 = vpop.f32.mrf.mxu1 }
 0x507   :  { %v4724_v17 = vadd.f32 %v4723_v6, %v4681_v8  ;;  %v4732_v27 = vmax.f32 %v4722_v20, 0.0 }
 0x508   :  { %v4725_v12 = vpop.f32.mrf.mxu1 }
 0x509   :  { %v4726_v19 = vadd.f32 %v4725_v12, %v4683_v9  ;;  %v4733_v25 = vmax.f32 %v4724_v17, 0.0 }
 0x50a   :  { %v4727_v21 = vpop.f32.mrf.mxu1 }
 0x50b   :  { %v4728_v22 = vadd.f32 %v4727_v21, %v4685_v15  ;;  %v4736_v23 = vmax.f32 %v4726_v19, 0.0 }
 0x50d   :  { %v4737_v26 = vmax.f32 %v4728_v22, 0.0  ;;  %v4740_v28 = vpack.c.bf16 %v4736_v23, %v4732_v27 }
 0x50f   :  { %v4741_v35 = vpack.c.bf16 %v4737_v26, %v4733_v25 }
 0x511   :  { %5075 = vmatprep.mubr.bf16.mxu1 %v4741_v35 }
 0x512   :  { %5076 = vmatmul.mubr.bf16.vlgmr.msra.gmra.mxu1 %v4740_v28 }
 0x592   :  { %v5758_v3 = vpop.f32.mrf.mxu0 }
 0x594   :  { %v5759_v29 = vpop.f32.mrf.mxu0 }
 0x595   :  { %v5760_v30 = vadd.f32 %v5759_v29, %v5758_v3 }
 0x596   :  { %v5761_v5 = vpop.f32.mrf.mxu0 }
 0x597   :  { %v5037_v24 = vadd.f32 %v5760_v30, %v4809_v51 }
 0x598   :  { %v5762_v56 = vpop.f32.mrf.mxu0 }
 0x599   :  { %v5763_v32 = vadd.f32 %v5762_v56, %v5761_v5 }
 0x59b   :  { %v5040_v39 = vadd.f32 %v5763_v32, %v4809_v51 }
 0x5d2   :  { %v5780_v31 = vpop.f32.mrf.mxu1 }
 0x5d4   :  { %v5781_v7 = vpop.f32.mrf.mxu1 }
 0x5d5   :  { %v5782_v33 = vadd.f32 %v5781_v7, %v5780_v31 }
 0x5d6   :  { %v5783_v14 = vpop.f32.mrf.mxu1 }
 0x5d7   :  { %v5078_v36 = vadd.f32 %v5782_v33, %v5037_v24 }
 0x5d8   :  { %v5784_v38 = vpop.f32.mrf.mxu1 }
 0x5d9   :  { %v5084_v40 = vmax.f32 %v5078_v36, 0.0  ;;  %v5785_v41 = vadd.f32 %v5784_v38, %v5783_v14 }
 0x5db   :  { %5086 = vst [vmem:[%s7038_s5] sm:$0xff] %v5084_v40  ;;  %v5081_v52 = vadd.f32 %v5785_v41, %v5040_v39 }
 0x5dd   :  { %v5085_v37 = vmax.f32 %v5081_v52, 0.0 }
 0x5df   :  { %5087 = vst [vmem:[%s7038_s5 + $0x8] sm:$0xff] %v5085_v37 }
 0x5e0   :  { %5092 = vsyncpa [#allocation3], 1 }
 0x5e1   :  { %5093 = vsyncpa [#allocation5], 1 }
 0x5e2   :  { %5094 = vsyncpa [#allocation8], 1 }

</bundles_post_ra>
